<compile_context>
chip_gen: v5e
topology: v5e:2x2
jax: 0.10.0
libtpu: 0.0.40
codegen_flags: <defaults>
</compile_context>

<pallas_src>
import jax
import jax.numpy as jnp
from jax import lax
from jax.experimental import pallas as pl
from jax.experimental.pallas import tpu as pltpu


def _pcnn_kernel(x_ref, wb1_ref, b1_ref, wb2_ref, b2_ref, wfc_ref, bfc_ref,
                 o_ref, p1_ref):
    """PCNN forward for one batch tile, fully resident in VMEM.

    x_ref   : (TB, 28, 28*Cin)   rows = (b, h), lanes = w*Cin + c
    wb1_ref : (5, 28*Cin, 144)   banded conv1 weights; out lanes = parity*72 + wp*6 + c
    b1_ref  : (1, 144)
    wb2_ref : (5, 72, 128)       banded conv2 weights; out lanes = parity*64 + jp*16 + c
    b2_ref  : (1, 128)
    wfc_ref : (256, 128)         fc weights, rows = ip*64 + jp*16 + c, cols 10 real + 118 zero
    bfc_ref : (1, 128)
    o_ref   : (TB, 128)          lane-dense output (first 10 lanes are the logits)
    p1_ref  : (TB, 12, 72)       scratch: pool1 output (conv2 input), lanes = wp*6 + c
    """
    TB = x_ref.shape[0]
    wc_in = x_ref.shape[2]
    f32 = jnp.float32

    # ---- conv1: 5 banded matmuls over kh, contraction over (kw, cin) on the MXU ----------
    x = x_ref[...]                                                # (TB, 28, 28*Cin)
    acc1 = None
    for kh in range(5):
        rows = x[:, kh:kh + 24, :].reshape(TB * 24, wc_in)        # (TB*24, 28*Cin)
        t = jnp.dot(rows, wb1_ref[kh], preferred_element_type=f32)   # (TB*24, 144)
        acc1 = t if acc1 is None else acc1 + t
    h1 = jnp.maximum(acc1 + b1_ref[...], 0.0).reshape(TB, 24, 144)   # bias + ReLU

    # ---- maxpool1 2x2 ---------------------------------------------------------------------
    # width: columns were de-interleaved at trace time -> one 72-lane max (pure VPU)
    wm = jnp.maximum(h1[:, :, :72], h1[:, :, 72:])                # (TB, 24, 72)
    # height: row-pair max into the conv2 input scratch
    for hp in range(12):
        p1_ref[:, hp, :] = jnp.maximum(wm[:, 2 * hp, :], wm[:, 2 * hp + 1, :])

    # ---- conv2: 5 banded matmuls over kh ---------------------------------------------------
    acc2 = None
    for kh in range(5):
        rows = p1_ref[:, kh:kh + 8, :].reshape(TB * 8, 72)        # (TB*8, 72)
        t = jnp.dot(rows, wb2_ref[kh], preferred_element_type=f32)   # (TB*8, 128)
        acc2 = t if acc2 is None else acc2 + t
    h2 = jnp.maximum(acc2 + b2_ref[...], 0.0).reshape(TB, 8, 128)    # lanes = parity*64+jp*16+c

    # ---- maxpool2 2x2 fused directly into the fc matmul ------------------------------------
    out = None
    for ip in range(4):
        rmax = jnp.maximum(h2[:, 2 * ip, :], h2[:, 2 * ip + 1, :])       # (TB, 128) row-pair max
        pooled = jnp.maximum(rmax[:, :64], rmax[:, 64:])                 # (TB, 64)  width-pair max
        t = jnp.dot(pooled, wfc_ref[64 * ip:64 * ip + 64, :],
                    preferred_element_type=f32)                          # (TB, 128)
        out = t if out is None else out + t

    # ---- fc bias + ReLU; single unmasked 128-lane store ------------------------------------
    o_ref[...] = jnp.maximum(out + bfc_ref[...], 0.0)


def _band_from_conv(w_hwio, w_out):
    """Per-kh banded matrices so the width convolution becomes one matmul, with output
    columns de-interleaved for 2x2 pooling.

    w_hwio: (KH, KW, Cin, Cout).  Returns (KH, (w_out+KW-1)*Cin, w_out*Cout) with
    column order = parity*(w_out//2*Cout) + wp*Cout + cout, where w_out_idx = 2*wp + parity.
    """
    kh_, kw_, cin, cout = w_hwio.shape
    w_in = w_out + kw_ - 1
    wi = jnp.arange(w_in)[:, None]
    wo = jnp.arange(w_out)[None, :]
    k = wi - wo                                                   # (w_in, w_out)
    valid = ((k >= 0) & (k < kw_)).astype(w_hwio.dtype)
    band = w_hwio[:, jnp.clip(k, 0, kw_ - 1), :, :]               # (KH, w_in, w_out, Cin, Cout)
    band = band * valid[None, :, :, None, None]
    band = jnp.transpose(band, (0, 1, 3, 2, 4))                   # (KH, w_in, Cin, w_out, Cout)
    # de-interleave output width: w_out_idx = 2*wp + parity -> order (parity, wp, cout)
    band = band.reshape(kh_, w_in, cin, w_out // 2, 2, cout)
    band = jnp.transpose(band, (0, 1, 2, 4, 3, 5))                # (KH, w_in, Cin, parity, wp, Cout)
    return band.reshape(kh_, w_in * cin, w_out * cout)


def pcnn_forward(x_nchw, params, *, block_batch=8):
    """Wrapper: weight / layout glue only, then one pallas_call with a batch grid."""
    f32 = jnp.float32
    B, cin, H, W = x_nchw.shape
    assert (H, W) == (28, 28), "PCNN's fc1 (16*16) implies 28x28 spatial input"

    # NCHW -> (B, H, W*Cin): lanes = w*Cin + c  (pure layout glue)
    x = jnp.transpose(x_nchw, (0, 2, 3, 1)).reshape(B, 28, 28 * cin).astype(f32)

    w1_hwio = jnp.transpose(params['conv1_w'], (2, 3, 1, 0)).astype(f32)   # (5,5,Cin,6)
    w2_hwio = jnp.transpose(params['conv2_w'], (2, 3, 1, 0)).astype(f32)   # (5,5,6,16)
    wb1 = _band_from_conv(w1_hwio, 24)                            # (5, 28*Cin, 144)
    wb2 = _band_from_conv(w2_hwio, 8)                             # (5, 72, 128)
    # bias depends only on the channel (lanes = something*Cout + c), so a plain tile matches
    # the de-interleaved column order too.
    b1 = jnp.tile(params['conv1_b'].astype(f32), 24).reshape(1, 144)
    b2 = jnp.tile(params['conv2_b'].astype(f32), 8).reshape(1, 128)
    # fc weight (10, 256), torch flat index c*16 + i*4 + j  ->  rows ordered i*64 + j*16 + c,
    # then zero-padded to 128 output lanes so the final store is unmasked.
    wfc = jnp.transpose(params['fc1_w'].reshape(10, 16, 4, 4),
                        (2, 3, 1, 0)).reshape(256, 10).astype(f32)
    wfc = jnp.pad(wfc, ((0, 0), (0, 118)))                        # (256, 128)
    bfc = jnp.pad(params['fc1_b'].astype(f32).reshape(1, 10), ((0, 0), (0, 118)))

    TB = min(block_batch, B)
    pad = (-B) % TB
    if pad:
        x = jnp.concatenate([x, jnp.zeros((pad, 28, 28 * cin), f32)], axis=0)
    bp = B + pad

    def full_spec(a):
        n = a.ndim
        return pl.BlockSpec(a.shape, lambda b: (0,) * n)

    out = pl.pallas_call(
        _pcnn_kernel,
        out_shape=jax.ShapeDtypeStruct((bp, 128), f32),
        grid=(bp // TB,),
        in_specs=[
            pl.BlockSpec((TB, 28, 28 * cin), lambda b: (b, 0, 0)),
            full_spec(wb1), full_spec(b1),
            full_spec(wb2), full_spec(b2),
            full_spec(wfc), full_spec(bfc),
        ],
        out_specs=pl.BlockSpec((TB, 128), lambda b: (b, 0)),
        scratch_shapes=[
            pltpu.VMEM((TB, 12, 72), f32),    # pool1 output (conv2 input)
        ],
        compiler_params=pltpu.CompilerParams(dimension_semantics=("parallel",)),
    )(x, wb1, b1, wb2, b2, wfc, bfc)
    return out[:B, :10]


def pcnn_reference(x_nchw, params):
    """Pure-JAX reference mirroring the PyTorch forward exactly."""
    dn = ('NCHW', 'OIHW', 'NCHW')
    hi = lax.Precision.HIGHEST
    h = lax.conv_general_dilated(x_nchw, params['conv1_w'], (1, 1), 'VALID',
                                 dimension_numbers=dn, precision=hi)
    h = jax.nn.relu(h + params['conv1_b'].reshape(1, -1, 1, 1))
    h = lax.reduce_window(h, -jnp.inf, lax.max, (1, 1, 2, 2), (1, 1, 2, 2), 'VALID')
    h = lax.conv_general_dilated(h, params['conv2_w'], (1, 1), 'VALID',
                                 dimension_numbers=dn, precision=hi)
    h = jax.nn.relu(h + params['conv2_b'].reshape(1, -1, 1, 1))
    h = lax.reduce_window(h, -jnp.inf, lax.max, (1, 1, 2, 2), (1, 1, 2, 2), 'VALID')
    h = h.reshape(h.shape[0], -1)                                 # (B, 256), torch NCHW order
    return jax.nn.relu(jnp.dot(h, params['fc1_w'].T, precision=hi) + params['fc1_b'])


if __name__ == "__main__":
    key = jax.random.PRNGKey(0)
    kx, k1, k2, k3, k4, k5, k6 = jax.random.split(key, 7)
    B, CIN = 16, 3                                  # opt['im_chan'] = 3; grid of 2 batch tiles
    x = jax.random.normal(kx, (B, CIN, 28, 28), jnp.float32)
    params = {
        'conv1_w': 0.1 * jax.random.normal(k1, (6, CIN, 5, 5), jnp.float32),
        'conv1_b': 0.1 * jax.random.normal(k2, (6,), jnp.float32),
        'conv2_w': 0.1 * jax.random.normal(k3, (16, 6, 5, 5), jnp.float32),
        'conv2_b': 0.1 * jax.random.normal(k4, (16,), jnp.float32),
        'fc1_w': 0.1 * jax.random.normal(k5, (10, 16 * 16), jnp.float32),
        'fc1_b': 0.1 * jax.random.normal(k6, (10,), jnp.float32),
    }

    out = jax.block_until_ready(pcnn_forward(x, params, block_batch=8))
    ref = jax.block_until_ready(pcnn_reference(x, params))
    assert out.shape == (B, 10), out.shape
    # default (non-HIGHEST) MXU precision -> allow bf16-pass level error
    assert jnp.allclose(out, ref, atol=5e-2, rtol=5e-2), (out, ref)
    print("KERNEL_OK")
</pallas_src>

<mosaic_0001>
module attributes {stable_mosaic.version = 11 : i64} {
  func.func @_pcnn_kernel(%arg0: i32, %arg1: memref<8x28x84xf32, #tpu.memory_space<vmem>>, %arg2: memref<5x84x144xf32, #tpu.memory_space<vmem>>, %arg3: memref<1x144xf32, #tpu.memory_space<vmem>>, %arg4: memref<5x72x128xf32, #tpu.memory_space<vmem>>, %arg5: memref<1x128xf32, #tpu.memory_space<vmem>>, %arg6: memref<256x128xf32, #tpu.memory_space<vmem>>, %arg7: memref<1x128xf32, #tpu.memory_space<vmem>>, %arg8: memref<8x128xf32, #tpu.memory_space<vmem>>, %arg9: memref<8x12x72xf32, #tpu.memory_space<vmem>>) attributes {dimension_semantics = [#tpu.dimension_semantics<parallel>], iteration_bounds = array<i64: 2>, scalar_prefetch = 0 : i64, scratch_operands = 1 : i64, tpu.core_type = #tpu.core_type<tc>, window_params = [{transform_indices = @transform_0, window_bounds = array<i64: 8, 28, 84>}, {pipeline_mode = #tpu.pipeline_mode<synchronous>, transform_indices = @transform_1, window_bounds = array<i64: 5, 84, 144>}, {pipeline_mode = #tpu.pipeline_mode<synchronous>, transform_indices = @transform_2, window_bounds = array<i64: 1, 144>}, {pipeline_mode = #tpu.pipeline_mode<synchronous>, transform_indices = @transform_3, window_bounds = array<i64: 5, 72, 128>}, {pipeline_mode = #tpu.pipeline_mode<synchronous>, transform_indices = @transform_4, window_bounds = array<i64: 1, 128>}, {pipeline_mode = #tpu.pipeline_mode<synchronous>, transform_indices = @transform_5, window_bounds = array<i64: 256, 128>}, {pipeline_mode = #tpu.pipeline_mode<synchronous>, transform_indices = @transform_6, window_bounds = array<i64: 1, 128>}, {transform_indices = @transform_7, window_bounds = array<i64: 8, 128>}]} {
    %c0 = arith.constant 0 : index
    %c0_0 = arith.constant 0 : index
    %c0_1 = arith.constant 0 : index
    %0 = vector.load %arg1[%c0, %c0_0, %c0_1] : memref<8x28x84xf32, #tpu.memory_space<vmem>>, vector<8x28x84xf32>
    %1 = vector.extract_strided_slice %0 {offsets = [0, 0, 0], sizes = [8, 24, 84], strides = [1, 1, 1]} : vector<8x28x84xf32> to vector<8x24x84xf32>
    %2 = vector.shape_cast %1 : vector<8x24x84xf32> to vector<192x84xf32>
    %c0_2 = arith.constant 0 : index
    %c0_3 = arith.constant 0 : index
    %c0_4 = arith.constant 0 : index
    %3 = vector.load %arg2[%c0_2, %c0_3, %c0_4] : memref<5x84x144xf32, #tpu.memory_space<vmem>>, vector<1x84x144xf32>
    %4 = vector.shape_cast %3 : vector<1x84x144xf32> to vector<84x144xf32>
    %cst = arith.constant dense<0.000000e+00> : vector<192x144xf32>
    %5 = tpu.matmul %2, %4, %cst {dimension_numbers = #tpu.dot_dimension_numbers<[1], [0], [0], [1], [0, 0, 1, 1], [], []>} : vector<192x84xf32>, vector<84x144xf32>, vector<192x144xf32> -> vector<192x144xf32>
    %6 = vector.extract_strided_slice %0 {offsets = [0, 1, 0], sizes = [8, 24, 84], strides = [1, 1, 1]} : vector<8x28x84xf32> to vector<8x24x84xf32>
    %7 = vector.shape_cast %6 : vector<8x24x84xf32> to vector<192x84xf32>
    %c1 = arith.constant 1 : index
    %c0_5 = arith.constant 0 : index
    %c0_6 = arith.constant 0 : index
    %8 = vector.load %arg2[%c1, %c0_5, %c0_6] : memref<5x84x144xf32, #tpu.memory_space<vmem>>, vector<1x84x144xf32>
    %9 = vector.shape_cast %8 : vector<1x84x144xf32> to vector<84x144xf32>
    %cst_7 = arith.constant dense<0.000000e+00> : vector<192x144xf32>
    %10 = tpu.matmul %7, %9, %cst_7 {dimension_numbers = #tpu.dot_dimension_numbers<[1], [0], [0], [1], [0, 0, 1, 1], [], []>} : vector<192x84xf32>, vector<84x144xf32>, vector<192x144xf32> -> vector<192x144xf32>
    %11 = arith.addf %5, %10 : vector<192x144xf32>
    %12 = vector.extract_strided_slice %0 {offsets = [0, 2, 0], sizes = [8, 24, 84], strides = [1, 1, 1]} : vector<8x28x84xf32> to vector<8x24x84xf32>
    %13 = vector.shape_cast %12 : vector<8x24x84xf32> to vector<192x84xf32>
    %c2 = arith.constant 2 : index
    %c0_8 = arith.constant 0 : index
    %c0_9 = arith.constant 0 : index
    %14 = vector.load %arg2[%c2, %c0_8, %c0_9] : memref<5x84x144xf32, #tpu.memory_space<vmem>>, vector<1x84x144xf32>
    %15 = vector.shape_cast %14 : vector<1x84x144xf32> to vector<84x144xf32>
    %cst_10 = arith.constant dense<0.000000e+00> : vector<192x144xf32>
    %16 = tpu.matmul %13, %15, %cst_10 {dimension_numbers = #tpu.dot_dimension_numbers<[1], [0], [0], [1], [0, 0, 1, 1], [], []>} : vector<192x84xf32>, vector<84x144xf32>, vector<192x144xf32> -> vector<192x144xf32>
    %17 = arith.addf %11, %16 : vector<192x144xf32>
    %18 = vector.extract_strided_slice %0 {offsets = [0, 3, 0], sizes = [8, 24, 84], strides = [1, 1, 1]} : vector<8x28x84xf32> to vector<8x24x84xf32>
    %19 = vector.shape_cast %18 : vector<8x24x84xf32> to vector<192x84xf32>
    %c3 = arith.constant 3 : index
    %c0_11 = arith.constant 0 : index
    %c0_12 = arith.constant 0 : index
    %20 = vector.load %arg2[%c3, %c0_11, %c0_12] : memref<5x84x144xf32, #tpu.memory_space<vmem>>, vector<1x84x144xf32>
    %21 = vector.shape_cast %20 : vector<1x84x144xf32> to vector<84x144xf32>
    %cst_13 = arith.constant dense<0.000000e+00> : vector<192x144xf32>
    %22 = tpu.matmul %19, %21, %cst_13 {dimension_numbers = #tpu.dot_dimension_numbers<[1], [0], [0], [1], [0, 0, 1, 1], [], []>} : vector<192x84xf32>, vector<84x144xf32>, vector<192x144xf32> -> vector<192x144xf32>
    %23 = arith.addf %17, %22 : vector<192x144xf32>
    %24 = vector.extract_strided_slice %0 {offsets = [0, 4, 0], sizes = [8, 24, 84], strides = [1, 1, 1]} : vector<8x28x84xf32> to vector<8x24x84xf32>
    %25 = vector.shape_cast %24 : vector<8x24x84xf32> to vector<192x84xf32>
    %c4 = arith.constant 4 : index
    %c0_14 = arith.constant 0 : index
    %c0_15 = arith.constant 0 : index
    %26 = vector.load %arg2[%c4, %c0_14, %c0_15] : memref<5x84x144xf32, #tpu.memory_space<vmem>>, vector<1x84x144xf32>
    %27 = vector.shape_cast %26 : vector<1x84x144xf32> to vector<84x144xf32>
    %cst_16 = arith.constant dense<0.000000e+00> : vector<192x144xf32>
    %28 = tpu.matmul %25, %27, %cst_16 {dimension_numbers = #tpu.dot_dimension_numbers<[1], [0], [0], [1], [0, 0, 1, 1], [], []>} : vector<192x84xf32>, vector<84x144xf32>, vector<192x144xf32> -> vector<192x144xf32>
    %29 = arith.addf %23, %28 : vector<192x144xf32>
    %c0_17 = arith.constant 0 : index
    %c0_18 = arith.constant 0 : index
    %30 = vector.load %arg3[%c0_17, %c0_18] : memref<1x144xf32, #tpu.memory_space<vmem>>, vector<1x144xf32>
    %31 = vector.broadcast %30 : vector<1x144xf32> to vector<192x144xf32>
    %32 = arith.addf %29, %31 : vector<192x144xf32>
    %cst_19 = arith.constant 0.000000e+00 : f32
    %33 = vector.broadcast %cst_19 : f32 to vector<192x144xf32>
    %34 = arith.maximumf %32, %33 : vector<192x144xf32>
    %35 = vector.shape_cast %34 : vector<192x144xf32> to vector<8x24x144xf32>
    %36 = vector.extract_strided_slice %35 {offsets = [0, 0, 0], sizes = [8, 24, 72], strides = [1, 1, 1]} : vector<8x24x144xf32> to vector<8x24x72xf32>
    %37 = vector.extract_strided_slice %35 {offsets = [0, 0, 72], sizes = [8, 24, 72], strides = [1, 1, 1]} : vector<8x24x144xf32> to vector<8x24x72xf32>
    %38 = arith.maximumf %36, %37 : vector<8x24x72xf32>
    %39 = vector.extract_strided_slice %38 {offsets = [0, 0, 0], sizes = [8, 1, 72], strides = [1, 1, 1]} : vector<8x24x72xf32> to vector<8x1x72xf32>
    %40 = vector.shape_cast %39 : vector<8x1x72xf32> to vector<8x72xf32>
    %41 = vector.extract_strided_slice %38 {offsets = [0, 1, 0], sizes = [8, 1, 72], strides = [1, 1, 1]} : vector<8x24x72xf32> to vector<8x1x72xf32>
    %42 = vector.shape_cast %41 : vector<8x1x72xf32> to vector<8x72xf32>
    %43 = arith.maximumf %40, %42 : vector<8x72xf32>
    %c0_20 = arith.constant 0 : index
    %c0_21 = arith.constant 0 : index
    %c0_22 = arith.constant 0 : index
    %44 = vector.load %arg9[%c0_20, %c0_21, %c0_22] : memref<8x12x72xf32, #tpu.memory_space<vmem>>, vector<8x1x72xf32>
    %45 = vector.shape_cast %44 : vector<8x1x72xf32> to vector<8x72xf32>
    %46 = vector.shape_cast %43 : vector<8x72xf32> to vector<8x1x72xf32>
    tpu.vector_store %arg9[%c0_20, %c0_21, %c0_22], %46 {strides = array<i32>} : memref<8x12x72xf32, #tpu.memory_space<vmem>>, vector<8x1x72xf32>,
    %47 = vector.extract_strided_slice %38 {offsets = [0, 2, 0], sizes = [8, 1, 72], strides = [1, 1, 1]} : vector<8x24x72xf32> to vector<8x1x72xf32>
    %48 = vector.shape_cast %47 : vector<8x1x72xf32> to vector<8x72xf32>
    %49 = vector.extract_strided_slice %38 {offsets = [0, 3, 0], sizes = [8, 1, 72], strides = [1, 1, 1]} : vector<8x24x72xf32> to vector<8x1x72xf32>
    %50 = vector.shape_cast %49 : vector<8x1x72xf32> to vector<8x72xf32>
    %51 = arith.maximumf %48, %50 : vector<8x72xf32>
    %c0_23 = arith.constant 0 : index
    %c1_24 = arith.constant 1 : index
    %c0_25 = arith.constant 0 : index
    %52 = vector.load %arg9[%c0_23, %c1_24, %c0_25] : memref<8x12x72xf32, #tpu.memory_space<vmem>>, vector<8x1x72xf32>
    %53 = vector.shape_cast %52 : vector<8x1x72xf32> to vector<8x72xf32>
    %54 = vector.shape_cast %51 : vector<8x72xf32> to vector<8x1x72xf32>
    tpu.vector_store %arg9[%c0_23, %c1_24, %c0_25], %54 {strides = array<i32>} : memref<8x12x72xf32, #tpu.memory_space<vmem>>, vector<8x1x72xf32>,
    %55 = vector.extract_strided_slice %38 {offsets = [0, 4, 0], sizes = [8, 1, 72], strides = [1, 1, 1]} : vector<8x24x72xf32> to vector<8x1x72xf32>
    %56 = vector.shape_cast %55 : vector<8x1x72xf32> to vector<8x72xf32>
    %57 = vector.extract_strided_slice %38 {offsets = [0, 5, 0], sizes = [8, 1, 72], strides = [1, 1, 1]} : vector<8x24x72xf32> to vector<8x1x72xf32>
    %58 = vector.shape_cast %57 : vector<8x1x72xf32> to vector<8x72xf32>
    %59 = arith.maximumf %56, %58 : vector<8x72xf32>
    %c0_26 = arith.constant 0 : index
    %c2_27 = arith.constant 2 : index
    %c0_28 = arith.constant 0 : index
    %60 = vector.load %arg9[%c0_26, %c2_27, %c0_28] : memref<8x12x72xf32, #tpu.memory_space<vmem>>, vector<8x1x72xf32>
    %61 = vector.shape_cast %60 : vector<8x1x72xf32> to vector<8x72xf32>
    %62 = vector.shape_cast %59 : vector<8x72xf32> to vector<8x1x72xf32>
    tpu.vector_store %arg9[%c0_26, %c2_27, %c0_28], %62 {strides = array<i32>} : memref<8x12x72xf32, #tpu.memory_space<vmem>>, vector<8x1x72xf32>,
    %63 = vector.extract_strided_slice %38 {offsets = [0, 6, 0], sizes = [8, 1, 72], strides = [1, 1, 1]} : vector<8x24x72xf32> to vector<8x1x72xf32>
    %64 = vector.shape_cast %63 : vector<8x1x72xf32> to vector<8x72xf32>
    %65 = vector.extract_strided_slice %38 {offsets = [0, 7, 0], sizes = [8, 1, 72], strides = [1, 1, 1]} : vector<8x24x72xf32> to vector<8x1x72xf32>
    %66 = vector.shape_cast %65 : vector<8x1x72xf32> to vector<8x72xf32>
    %67 = arith.maximumf %64, %66 : vector<8x72xf32>
    %c0_29 = arith.constant 0 : index
    %c3_30 = arith.constant 3 : index
    %c0_31 = arith.constant 0 : index
    %68 = vector.load %arg9[%c0_29, %c3_30, %c0_31] : memref<8x12x72xf32, #tpu.memory_space<vmem>>, vector<8x1x72xf32>
    %69 = vector.shape_cast %68 : vector<8x1x72xf32> to vector<8x72xf32>
    %70 = vector.shape_cast %67 : vector<8x72xf32> to vector<8x1x72xf32>
    tpu.vector_store %arg9[%c0_29, %c3_30, %c0_31], %70 {strides = array<i32>} : memref<8x12x72xf32, #tpu.memory_space<vmem>>, vector<8x1x72xf32>,
    %71 = vector.extract_strided_slice %38 {offsets = [0, 8, 0], sizes = [8, 1, 72], strides = [1, 1, 1]} : vector<8x24x72xf32> to vector<8x1x72xf32>
    %72 = vector.shape_cast %71 : vector<8x1x72xf32> to vector<8x72xf32>
    %73 = vector.extract_strided_slice %38 {offsets = [0, 9, 0], sizes = [8, 1, 72], strides = [1, 1, 1]} : vector<8x24x72xf32> to vector<8x1x72xf32>
    %74 = vector.shape_cast %73 : vector<8x1x72xf32> to vector<8x72xf32>
    %75 = arith.maximumf %72, %74 : vector<8x72xf32>
    %c0_32 = arith.constant 0 : index
    %c4_33 = arith.constant 4 : index
    %c0_34 = arith.constant 0 : index
    %76 = vector.load %arg9[%c0_32, %c4_33, %c0_34] : memref<8x12x72xf32, #tpu.memory_space<vmem>>, vector<8x1x72xf32>
    %77 = vector.shape_cast %76 : vector<8x1x72xf32> to vector<8x72xf32>
    %78 = vector.shape_cast %75 : vector<8x72xf32> to vector<8x1x72xf32>
    tpu.vector_store %arg9[%c0_32, %c4_33, %c0_34], %78 {strides = array<i32>} : memref<8x12x72xf32, #tpu.memory_space<vmem>>, vector<8x1x72xf32>,
    %79 = vector.extract_strided_slice %38 {offsets = [0, 10, 0], sizes = [8, 1, 72], strides = [1, 1, 1]} : vector<8x24x72xf32> to vector<8x1x72xf32>
    %80 = vector.shape_cast %79 : vector<8x1x72xf32> to vector<8x72xf32>
    %81 = vector.extract_strided_slice %38 {offsets = [0, 11, 0], sizes = [8, 1, 72], strides = [1, 1, 1]} : vector<8x24x72xf32> to vector<8x1x72xf32>
    %82 = vector.shape_cast %81 : vector<8x1x72xf32> to vector<8x72xf32>
    %83 = arith.maximumf %80, %82 : vector<8x72xf32>
    %c0_35 = arith.constant 0 : index
    %c5 = arith.constant 5 : index
    %c0_36 = arith.constant 0 : index
    %84 = vector.load %arg9[%c0_35, %c5, %c0_36] : memref<8x12x72xf32, #tpu.memory_space<vmem>>, vector<8x1x72xf32>
    %85 = vector.shape_cast %84 : vector<8x1x72xf32> to vector<8x72xf32>
    %86 = vector.shape_cast %83 : vector<8x72xf32> to vector<8x1x72xf32>
    tpu.vector_store %arg9[%c0_35, %c5, %c0_36], %86 {strides = array<i32>} : memref<8x12x72xf32, #tpu.memory_space<vmem>>, vector<8x1x72xf32>,
    %87 = vector.extract_strided_slice %38 {offsets = [0, 12, 0], sizes = [8, 1, 72], strides = [1, 1, 1]} : vector<8x24x72xf32> to vector<8x1x72xf32>
    %88 = vector.shape_cast %87 : vector<8x1x72xf32> to vector<8x72xf32>
    %89 = vector.extract_strided_slice %38 {offsets = [0, 13, 0], sizes = [8, 1, 72], strides = [1, 1, 1]} : vector<8x24x72xf32> to vector<8x1x72xf32>
    %90 = vector.shape_cast %89 : vector<8x1x72xf32> to vector<8x72xf32>
    %91 = arith.maximumf %88, %90 : vector<8x72xf32>
    %c0_37 = arith.constant 0 : index
    %c6 = arith.constant 6 : index
    %c0_38 = arith.constant 0 : index
    %92 = vector.load %arg9[%c0_37, %c6, %c0_38] : memref<8x12x72xf32, #tpu.memory_space<vmem>>, vector<8x1x72xf32>
    %93 = vector.shape_cast %92 : vector<8x1x72xf32> to vector<8x72xf32>
    %94 = vector.shape_cast %91 : vector<8x72xf32> to vector<8x1x72xf32>
    tpu.vector_store %arg9[%c0_37, %c6, %c0_38], %94 {strides = array<i32>} : memref<8x12x72xf32, #tpu.memory_space<vmem>>, vector<8x1x72xf32>,
    %95 = vector.extract_strided_slice %38 {offsets = [0, 14, 0], sizes = [8, 1, 72], strides = [1, 1, 1]} : vector<8x24x72xf32> to vector<8x1x72xf32>
    %96 = vector.shape_cast %95 : vector<8x1x72xf32> to vector<8x72xf32>
    %97 = vector.extract_strided_slice %38 {offsets = [0, 15, 0], sizes = [8, 1, 72], strides = [1, 1, 1]} : vector<8x24x72xf32> to vector<8x1x72xf32>
    %98 = vector.shape_cast %97 : vector<8x1x72xf32> to vector<8x72xf32>
    %99 = arith.maximumf %96, %98 : vector<8x72xf32>
    %c0_39 = arith.constant 0 : index
    %c7 = arith.constant 7 : index
    %c0_40 = arith.constant 0 : index
    %100 = vector.load %arg9[%c0_39, %c7, %c0_40] : memref<8x12x72xf32, #tpu.memory_space<vmem>>, vector<8x1x72xf32>
    %101 = vector.shape_cast %100 : vector<8x1x72xf32> to vector<8x72xf32>
    %102 = vector.shape_cast %99 : vector<8x72xf32> to vector<8x1x72xf32>
    tpu.vector_store %arg9[%c0_39, %c7, %c0_40], %102 {strides = array<i32>} : memref<8x12x72xf32, #tpu.memory_space<vmem>>, vector<8x1x72xf32>,
    %103 = vector.extract_strided_slice %38 {offsets = [0, 16, 0], sizes = [8, 1, 72], strides = [1, 1, 1]} : vector<8x24x72xf32> to vector<8x1x72xf32>
    %104 = vector.shape_cast %103 : vector<8x1x72xf32> to vector<8x72xf32>
    %105 = vector.extract_strided_slice %38 {offsets = [0, 17, 0], sizes = [8, 1, 72], strides = [1, 1, 1]} : vector<8x24x72xf32> to vector<8x1x72xf32>
    %106 = vector.shape_cast %105 : vector<8x1x72xf32> to vector<8x72xf32>
    %107 = arith.maximumf %104, %106 : vector<8x72xf32>
    %c0_41 = arith.constant 0 : index
    %c8 = arith.constant 8 : index
    %c0_42 = arith.constant 0 : index
    %108 = vector.load %arg9[%c0_41, %c8, %c0_42] : memref<8x12x72xf32, #tpu.memory_space<vmem>>, vector<8x1x72xf32>
    %109 = vector.shape_cast %108 : vector<8x1x72xf32> to vector<8x72xf32>
    %110 = vector.shape_cast %107 : vector<8x72xf32> to vector<8x1x72xf32>
    tpu.vector_store %arg9[%c0_41, %c8, %c0_42], %110 {strides = array<i32>} : memref<8x12x72xf32, #tpu.memory_space<vmem>>, vector<8x1x72xf32>,
    %111 = vector.extract_strided_slice %38 {offsets = [0, 18, 0], sizes = [8, 1, 72], strides = [1, 1, 1]} : vector<8x24x72xf32> to vector<8x1x72xf32>
    %112 = vector.shape_cast %111 : vector<8x1x72xf32> to vector<8x72xf32>
    %113 = vector.extract_strided_slice %38 {offsets = [0, 19, 0], sizes = [8, 1, 72], strides = [1, 1, 1]} : vector<8x24x72xf32> to vector<8x1x72xf32>
    %114 = vector.shape_cast %113 : vector<8x1x72xf32> to vector<8x72xf32>
    %115 = arith.maximumf %112, %114 : vector<8x72xf32>
    %c0_43 = arith.constant 0 : index
    %c9 = arith.constant 9 : index
    %c0_44 = arith.constant 0 : index
    %116 = vector.load %arg9[%c0_43, %c9, %c0_44] : memref<8x12x72xf32, #tpu.memory_space<vmem>>, vector<8x1x72xf32>
    %117 = vector.shape_cast %116 : vector<8x1x72xf32> to vector<8x72xf32>
    %118 = vector.shape_cast %115 : vector<8x72xf32> to vector<8x1x72xf32>
    tpu.vector_store %arg9[%c0_43, %c9, %c0_44], %118 {strides = array<i32>} : memref<8x12x72xf32, #tpu.memory_space<vmem>>, vector<8x1x72xf32>,
    %119 = vector.extract_strided_slice %38 {offsets = [0, 20, 0], sizes = [8, 1, 72], strides = [1, 1, 1]} : vector<8x24x72xf32> to vector<8x1x72xf32>
    %120 = vector.shape_cast %119 : vector<8x1x72xf32> to vector<8x72xf32>
    %121 = vector.extract_strided_slice %38 {offsets = [0, 21, 0], sizes = [8, 1, 72], strides = [1, 1, 1]} : vector<8x24x72xf32> to vector<8x1x72xf32>
    %122 = vector.shape_cast %121 : vector<8x1x72xf32> to vector<8x72xf32>
    %123 = arith.maximumf %120, %122 : vector<8x72xf32>
    %c0_45 = arith.constant 0 : index
    %c10 = arith.constant 10 : index
    %c0_46 = arith.constant 0 : index
    %124 = vector.load %arg9[%c0_45, %c10, %c0_46] : memref<8x12x72xf32, #tpu.memory_space<vmem>>, vector<8x1x72xf32>
    %125 = vector.shape_cast %124 : vector<8x1x72xf32> to vector<8x72xf32>
    %126 = vector.shape_cast %123 : vector<8x72xf32> to vector<8x1x72xf32>
    tpu.vector_store %arg9[%c0_45, %c10, %c0_46], %126 {strides = array<i32>} : memref<8x12x72xf32, #tpu.memory_space<vmem>>, vector<8x1x72xf32>,
    %127 = vector.extract_strided_slice %38 {offsets = [0, 22, 0], sizes = [8, 1, 72], strides = [1, 1, 1]} : vector<8x24x72xf32> to vector<8x1x72xf32>
    %128 = vector.shape_cast %127 : vector<8x1x72xf32> to vector<8x72xf32>
    %129 = vector.extract_strided_slice %38 {offsets = [0, 23, 0], sizes = [8, 1, 72], strides = [1, 1, 1]} : vector<8x24x72xf32> to vector<8x1x72xf32>
    %130 = vector.shape_cast %129 : vector<8x1x72xf32> to vector<8x72xf32>
    %131 = arith.maximumf %128, %130 : vector<8x72xf32>
    %c0_47 = arith.constant 0 : index
    %c11 = arith.constant 11 : index
    %c0_48 = arith.constant 0 : index
    %132 = vector.load %arg9[%c0_47, %c11, %c0_48] : memref<8x12x72xf32, #tpu.memory_space<vmem>>, vector<8x1x72xf32>
    %133 = vector.shape_cast %132 : vector<8x1x72xf32> to vector<8x72xf32>
    %134 = vector.shape_cast %131 : vector<8x72xf32> to vector<8x1x72xf32>
    tpu.vector_store %arg9[%c0_47, %c11, %c0_48], %134 {strides = array<i32>} : memref<8x12x72xf32, #tpu.memory_space<vmem>>, vector<8x1x72xf32>,
    %c0_49 = arith.constant 0 : index
    %c0_50 = arith.constant 0 : index
    %c0_51 = arith.constant 0 : index
    %135 = vector.load %arg9[%c0_49, %c0_50, %c0_51] : memref<8x12x72xf32, #tpu.memory_space<vmem>>, vector<8x8x72xf32>
    %136 = vector.shape_cast %135 : vector<8x8x72xf32> to vector<64x72xf32>
    %c0_52 = arith.constant 0 : index
    %c0_53 = arith.constant 0 : index
    %c0_54 = arith.constant 0 : index
    %137 = vector.load %arg4[%c0_52, %c0_53, %c0_54] : memref<5x72x128xf32, #tpu.memory_space<vmem>>, vector<1x72x128xf32>
    %138 = vector.shape_cast %137 : vector<1x72x128xf32> to vector<72x128xf32>
    %cst_55 = arith.constant dense<0.000000e+00> : vector<64x128xf32>
    %139 = tpu.matmul %136, %138, %cst_55 {dimension_numbers = #tpu.dot_dimension_numbers<[1], [0], [0], [1], [0, 0, 1, 1], [], []>} : vector<64x72xf32>, vector<72x128xf32>, vector<64x128xf32> -> vector<64x128xf32>
    %c0_56 = arith.constant 0 : index
    %c1_57 = arith.constant 1 : index
    %c0_58 = arith.constant 0 : index
    %140 = vector.load %arg9[%c0_56, %c1_57, %c0_58] : memref<8x12x72xf32, #tpu.memory_space<vmem>>, vector<8x8x72xf32>
    %141 = vector.shape_cast %140 : vector<8x8x72xf32> to vector<64x72xf32>
    %c1_59 = arith.constant 1 : index
    %c0_60 = arith.constant 0 : index
    %c0_61 = arith.constant 0 : index
    %142 = vector.load %arg4[%c1_59, %c0_60, %c0_61] : memref<5x72x128xf32, #tpu.memory_space<vmem>>, vector<1x72x128xf32>
    %143 = vector.shape_cast %142 : vector<1x72x128xf32> to vector<72x128xf32>
    %cst_62 = arith.constant dense<0.000000e+00> : vector<64x128xf32>
    %144 = tpu.matmul %141, %143, %cst_62 {dimension_numbers = #tpu.dot_dimension_numbers<[1], [0], [0], [1], [0, 0, 1, 1], [], []>} : vector<64x72xf32>, vector<72x128xf32>, vector<64x128xf32> -> vector<64x128xf32>
    %145 = arith.addf %139, %144 : vector<64x128xf32>
    %c0_63 = arith.constant 0 : index
    %c2_64 = arith.constant 2 : index
    %c0_65 = arith.constant 0 : index
    %146 = vector.load %arg9[%c0_63, %c2_64, %c0_65] : memref<8x12x72xf32, #tpu.memory_space<vmem>>, vector<8x8x72xf32>
    %147 = vector.shape_cast %146 : vector<8x8x72xf32> to vector<64x72xf32>
    %c2_66 = arith.constant 2 : index
    %c0_67 = arith.constant 0 : index
    %c0_68 = arith.constant 0 : index
    %148 = vector.load %arg4[%c2_66, %c0_67, %c0_68] : memref<5x72x128xf32, #tpu.memory_space<vmem>>, vector<1x72x128xf32>
    %149 = vector.shape_cast %148 : vector<1x72x128xf32> to vector<72x128xf32>
    %cst_69 = arith.constant dense<0.000000e+00> : vector<64x128xf32>
    %150 = tpu.matmul %147, %149, %cst_69 {dimension_numbers = #tpu.dot_dimension_numbers<[1], [0], [0], [1], [0, 0, 1, 1], [], []>} : vector<64x72xf32>, vector<72x128xf32>, vector<64x128xf32> -> vector<64x128xf32>
    %151 = arith.addf %145, %150 : vector<64x128xf32>
    %c0_70 = arith.constant 0 : index
    %c3_71 = arith.constant 3 : index
    %c0_72 = arith.constant 0 : index
    %152 = vector.load %arg9[%c0_70, %c3_71, %c0_72] : memref<8x12x72xf32, #tpu.memory_space<vmem>>, vector<8x8x72xf32>
    %153 = vector.shape_cast %152 : vector<8x8x72xf32> to vector<64x72xf32>
    %c3_73 = arith.constant 3 : index
    %c0_74 = arith.constant 0 : index
    %c0_75 = arith.constant 0 : index
    %154 = vector.load %arg4[%c3_73, %c0_74, %c0_75] : memref<5x72x128xf32, #tpu.memory_space<vmem>>, vector<1x72x128xf32>
    %155 = vector.shape_cast %154 : vector<1x72x128xf32> to vector<72x128xf32>
    %cst_76 = arith.constant dense<0.000000e+00> : vector<64x128xf32>
    %156 = tpu.matmul %153, %155, %cst_76 {dimension_numbers = #tpu.dot_dimension_numbers<[1], [0], [0], [1], [0, 0, 1, 1], [], []>} : vector<64x72xf32>, vector<72x128xf32>, vector<64x128xf32> -> vector<64x128xf32>
    %157 = arith.addf %151, %156 : vector<64x128xf32>
    %c0_77 = arith.constant 0 : index
    %c4_78 = arith.constant 4 : index
    %c0_79 = arith.constant 0 : index
    %158 = vector.load %arg9[%c0_77, %c4_78, %c0_79] : memref<8x12x72xf32, #tpu.memory_space<vmem>>, vector<8x8x72xf32>
    %159 = vector.shape_cast %158 : vector<8x8x72xf32> to vector<64x72xf32>
    %c4_80 = arith.constant 4 : index
    %c0_81 = arith.constant 0 : index
    %c0_82 = arith.constant 0 : index
    %160 = vector.load %arg4[%c4_80, %c0_81, %c0_82] : memref<5x72x128xf32, #tpu.memory_space<vmem>>, vector<1x72x128xf32>
    %161 = vector.shape_cast %160 : vector<1x72x128xf32> to vector<72x128xf32>
    %cst_83 = arith.constant dense<0.000000e+00> : vector<64x128xf32>
    %162 = tpu.matmul %159, %161, %cst_83 {dimension_numbers = #tpu.dot_dimension_numbers<[1], [0], [0], [1], [0, 0, 1, 1], [], []>} : vector<64x72xf32>, vector<72x128xf32>, vector<64x128xf32> -> vector<64x128xf32>
    %163 = arith.addf %157, %162 : vector<64x128xf32>
    %c0_84 = arith.constant 0 : index
    %c0_85 = arith.constant 0 : index
    %164 = vector.load %arg5[%c0_84, %c0_85] : memref<1x128xf32, #tpu.memory_space<vmem>>, vector<1x128xf32>
    %165 = vector.broadcast %164 : vector<1x128xf32> to vector<64x128xf32>
    %166 = arith.addf %163, %165 : vector<64x128xf32>
    %cst_86 = arith.constant 0.000000e+00 : f32
    %167 = vector.broadcast %cst_86 : f32 to vector<64x128xf32>
    %168 = arith.maximumf %166, %167 : vector<64x128xf32>
    %169 = vector.shape_cast %168 : vector<64x128xf32> to vector<8x8x128xf32>
    %170 = vector.extract_strided_slice %169 {offsets = [0, 0, 0], sizes = [8, 1, 128], strides = [1, 1, 1]} : vector<8x8x128xf32> to vector<8x1x128xf32>
    %171 = vector.shape_cast %170 : vector<8x1x128xf32> to vector<8x128xf32>
    %172 = vector.extract_strided_slice %169 {offsets = [0, 1, 0], sizes = [8, 1, 128], strides = [1, 1, 1]} : vector<8x8x128xf32> to vector<8x1x128xf32>
    %173 = vector.shape_cast %172 : vector<8x1x128xf32> to vector<8x128xf32>
    %174 = arith.maximumf %171, %173 : vector<8x128xf32>
    %175 = vector.extract_strided_slice %174 {offsets = [0, 0], sizes = [8, 64], strides = [1, 1]} : vector<8x128xf32> to vector<8x64xf32>
    %176 = vector.extract_strided_slice %174 {offsets = [0, 64], sizes = [8, 64], strides = [1, 1]} : vector<8x128xf32> to vector<8x64xf32>
    %177 = arith.maximumf %175, %176 : vector<8x64xf32>
    %c0_87 = arith.constant 0 : index
    %c0_88 = arith.constant 0 : index
    %178 = vector.load %arg6[%c0_87, %c0_88] : memref<256x128xf32, #tpu.memory_space<vmem>>, vector<64x128xf32>
    %cst_89 = arith.constant dense<0.000000e+00> : vector<8x128xf32>
    %179 = tpu.matmul %177, %178, %cst_89 {dimension_numbers = #tpu.dot_dimension_numbers<[1], [0], [0], [1], [0, 0, 1, 1], [], []>} : vector<8x64xf32>, vector<64x128xf32>, vector<8x128xf32> -> vector<8x128xf32>
    %180 = vector.extract_strided_slice %169 {offsets = [0, 2, 0], sizes = [8, 1, 128], strides = [1, 1, 1]} : vector<8x8x128xf32> to vector<8x1x128xf32>
    %181 = vector.shape_cast %180 : vector<8x1x128xf32> to vector<8x128xf32>
    %182 = vector.extract_strided_slice %169 {offsets = [0, 3, 0], sizes = [8, 1, 128], strides = [1, 1, 1]} : vector<8x8x128xf32> to vector<8x1x128xf32>
    %183 = vector.shape_cast %182 : vector<8x1x128xf32> to vector<8x128xf32>
    %184 = arith.maximumf %181, %183 : vector<8x128xf32>
    %185 = vector.extract_strided_slice %184 {offsets = [0, 0], sizes = [8, 64], strides = [1, 1]} : vector<8x128xf32> to vector<8x64xf32>
    %186 = vector.extract_strided_slice %184 {offsets = [0, 64], sizes = [8, 64], strides = [1, 1]} : vector<8x128xf32> to vector<8x64xf32>
    %187 = arith.maximumf %185, %186 : vector<8x64xf32>
    %c64 = arith.constant 64 : index
    %c0_90 = arith.constant 0 : index
    %188 = vector.load %arg6[%c64, %c0_90] : memref<256x128xf32, #tpu.memory_space<vmem>>, vector<64x128xf32>
    %cst_91 = arith.constant dense<0.000000e+00> : vector<8x128xf32>
    %189 = tpu.matmul %187, %188, %cst_91 {dimension_numbers = #tpu.dot_dimension_numbers<[1], [0], [0], [1], [0, 0, 1, 1], [], []>} : vector<8x64xf32>, vector<64x128xf32>, vector<8x128xf32> -> vector<8x128xf32>
    %190 = arith.addf %179, %189 : vector<8x128xf32>
    %191 = vector.extract_strided_slice %169 {offsets = [0, 4, 0], sizes = [8, 1, 128], strides = [1, 1, 1]} : vector<8x8x128xf32> to vector<8x1x128xf32>
    %192 = vector.shape_cast %191 : vector<8x1x128xf32> to vector<8x128xf32>
    %193 = vector.extract_strided_slice %169 {offsets = [0, 5, 0], sizes = [8, 1, 128], strides = [1, 1, 1]} : vector<8x8x128xf32> to vector<8x1x128xf32>
    %194 = vector.shape_cast %193 : vector<8x1x128xf32> to vector<8x128xf32>
    %195 = arith.maximumf %192, %194 : vector<8x128xf32>
    %196 = vector.extract_strided_slice %195 {offsets = [0, 0], sizes = [8, 64], strides = [1, 1]} : vector<8x128xf32> to vector<8x64xf32>
    %197 = vector.extract_strided_slice %195 {offsets = [0, 64], sizes = [8, 64], strides = [1, 1]} : vector<8x128xf32> to vector<8x64xf32>
    %198 = arith.maximumf %196, %197 : vector<8x64xf32>
    %c128 = arith.constant 128 : index
    %c0_92 = arith.constant 0 : index
    %199 = vector.load %arg6[%c128, %c0_92] : memref<256x128xf32, #tpu.memory_space<vmem>>, vector<64x128xf32>
    %cst_93 = arith.constant dense<0.000000e+00> : vector<8x128xf32>
    %200 = tpu.matmul %198, %199, %cst_93 {dimension_numbers = #tpu.dot_dimension_numbers<[1], [0], [0], [1], [0, 0, 1, 1], [], []>} : vector<8x64xf32>, vector<64x128xf32>, vector<8x128xf32> -> vector<8x128xf32>
    %201 = arith.addf %190, %200 : vector<8x128xf32>
    %202 = vector.extract_strided_slice %169 {offsets = [0, 6, 0], sizes = [8, 1, 128], strides = [1, 1, 1]} : vector<8x8x128xf32> to vector<8x1x128xf32>
    %203 = vector.shape_cast %202 : vector<8x1x128xf32> to vector<8x128xf32>
    %204 = vector.extract_strided_slice %169 {offsets = [0, 7, 0], sizes = [8, 1, 128], strides = [1, 1, 1]} : vector<8x8x128xf32> to vector<8x1x128xf32>
    %205 = vector.shape_cast %204 : vector<8x1x128xf32> to vector<8x128xf32>
    %206 = arith.maximumf %203, %205 : vector<8x128xf32>
    %207 = vector.extract_strided_slice %206 {offsets = [0, 0], sizes = [8, 64], strides = [1, 1]} : vector<8x128xf32> to vector<8x64xf32>
    %208 = vector.extract_strided_slice %206 {offsets = [0, 64], sizes = [8, 64], strides = [1, 1]} : vector<8x128xf32> to vector<8x64xf32>
    %209 = arith.maximumf %207, %208 : vector<8x64xf32>
    %c192 = arith.constant 192 : index
    %c0_94 = arith.constant 0 : index
    %210 = vector.load %arg6[%c192, %c0_94] : memref<256x128xf32, #tpu.memory_space<vmem>>, vector<64x128xf32>
    %cst_95 = arith.constant dense<0.000000e+00> : vector<8x128xf32>
    %211 = tpu.matmul %209, %210, %cst_95 {dimension_numbers = #tpu.dot_dimension_numbers<[1], [0], [0], [1], [0, 0, 1, 1], [], []>} : vector<8x64xf32>, vector<64x128xf32>, vector<8x128xf32> -> vector<8x128xf32>
    %212 = arith.addf %201, %211 : vector<8x128xf32>
    %c0_96 = arith.constant 0 : index
    %c0_97 = arith.constant 0 : index
    %213 = vector.load %arg7[%c0_96, %c0_97] : memref<1x128xf32, #tpu.memory_space<vmem>>, vector<1x128xf32>
    %214 = vector.broadcast %213 : vector<1x128xf32> to vector<8x128xf32>
    %215 = arith.addf %212, %214 : vector<8x128xf32>
    %cst_98 = arith.constant 0.000000e+00 : f32
    %216 = vector.broadcast %cst_98 : f32 to vector<8x128xf32>
    %217 = arith.maximumf %215, %216 : vector<8x128xf32>
    %c0_99 = arith.constant 0 : index
    %c0_100 = arith.constant 0 : index
    %218 = vector.load %arg8[%c0_99, %c0_100] : memref<8x128xf32, #tpu.memory_space<vmem>>, vector<8x128xf32>
    tpu.vector_store %arg8[%c0_99, %c0_100], %217 {strides = array<i32>} : memref<8x128xf32, #tpu.memory_space<vmem>>, vector<8x128xf32>,
    return
  }
  func.func @transform_0(%arg0: i32) -> (i32, i32, i32) {
    %c0_i32 = arith.constant 0 : i32
    %c0_i32_0 = arith.constant 0 : i32
    %c0_i32_1 = arith.constant 0 : i32
    return %arg0, %c0_i32, %c0_i32_0 : i32, i32, i32
  }
  func.func @transform_1(%arg0: i32) -> (i32, i32, i32) {
    %c0_i32 = arith.constant 0 : i32
    %c0_i32_0 = arith.constant 0 : i32
    %c0_i32_1 = arith.constant 0 : i32
    %c0_i32_2 = arith.constant 0 : i32
    return %c0_i32, %c0_i32_0, %c0_i32_1 : i32, i32, i32
  }
  func.func @transform_2(%arg0: i32) -> (i32, i32) {
    %c0_i32 = arith.constant 0 : i32
    %c0_i32_0 = arith.constant 0 : i32
    %c0_i32_1 = arith.constant 0 : i32
    return %c0_i32, %c0_i32_0 : i32, i32
  }
  func.func @transform_3(%arg0: i32) -> (i32, i32, i32) {
    %c0_i32 = arith.constant 0 : i32
    %c0_i32_0 = arith.constant 0 : i32
    %c0_i32_1 = arith.constant 0 : i32
    %c0_i32_2 = arith.constant 0 : i32
    return %c0_i32, %c0_i32_0, %c0_i32_1 : i32, i32, i32
  }
  func.func @transform_4(%arg0: i32) -> (i32, i32) {
    %c0_i32 = arith.constant 0 : i32
    %c0_i32_0 = arith.constant 0 : i32
    %c0_i32_1 = arith.constant 0 : i32
    return %c0_i32, %c0_i32_0 : i32, i32
  }
  func.func @transform_5(%arg0: i32) -> (i32, i32) {
    %c0_i32 = arith.constant 0 : i32
    %c0_i32_0 = arith.constant 0 : i32
    %c0_i32_1 = arith.constant 0 : i32
    return %c0_i32, %c0_i32_0 : i32, i32
  }
  func.func @transform_6(%arg0: i32) -> (i32, i32) {
    %c0_i32 = arith.constant 0 : i32
    %c0_i32_0 = arith.constant 0 : i32
    %c0_i32_1 = arith.constant 0 : i32
    return %c0_i32, %c0_i32_0 : i32, i32
  }
  func.func @transform_7(%arg0: i32) -> (i32, i32) {
    %c0_i32 = arith.constant 0 : i32
    %c0_i32_0 = arith.constant 0 : i32
    return %arg0, %c0_i32 : i32, i32
  }
}

</mosaic_0001>

<bundles_post_ra>
// kernel: tpu_custom_call.1
= control target key start
LH: loop header
LB: loop body
LE: loop exit
PB: predicated region body
PF: predicated region fallthrough
CT: control target
= control target key end

     0   :  { %12 = vsyncpa [#allocation4], 0  ;;  %s6154_s0 = inlined_call_operand.vmem [shape: f32[16,28,84], index: 0, kind: input, shape index: {}]   ;;  %s6155_s1 = inlined_call_operand.vmem [shape: f32[5,84,144], index: 1, kind: input, shape index: {}]   ;;  %s6156_s2 = inlined_call_operand.vmem [shape: f32[1,144], index: 2, kind: input, shape index: {}]   ;;  %s6157_s3 = inlined_call_operand.vmem [shape: f32[5,72,128], index: 3, kind: input, shape index: {}]   ;;  %s6158_s4 = inlined_call_operand.vmem [shape: f32[1,128], index: 4, kind: input, shape index: {}]   ;;  %s6159_s5 = inlined_call_operand.vmem [shape: f32[256,128], index: 5, kind: input, shape index: {}]   ;;  %s6160_s6 = inlined_call_operand.vmem [shape: f32[1,128], index: 6, kind: input, shape index: {}]   ;;  %s6161_s7 = inlined_call_operand.hbm [shape: f32[16,128], index: 7, kind: output, shape index: {}]  }
   0x1   :  { %14 = vsyncpa [#allocation4 + $0x1], 0  ;;  %s3927_s24 = smov 0   ;;  %s3929_s25 = smov 0  }
   0x2   :  { %s3931_s26 = smov 0   ;;  %s3933_s27 = smov 0  }
   0x3 LB: > { %s3314_s28 = sadd.s32 4294967295, %s3883_s27   ;;  %s3315_s29 = sadd.s32 4294967294, %s3883_s27   ;;  %s3883_s27 = sphi %s3933_s27, %s6281_s27   ;;  %s3879_s26 = sphi %s3931_s26, %s6280_s26   ;;  %s3875_s25 = sphi %s3929_s25, %s6279_s25   ;;  %s3871_s24 = sphi %s3927_s24, %s6278_s24  }
   0x4   : > { %s3950_s30 = sadd.s32 1, %s3883_s27   ;;  %s179_s8 = sadd.s32 1, %s3879_s26 }
   0x5   : > { %s176_s9 = ssub.s32 %s3883_s27, %s3950_s30  ;;  %p189_p0 = scmp.ne.s32.totalorder %s3879_s26, %s3875_s25 }
   0x6   : > { %p177_p1 = scmp.eq.s32.totalorder %s176_s9, 0  ;;  %p190_p2 = scmp.eq.s32.totalorder %s3314_s28, 1 }
   0x7   : > { %p195_p3 = scmp.ne.s32.totalorder %s3875_s25, %s3871_s24  ;;  %p196_p4 = scmp.eq.s32.totalorder %s3315_s29, 1 }
   0x8   : > { %s3960_s10 = scalar_select %p177_p1, %s3879_s26, %s179_s8  }
   0x9   : > { %p3962_p5 = por %p190_p2, %p189_p0  ;;  %p3966_p6 = por %p196_p4, %p195_p3 }
   0xa   : > { %p3318_p7 = scmp.ge.s32.totalorder %s3883_s27, 1  ;;  %p242_p8 = scmp.lt.s32.totalorder %s3883_s27, 3 }
   0xc   : > { %p243_p9 = pnand %p3318_p7, %p242_p8 }
   0xe   : > { %246 = sbr.rel (%p243_p9) target bundleno = 1435 (0x59b), region = 48 }
  0x13   : > { %v3343_v0 = vld [vmem:[%s6155_s1 + $0x150] sm:$0xf]  ;;  %vm497_vm0 = vcmask 1043456   ;;  %v3344_v1 = vld [vmem:[%s6155_s1 + $0x158] sm:$0xf]  ;;  %v3341_v2 = vld [vmem:[%s6155_s1 + $0x140] sm:$0xff] }
  0x14   : > { %3345 = vmatpush.msk.msra.mxu0 %vm497_vm0, %v3343_v0  ;;  %3370 = vmatpush.msk.msra.mxu1 %vm497_vm0, %v3344_v1  ;;  %v334_v3 = vld [vmem:[%s6155_s1 + $0xa0] sm:$0xf]  ;;  %v335_v4 = vld [vmem:[%s6155_s1 + $0xa8] sm:$0xf]  ;;  %s3992_s8 = sshll.u32 %s3314_s28, 3  ;;  %v332_v6 = vld [vmem:[%s6155_s1 + $0x90] sm:$0xff] }
  0x15   : > { %v3342_v5 = vld [vmem:[%s6155_s1 + $0x148] sm:$0xff]  ;;  %3395 = vmatpush.msk.msra.mxu2 %vm497_vm0, %v334_v3  ;;  %3420 = vmatpush.msk.msra.mxu3 %vm497_vm0, %v335_v4  ;;  %v333_v7 = vld [vmem:[%s6155_s1 + $0x98] sm:$0xff]  ;;  %v3339_v8 = vld [vmem:[%s6155_s1 + $0x130] sm:$0xff]  ;;  %p276_p10 = scmp.lt.s32.totalorder %s3992_s8, 15  ;;  %vm368_vm1 = vcmask 1046528   ;;  %vm448_vm2 = vcmask 687104  }
  0x16   : > { %510 = vmatpush.msra.mxu0 %v3341_v2  ;;  %599 = vmatpush.msra.mxu1 %v3342_v5  ;;  %v3340_v9 = vld [vmem:[%s6155_s1 + $0x138] sm:$0xff]  ;;  %v330_v10 = vld [vmem:[%s6155_s1 + $0x80] sm:$0xff]  ;;  %v331_v11 = vld [vmem:[%s6155_s1 + $0x88] sm:$0xff]  ;;  %vm914_vm3 = vcmask 1045504   ;;  %vm1274_vm4 = vcmask 1044480   ;;  %s3885_s16 = smov 56  }
  0x17   : > { %742 = vmatpush.msra.mxu2 %v332_v6  ;;  %831 = vmatpush.msra.mxu3 %v333_v7  ;;  %v3337_v12 = vld [vmem:[%s6155_s1 + $0x120] sm:$0xff]  ;;  %v3338_v13 = vld [vmem:[%s6155_s1 + $0x128] sm:$0xff]  ;;  %s4022_s14 = scalar_select %p276_p10, %s3992_s8, 15  ;;  %v328_v14 = vld [vmem:[%s6155_s1 + $0x70] sm:$0xff]  ;;  %vm2239_vm5 = vcmask 457728   ;;  %vm2344_vm6 = vcmask 581632  }
  0x18   : > { %511 = vmatpush.msra.mxu0 %v3339_v8  ;;  %600 = vmatpush.msra.mxu1 %v3340_v9  ;;  %v329_v15 = vld [vmem:[%s6155_s1 + $0x78] sm:$0xff]  ;;  %v3335_v16 = vld [vmem:[%s6155_s1 + $0x110] sm:$0xff]  ;;  %v326_v18 = vld [vmem:[%s6155_s1 + $0x60] sm:$0xff]  ;;  %vm2353_vm7 = vcmask 583682   ;;  %vm2362_vm8 = vcmask 585732   ;;  %vm2371_vm9 = vcmask 587782  }
  0x19   : > { %743 = vmatpush.msra.mxu2 %v330_v10  ;;  %832 = vmatpush.msra.mxu3 %v331_v11  ;;  %v3336_v17 = vld [vmem:[%s6155_s1 + $0x118] sm:$0xff]  ;;  %v327_v19 = vld [vmem:[%s6155_s1 + $0x68] sm:$0xff]  ;;  %v3333_v20 = vld [vmem:[%s6155_s1 + $0x100] sm:$0xff]  ;;  %s3745_s28 = sshll.u32 %s4022_s14, 5  ;;  %vm2543_vm10 = vcmask 588800   ;;  %vm3065_vm11 = vcmask 1041409   ;;  %s3251_s14 = scalar_lea.hbm %s6161_s7, %s3992_s8 }
  0x1a   : > { %512 = vmatpush.msra.mxu0 %v3337_v12  ;;  %601 = vmatpush.msra.mxu1 %v3338_v13  ;;  %v3334_v21 = vld [vmem:[%s6155_s1 + $0x108] sm:$0xff]  ;;  %v324_v22 = vld [vmem:[%s6155_s1 + $0x50] sm:$0xff]  ;;  %v325_v23 = vld [vmem:[%s6155_s1 + $0x58] sm:$0xff]  ;;  %s4070_s19 = scalar_lea.vmem %s6154_s0, %s3745_s28  ;;  %vm3067_vm12 = vcmask 1042434   ;;  %vm3070_vm13 = vcmask 1043459   ;;  %vm3073_vm14 = vcmask 1044484  }
  0x1b   : > { %744 = vmatpush.msra.mxu2 %v328_v14  ;;  %833 = vmatpush.msra.mxu3 %v329_v15  ;;  %v3331_v24 = vld [vmem:[%s6155_s1 + $0xf0] sm:$0xff]  ;;  %v3332_v25 = vld [vmem:[%s6155_s1 + $0xf8] sm:$0xff]  ;;  %v322_v26 = vld [vmem:[%s6155_s1 + $0x40] sm:$0xff]  ;;  %vm3076_vm15 = vcmask 1045509   ;;  %s272_s22 = sand.u32 1, %s3875_s25   ;;  %s3255_s17 = sshll.u32 %s3251_s14, 4  ;;  %s3256_s17 = int_to_ptr.hbm [resolvable:$true] %s3255_s17 }
  0x1c   : > { %513 = vmatpush.msra.mxu0 %v3335_v16  ;;  %602 = vmatpush.msra.mxu1 %v3336_v17  ;;  %v323_v27 = vld [vmem:[%s6155_s1 + $0x48] sm:$0xff]  ;;  %v3329_v28 = vld [vmem:[%s6155_s1 + $0xe0] sm:$0xff]  ;;  %v320_v30 = vld [vmem:[%s6155_s1 + $0x30] sm:$0xff]  ;;  %s3319_s23 = sshll.u32 %s272_s22, 3  ;;  %s3241_s18 = scalar_lea.sflag [#allocation4], %s272_s22 }
  0x1d   : > { %745 = vmatpush.msra.mxu2 %v326_v18  ;;  %834 = vmatpush.msra.mxu3 %v327_v19  ;;  %v3330_v29 = vld [vmem:[%s6155_s1 + $0xe8] sm:$0xff]  ;;  %v321_v31 = vld [vmem:[%s6155_s1 + $0x38] sm:$0xff]  ;;  %v3327_v32 = vld [vmem:[%s6155_s1 + $0xd0] sm:$0xff]  ;;  %s274_s13 = scalar_lea.vmem [#allocation3], %s3319_s23  ;;  %s3841_s29 = scalar_lea.hbm %s6161_s7, 16 }
  0x1e   : > { %514 = vmatpush.msra.mxu0 %v3333_v20  ;;  %603 = vmatpush.msra.mxu1 %v3334_v21  ;;  %v3328_v33 = vld [vmem:[%s6155_s1 + $0xd8] sm:$0xff]  ;;  %v4091_v34 = vld [vmem:[%s4070_s19] sm:$0xff]  ;;  %v319_v36 = vld [vmem:[%s6155_s1 + $0x28] sm:$0xff]  ;;  %s3253_s15 = sshll.u32 %s274_s13, 4  ;;  %s3254_s15 = int_to_ptr.vmem [resolvable:$true] %s3253_s15 }
  0x1f   : > { %746 = vmatpush.msra.mxu2 %v324_v22  ;;  %835 = vmatpush.msra.mxu3 %v325_v23  ;;  %v318_v35 = vld [vmem:[%s6155_s1 + $0x20] sm:$0xff]  ;;  %v4100_v37 = vld [vmem:[%s4070_s19 + $0x8] sm:$0xff]  ;;  %v369_v40 = vrot.slane %v4091_v34, 1  ;;  %v316_v42 = vld [vmem:[%s6155_s1 + $0x10] sm:$0xff] }
  0x20   : > { %515 = vmatpush.msra.mxu0 %v3331_v24  ;;  %604 = vmatpush.msra.mxu1 %v3332_v25  ;;  %v3325_v38 = vld [vmem:[%s6155_s1 + $0xc0] sm:$0xff]  ;;  %v3326_v39 = vld [vmem:[%s6155_s1 + $0xc8] sm:$0xff]  ;;  %v370_v41 = vrot.slane %v4100_v37, 1  ;;  %v317_v43 = vld [vmem:[%s6155_s1 + $0x18] sm:$0xff] }
  0x21   : > { %747 = vmatpush.msra.mxu2 %v322_v26  ;;  %836 = vmatpush.msra.mxu3 %v323_v27  ;;  %v3323_v44 = vld [vmem:[%s6155_s1 + $0xb0] sm:$0xff]  ;;  %v3324_v45 = vld [vmem:[%s6155_s1 + $0xb8] sm:$0xff]  ;;  %v314_v46 = vld [vmem:[%s6155_s1] sm:$0xff] }
  0x22   : > { %516 = vmatpush.msra.mxu0 %v3329_v28  ;;  %605 = vmatpush.msra.mxu1 %v3330_v29  ;;  %v315_v47 = vld [vmem:[%s6155_s1 + $0x8] sm:$0xff]  ;;  %v371_v48 = vsel %vm368_vm1, %v369_v40, %v370_v41  ;;  %v4130_v49 = vld [vmem:[%s4070_s19 + $0x10] sm:$0xff]  ;;  %v3465_v50 = vld [vmem:[%s6155_s1 + $0x200] sm:$0xf] }
  0x23   : > { %748 = vmatpush.msra.mxu2 %v320_v30  ;;  %837 = vmatpush.msra.mxu3 %v321_v31  ;;  %v3466_v51 = vld [vmem:[%s6155_s1 + $0x208] sm:$0xf]  ;;  %v372_v52 = vrot.slane %v4130_v49, 1  ;;  %v3463_v53 = vld [vmem:[%s6155_s1 + $0x1f0] sm:$0xff]  ;;  %v3464_v54 = vld [vmem:[%s6155_s1 + $0x1f8] sm:$0xff] }
  0x24   : > { %517 = vmatpush.msra.mxu0 %v3327_v32  ;;  %606 = vmatpush.msra.mxu1 %v3328_v33  ;;  %v4155_v56 = vld [vmem:[%s4070_s19 + $0x18] sm:$0xf]  ;;  %v3461_v58 = vld [vmem:[%s6155_s1 + $0x1e0] sm:$0xff]  ;;  %v4172_v61 = vld [vmem:[%s4070_s19 + $0x28] sm:$0xff] }
  0x25   : > { %749 = vmatpush.msra.mxu2 %v318_v35  ;;  %838 = vmatpush.msra.mxu3 %v319_v36  ;;  %v373_v55 = vsel %vm368_vm1, %v370_v41, %v372_v52  ;;  %v374_v57 = vrot.slane %v4155_v56, 1  ;;  %v4169_v60 = vld [vmem:[%s4070_s19 + $0x20] sm:$0xff]  ;;  %v377_v63 = vrot.slane %v4172_v61, 1  ;;  %v3462_v0 = vld [vmem:[%s6155_s1 + $0x1e8] sm:$0xff]  ;;  %v4187_v2 = vld [vmem:[%s4070_s19 + $0x30] sm:$0xff] }
  0x26   : > { %518 = vmatpush.msra.mxu0 %v3325_v38  ;;  %607 = vmatpush.msra.mxu1 %v3326_v39  ;;  %v376_v62 = vrot.slane %v4169_v60, 1  ;;  %v379_v3 = vrot.slane %v4187_v2, 1  ;;  %v3459_v4 = vld [vmem:[%s6155_s1 + $0x1d0] sm:$0xff]  ;;  %v4201_v6 = vld [vmem:[%s4070_s19 + $0x38] sm:$0xf]  ;;  %v4215_v10 = vld [vmem:[%s4070_s19 + $0x40] sm:$0xff] }
  0x27   : > { %750 = vmatpush.msra.mxu2 %v316_v42  ;;  %839 = vmatpush.msra.mxu3 %v317_v43  ;;  %v375_v59 = vsel %vm368_vm1, %v372_v52, %v374_v57  ;;  %v381_v7 = vrot.slane %v4201_v6, 1  ;;  %v3460_v8 = vld [vmem:[%s6155_s1 + $0x1d8] sm:$0xff]  ;;  %v4218_v11 = vld [vmem:[%s4070_s19 + $0x48] sm:$0xff]  ;;  %v383_v12 = vrot.slane %v4215_v10, 1  ;;  %v3457_v14 = vld [vmem:[%s6155_s1 + $0x1c0] sm:$0xff] }
  0x28   : > { %519 = vmatpush.msra.mxu0 %v3323_v44  ;;  %608 = vmatpush.msra.mxu1 %v3324_v45  ;;  %v378_v1 = vsel %vm368_vm1, %v376_v62, %v377_v63  ;;  %v380_v5 = vsel %vm368_vm1, %v377_v63, %v379_v3  ;;  %v384_v13 = vrot.slane %v4218_v11, 1  ;;  %v4233_v16 = vld [vmem:[%s4070_s19 + $0x50] sm:$0xff]  ;;  %v3458_v18 = vld [vmem:[%s6155_s1 + $0x1c8] sm:$0xff]  ;;  %v4247_v20 = vld [vmem:[%s4070_s19 + $0x58] sm:$0xf] }
  0x29   : > { %751 = vmatpush.msra.mxu2 %v314_v46  ;;  %840 = vmatpush.msra.mxu3 %v315_v47  ;;  %v382_v9 = vsel %vm368_vm1, %v379_v3, %v381_v7  ;;  %v386_v17 = vrot.slane %v4233_v16, 1  ;;  %v388_v21 = vrot.slane %v4247_v20, 1  ;;  %v3455_v22 = vld [vmem:[%s6155_s1 + $0x1b0] sm:$0xff]  ;;  %v4261_v24 = vld [vmem:[%s4070_s19 + $0x60] sm:$0xff]  ;;  %v4264_v25 = vld [vmem:[%s4070_s19 + $0x68] sm:$0xff] }
  0x2a   : > { %3346 = vmatmul.msk.f32.vlgmr.msra.gmra.mxu0 %vm448_vm2, %v371_v48  ;;  %3371 = vmatmul.msk.f32.vlgmr.msra.gmra.mxu1 %vm448_vm2, %v371_v48  ;;  %v385_v15 = vsel %vm368_vm1, %v383_v12, %v384_v13  ;;  %v390_v26 = vrot.slane %v4261_v24, 1  ;;  %v391_v27 = vrot.slane %v4264_v25, 1  ;;  %v3456_v28 = vld [vmem:[%s6155_s1 + $0x1b8] sm:$0xff]  ;;  %v4279_v30 = vld [vmem:[%s4070_s19 + $0x70] sm:$0xff]  ;;  %v3453_v32 = vld [vmem:[%s6155_s1 + $0x1a0] sm:$0xff] }
  0x2b   : > { %3396 = vmatmul.msk.f32.vlgmr.msra.gmra.mxu2 %vm448_vm2, %v4091_v34  ;;  %3421 = vmatmul.msk.f32.vlgmr.msra.gmra.mxu3 %vm448_vm2, %v4091_v34  ;;  %v387_v19 = vsel %vm368_vm1, %v384_v13, %v386_v17  ;;  %v389_v23 = vsel %vm368_vm1, %v386_v17, %v388_v21  ;;  %v393_v31 = vrot.slane %v4279_v30, 1  ;;  %v4293_v35 = vld [vmem:[%s4070_s19 + $0x78] sm:$0xf]  ;;  %v3454_v38 = vld [vmem:[%s6155_s1 + $0x1a8] sm:$0xff]  ;;  %v4307_v40 = vld [vmem:[%s4070_s19 + $0x80] sm:$0xff] }
  0x2c   : > { %3467 = vmatpush.msk.msrb.mxu0 %vm497_vm0, %v3465_v50  ;;  %3492 = vmatpush.msk.msrb.mxu1 %vm497_vm0, %v3466_v51  ;;  %v392_v29 = vsel %vm368_vm1, %v390_v26, %v391_v27  ;;  %v395_v36 = vrot.slane %v4293_v35, 1  ;;  %v4310_v41 = vld [vmem:[%s4070_s19 + $0x88] sm:$0xff]  ;;  %v397_v42 = vrot.slane %v4307_v40, 1  ;;  %v4322_v45 = vld [vmem:[%s4070_s19 + $0x90] sm:$0xff]  ;;  %v4336_v50 = vld [vmem:[%s4070_s19 + $0x98] sm:$0xf] }
  0x2d   : > { %v394_v33 = vsel %vm368_vm1, %v391_v27, %v393_v31  ;;  %v398_v43 = vrot.slane %v4310_v41, 1  ;;  %v400_v46 = vrot.slane %v4322_v45, 1  ;;  %v3451_v47 = vld [vmem:[%s6155_s1 + $0x190] sm:$0xff]  ;;  %v402_v51 = vrot.slane %v4336_v50, 1  ;;  %v3452_v52 = vld [vmem:[%s6155_s1 + $0x198] sm:$0xff]  ;;  %v4400_v21 = vld [vmem:[%s4070_s19 + $0xc0] sm:$0xff] }
  0x2e   : > { %1054 = vmatpush.msrb.mxu0 %v3463_v53  ;;  %1143 = vmatpush.msrb.mxu1 %v3464_v54  ;;  %v396_v39 = vsel %vm368_vm1, %v393_v31, %v395_v36  ;;  %v4350_v54 = vld [vmem:[%s4070_s19 + $0xa0] sm:$0xff]  ;;  %v4368_v63 = vld [vmem:[%s4070_s19 + $0xb0] sm:$0xff]  ;;  %v4382_v7 = vld [vmem:[%s4070_s19 + $0xb8] sm:$0xf] }
  0x2f   : > { %v399_v44 = vsel %vm368_vm1, %v397_v42, %v398_v43  ;;  %v401_v48 = vsel %vm368_vm1, %v398_v43, %v400_v46  ;;  %v403_v53 = vsel %vm368_vm1, %v400_v46, %v402_v51  ;;  %v404_v57 = vrot.slane %v4350_v54, 1  ;;  %v3537_v27 = vld [vmem:[%s6155_s1 + $0x2b0] sm:$0xf]  ;;  %v3448_v42 = vld [vmem:[%s6155_s1 + $0x178] sm:$0xff]  ;;  %v3535_v43 = vld [vmem:[%s6155_s1 + $0x2a0] sm:$0xff] }
  0x30   : > { %1055 = vmatpush.msrb.mxu0 %v3461_v58  ;;  %1144 = vmatpush.msrb.mxu1 %v3462_v0  ;;  %v407_v0 = vrot.slane %v4368_v63, 1  ;;  %v4436_v46 = vld [vmem:[%s4070_s19 + $0xd0] sm:$0xff] }
  0x31   : > { %3539 = vmatpush.msk.msrb.mxu2 %vm497_vm0, %v3537_v27  ;;  %v414_v51 = vrot.slane %v4436_v46, 1 }
  0x32   : > { %3347 = vmatmul.msk.f32.gmra.mxu0 %vm448_vm2, %v373_v55  ;;  %3372 = vmatmul.msk.f32.gmra.mxu1 %vm448_vm2, %v373_v55  ;;  %v4353_v55 = vld [vmem:[%s4070_s19 + $0xa8] sm:$0xff] }
  0x33   : > { %3397 = vmatmul.msk.f32.gmra.mxu2 %vm448_vm2, %v4100_v37  ;;  %3422 = vmatmul.msk.f32.gmra.mxu3 %vm448_vm2, %v4100_v37  ;;  %v405_v58 = vrot.slane %v4353_v55, 1 }
  0x34   : > { %1056 = vmatpush.msrb.mxu0 %v3459_v4  ;;  %1145 = vmatpush.msrb.mxu1 %v3460_v8  ;;  %v409_v8 = vrot.slane %v4382_v7, 1 }
  0x35   : > { %v406_v62 = vsel %vm368_vm1, %v404_v57, %v405_v58  ;;  %1414 = vmatpush.msrb.mxu2 %v3535_v43  ;;  %v3529_v57 = vld [vmem:[%s6155_s1 + $0x270] sm:$0xff]  ;;  %v4508_v43 = vld [vmem:[%s4070_s19 + $0xe0] sm:$0xff] }
  0x36   : > { %1057 = vmatpush.msrb.mxu0 %v3457_v14  ;;  %1146 = vmatpush.msrb.mxu1 %v3458_v18  ;;  %v410_v18 = vsel %vm368_vm1, %v407_v0, %v409_v8  ;;  %v3445_v8 = vld [vmem:[%s6155_s1 + $0x160] sm:$0xff] }
  0x38   : > { %1058 = vmatpush.msrb.mxu0 %v3455_v22  ;;  %1147 = vmatpush.msrb.mxu1 %v3456_v28  ;;  %v4403_v22 = vld [vmem:[%s4070_s19 + $0xc8] sm:$0xff]  ;;  %v3538_v28 = vld [vmem:[%s6155_s1 + $0x2b8] sm:$0xf] }
  0x39   : > { %v412_v26 = vrot.slane %v4403_v22, 1  ;;  %3564 = vmatpush.msk.msrb.mxu3 %vm497_vm0, %v3538_v28 }
  0x3a   : > { %3348 = vmatmul.msk.f32.gmra.mxu0 %vm448_vm2, %v375_v59  ;;  %3373 = vmatmul.msk.f32.gmra.mxu1 %vm448_vm2, %v375_v59  ;;  %v3449_v59 = vld [vmem:[%s6155_s1 + $0x180] sm:$0xff] }
  0x3b   : > { %3398 = vmatmul.msk.f32.gmra.mxu2 %vm448_vm2, %v4130_v49  ;;  %3423 = vmatmul.msk.f32.gmra.mxu3 %vm448_vm2, %v4130_v49 }
  0x3c   : > { %1059 = vmatpush.msrb.mxu0 %v3453_v32  ;;  %1148 = vmatpush.msrb.mxu1 %v3454_v38 }
  0x3e   : > { %1060 = vmatpush.msrb.mxu0 %v3451_v47  ;;  %1149 = vmatpush.msrb.mxu1 %v3452_v52  ;;  %v3533_v47 = vld [vmem:[%s6155_s1 + $0x290] sm:$0xff]  ;;  %v3531_v52 = vld [vmem:[%s6155_s1 + $0x280] sm:$0xff] }
  0x3f   : > { %1415 = vmatpush.msrb.mxu2 %v3533_v47  ;;  %v3521_v47 = vld [vmem:[%s6155_s1 + $0x230] sm:$0xff] }
  0x40   : > { %1061 = vmatpush.msrb.mxu0 %v3449_v59 }
  0x41   : > { %1416 = vmatpush.msrb.mxu2 %v3531_v52 }
  0x42   : > { %3349 = vmatmul.msk.f32.gmra.mxu0 %vm448_vm2, %v378_v1  ;;  %3374 = vmatmul.msk.f32.gmra.mxu1 %vm448_vm2, %v378_v1  ;;  %v3450_v1 = vld [vmem:[%s6155_s1 + $0x188] sm:$0xff] }
  0x43   : > { %3399 = vmatmul.msk.f32.gmra.mxu2 %vm448_vm2, %v4169_v60  ;;  %3424 = vmatmul.msk.f32.gmra.mxu3 %vm448_vm2, %v4169_v60 }
  0x44   : > { %1150 = vmatpush.msrb.mxu1 %v3450_v1  ;;  %1417 = vmatpush.msrb.mxu2 %v3529_v57  ;;  %v3520_v57 = vld [vmem:[%s6155_s1 + $0x228] sm:$0xff] }
  0x46   : > { %1151 = vmatpush.msrb.mxu1 %v3448_v42  ;;  %v3446_v42 = vld [vmem:[%s6155_s1 + $0x168] sm:$0xff] }
  0x48   : > { %1152 = vmatpush.msrb.mxu1 %v3446_v42  ;;  %v3610_v42 = vld [vmem:[%s6155_s1 + $0x368] sm:$0xf] }
  0x4a   : > { %3350 = vmatmul.msk.f32.gmra.mxu0 %vm448_vm2, %v380_v5  ;;  %3375 = vmatmul.msk.f32.gmra.mxu1 %vm448_vm2, %v380_v5  ;;  %v408_v5 = vsel %vm368_vm1, %v405_v58, %v407_v0  ;;  %v3530_v58 = vld [vmem:[%s6155_s1 + $0x278] sm:$0xff] }
  0x4b   : > { %3400 = vmatmul.msk.f32.gmra.mxu2 %vm448_vm2, %v4172_v61  ;;  %3425 = vmatmul.msk.f32.gmra.mxu3 %vm448_vm2, %v4172_v61 }
  0x4c   : > { %3636 = vmatpush.msk.msra.mxu1 %vm497_vm0, %v3610_v42 }
  0x52   : > { %3351 = vmatmul.msk.f32.gmra.mxu0 %vm448_vm2, %v382_v9  ;;  %3376 = vmatmul.msk.f32.gmra.mxu1 %vm448_vm2, %v382_v9 }
  0x53   : > { %3401 = vmatmul.msk.f32.gmra.mxu2 %vm448_vm2, %v4187_v2  ;;  %3426 = vmatmul.msk.f32.gmra.mxu3 %vm448_vm2, %v4187_v2 }
  0x5a   : > { %3352 = vmatmul.msk.f32.gmra.mxu0 %vm448_vm2, %v385_v15  ;;  %3377 = vmatmul.msk.f32.gmra.mxu1 %vm448_vm2, %v385_v15 }
  0x5b   : > { %3402 = vmatmul.msk.f32.gmra.mxu2 %vm448_vm2, %v4215_v10  ;;  %3427 = vmatmul.msk.f32.gmra.mxu3 %vm448_vm2, %v4215_v10 }
  0x62   : > { %3353 = vmatmul.msk.f32.gmra.mxu0 %vm448_vm2, %v387_v19  ;;  %3378 = vmatmul.msk.f32.gmra.mxu1 %vm448_vm2, %v387_v19  ;;  %v3447_v19 = vld [vmem:[%s6155_s1 + $0x170] sm:$0xff] }
  0x63   : > { %3403 = vmatmul.msk.f32.gmra.mxu2 %vm448_vm2, %v4218_v11  ;;  %3428 = vmatmul.msk.f32.gmra.mxu3 %vm448_vm2, %v4218_v11 }
  0x64   : > { %1062 = vmatpush.msrb.mxu0 %v3447_v19  ;;  %v3526_v19 = vld [vmem:[%s6155_s1 + $0x258] sm:$0xff] }
  0x66   : > { %1063 = vmatpush.msrb.mxu0 %v3445_v8 }
  0x6a   : > { %3354 = vmatmul.msk.f32.gmra.mxu0 %vm448_vm2, %v389_v23  ;;  %3379 = vmatmul.msk.f32.gmra.mxu1 %vm448_vm2, %v389_v23  ;;  %v411_v23 = vrot.slane %v4400_v21, 1 }
  0x6b   : > { %3404 = vmatmul.msk.f32.gmra.mxu2 %vm448_vm2, %v4233_v16  ;;  %3429 = vmatmul.msk.f32.gmra.mxu3 %vm448_vm2, %v4233_v16 }
  0x72   : > { %3355 = vmatmul.msk.f32.gmra.mxu0 %vm448_vm2, %v392_v29  ;;  %3380 = vmatmul.msk.f32.gmra.mxu1 %vm448_vm2, %v392_v29 }
  0x73   : > { %3405 = vmatmul.msk.f32.gmra.mxu2 %vm448_vm2, %v4261_v24  ;;  %3430 = vmatmul.msk.f32.gmra.mxu3 %vm448_vm2, %v4261_v24 }
  0x7a   : > { %3356 = vmatmul.msk.f32.gmra.mxu0 %vm448_vm2, %v394_v33  ;;  %3381 = vmatmul.msk.f32.gmra.mxu1 %vm448_vm2, %v394_v33 }
  0x7b   : > { %3406 = vmatmul.msk.f32.gmra.mxu2 %vm448_vm2, %v4264_v25  ;;  %3431 = vmatmul.msk.f32.gmra.mxu3 %vm448_vm2, %v4264_v25 }
  0x82   : > { %3357 = vmatmul.msk.f32.gmra.mxu0 %vm448_vm2, %v396_v39  ;;  %3382 = vmatmul.msk.f32.gmra.mxu1 %vm448_vm2, %v396_v39  ;;  %v413_v39 = vsel %vm368_vm1, %v411_v23, %v412_v26  ;;  %v3523_v23 = vld [vmem:[%s6155_s1 + $0x240] sm:$0xff] }
  0x83   : > { %3407 = vmatmul.msk.f32.gmra.mxu2 %vm448_vm2, %v4279_v30  ;;  %3432 = vmatmul.msk.f32.gmra.mxu3 %vm448_vm2, %v4279_v30 }
  0x8a   : > { %3358 = vmatmul.msk.f32.gmra.mxu0 %vm448_vm2, %v399_v44  ;;  %3383 = vmatmul.msk.f32.gmra.mxu1 %vm448_vm2, %v399_v44  ;;  %v3536_v44 = vld [vmem:[%s6155_s1 + $0x2a8] sm:$0xff] }
  0x8b   : > { %3408 = vmatmul.msk.f32.gmra.mxu2 %vm448_vm2, %v4307_v40  ;;  %3433 = vmatmul.msk.f32.gmra.mxu3 %vm448_vm2, %v4307_v40 }
  0x8c   : > { %1503 = vmatpush.msrb.mxu3 %v3536_v44  ;;  %v4511_v44 = vld [vmem:[%s4070_s19 + $0xe8] sm:$0xff] }
  0x8d   : > { %v419_v52 = vrot.slane %v4511_v44, 1 }
  0x92   : > { %3359 = vmatmul.msk.f32.gmra.mxu0 %vm448_vm2, %v401_v48  ;;  %3384 = vmatmul.msk.f32.gmra.mxu1 %vm448_vm2, %v401_v48  ;;  %v3534_v48 = vld [vmem:[%s6155_s1 + $0x298] sm:$0xff] }
  0x93   : > { %3409 = vmatmul.msk.f32.gmra.mxu2 %vm448_vm2, %v4310_v41  ;;  %3434 = vmatmul.msk.f32.gmra.mxu3 %vm448_vm2, %v4310_v41 }
  0x94   : > { %1504 = vmatpush.msrb.mxu3 %v3534_v48  ;;  %v3522_v48 = vld [vmem:[%s6155_s1 + $0x238] sm:$0xff] }
  0x9a   : > { %3360 = vmatmul.msk.f32.gmra.mxu0 %vm448_vm2, %v403_v53  ;;  %3385 = vmatmul.msk.f32.gmra.mxu1 %vm448_vm2, %v403_v53  ;;  %v3532_v53 = vld [vmem:[%s6155_s1 + $0x288] sm:$0xff] }
  0x9b   : > { %3410 = vmatmul.msk.f32.gmra.mxu2 %vm448_vm2, %v4322_v45  ;;  %3435 = vmatmul.msk.f32.gmra.mxu3 %vm448_vm2, %v4322_v45 }
  0x9c   : > { %1505 = vmatpush.msrb.mxu3 %v3532_v53  ;;  %v3519_v53 = vld [vmem:[%s6155_s1 + $0x220] sm:$0xff] }
  0x9e   : > { %1506 = vmatpush.msrb.mxu3 %v3530_v58  ;;  %v3517_v58 = vld [vmem:[%s6155_s1 + $0x210] sm:$0xff] }
  0xa2   : > { %3361 = vmatmul.msk.f32.gmra.mxu0 %vm448_vm2, %v406_v62  ;;  %3386 = vmatmul.msk.f32.gmra.mxu1 %vm448_vm2, %v406_v62 }
  0xa3   : > { %3411 = vmatmul.msk.f32.gmra.mxu2 %vm448_vm2, %v4350_v54  ;;  %3436 = vmatmul.msk.f32.gmra.mxu3 %vm448_vm2, %v4350_v54 }
  0xa7   : > { %v521_v3 = vpop.f32.mrf.mxu0  ;;  %v610_v4 = vpop.f32.mrf.mxu1 }
  0xaa   : > { %3362 = vmatmul.msk.f32.gmra.mxu0 %vm448_vm2, %v408_v5  ;;  %3387 = vmatmul.msk.f32.gmra.mxu1 %vm448_vm2, %v408_v5  ;;  %v415_v5 = vsel %vm368_vm1, %v412_v26, %v414_v51  ;;  %v3524_v26 = vld [vmem:[%s6155_s1 + $0x248] sm:$0xff] }
  0xab   : > { %3412 = vmatmul.msk.f32.gmra.mxu2 %vm448_vm2, %v4353_v55  ;;  %3437 = vmatmul.msk.f32.gmra.mxu3 %vm448_vm2, %v4353_v55 }
  0xae   : > { %v753_v9 = vpop.f32.mrf.mxu2  ;;  %v842_v12 = vpop.f32.mrf.mxu3 }
  0xaf   : > { %v4391_v13 = vadd.f32 %v753_v9, %v521_v3  ;;  %v4393_v14 = vadd.f32 %v842_v12, %v610_v4  ;;  %v524_v15 = vpop.f32.mrf.mxu0  ;;  %v613_v17 = vpop.f32.mrf.mxu1  ;;  %v4472_v9 = vld [vmem:[%s4070_s19 + $0xd8] sm:$0xf]  ;;  %v3527_v12 = vld [vmem:[%s6155_s1 + $0x260] sm:$0xff] }
  0xb0   : > { %1418 = vmatpush.msrb.mxu2 %v3527_v12 }
  0xb2   : > { %3363 = vmatmul.msk.f32.gmra.mxu0 %vm448_vm2, %v410_v18  ;;  %3388 = vmatmul.msk.f32.gmra.mxu1 %vm448_vm2, %v410_v18  ;;  %v3525_v18 = vld [vmem:[%s6155_s1 + $0x250] sm:$0xff] }
  0xb3   : > { %3413 = vmatmul.msk.f32.gmra.mxu2 %vm448_vm2, %v4368_v63  ;;  %3438 = vmatmul.msk.f32.gmra.mxu3 %vm448_vm2, %v4368_v63 }
  0xb4   : > { %1419 = vmatpush.msrb.mxu2 %v3525_v18  ;;  %v4548_v18 = vld [vmem:[%s4070_s19 + $0xf0] sm:$0xff] }
  0xb6   : > { %v756_v29 = vpop.f32.mrf.mxu2  ;;  %v845_v31 = vpop.f32.mrf.mxu3  ;;  %1420 = vmatpush.msrb.mxu2 %v3523_v23 }
  0xb7   : > { %v4421_v32 = vadd.f32 %v756_v29, %v524_v15  ;;  %v4423_v33 = vadd.f32 %v845_v31, %v613_v17  ;;  %v527_v36 = vpop.f32.mrf.mxu0  ;;  %v616_v38 = vpop.f32.mrf.mxu1  ;;  %v3528_v15 = vld [vmem:[%s6155_s1 + $0x268] sm:$0xff]  ;;  %v416_v17 = vrot.slane %v4472_v9, 1 }
  0xb8   : > { %1507 = vmatpush.msrb.mxu3 %v3528_v15  ;;  %1421 = vmatpush.msrb.mxu2 %v3521_v47  ;;  %v4567_v47 = vld [vmem:[%s4070_s19 + $0xf8] sm:$0xf] }
  0xba   : > { %3364 = vmatmul.msk.f32.gmra.mxu0 %vm448_vm2, %v413_v39  ;;  %3389 = vmatmul.msk.f32.gmra.mxu1 %vm448_vm2, %v413_v39  ;;  %v417_v39 = vsel %vm368_vm1, %v414_v51, %v416_v17  ;;  %v418_v51 = vrot.slane %v4508_v43, 1  ;;  %v3609_v17 = vld [vmem:[%s6155_s1 + $0x360] sm:$0xf] }
  0xbb   : > { %3414 = vmatmul.msk.f32.gmra.mxu2 %vm448_vm2, %v4400_v21  ;;  %3439 = vmatmul.msk.f32.gmra.mxu3 %vm448_vm2, %v4400_v21 }
  0xbc   : > { %1508 = vmatpush.msrb.mxu3 %v3526_v19  ;;  %1422 = vmatpush.msrb.mxu2 %v3519_v53  ;;  %v420_v15 = vsel %vm368_vm1, %v418_v51, %v419_v52  ;;  %v421_v19 = vrot.slane %v4548_v18, 1 }
  0xbd   : > { %3611 = vmatpush.msk.msra.mxu0 %vm497_vm0, %v3609_v17  ;;  %v1276_v17 = vrot.slane %v4100_v37, 3 }
  0xbe   : > { %v759_v59 = vpop.f32.mrf.mxu2  ;;  %v848_v62 = vpop.f32.mrf.mxu3  ;;  %1509 = vmatpush.msrb.mxu3 %v3524_v26  ;;  %1423 = vmatpush.msrb.mxu2 %v3517_v58 }
  0xbf   : > { %v4463_v0 = vadd.f32 %v759_v59, %v527_v36  ;;  %v4465_v1 = vadd.f32 %v848_v62, %v616_v38  ;;  %v530_v3 = vpop.f32.mrf.mxu0  ;;  %v619_v4 = vpop.f32.mrf.mxu1  ;;  %v3518_v59 = vld [vmem:[%s6155_s1 + $0x218] sm:$0xff] }
  0xc0   : > { %1510 = vmatpush.msrb.mxu3 %v3522_v48  ;;  %v423_v48 = vrot.slane %v4567_v47, 1 }
  0xc2   : > { %3365 = vmatmul.msk.f32.gmra.mxu0 %vm448_vm2, %v415_v5  ;;  %3390 = vmatmul.msk.f32.gmra.mxu1 %vm448_vm2, %v415_v5 }
  0xc3   : > { %3415 = vmatmul.msk.f32.gmra.mxu2 %vm448_vm2, %v4403_v22  ;;  %3440 = vmatmul.msk.f32.gmra.mxu3 %vm448_vm2, %v4403_v22 }
  0xc4   : > { %1511 = vmatpush.msrb.mxu3 %v3520_v57 }
  0xc6   : > { %v762_v27 = vpop.f32.mrf.mxu2  ;;  %v851_v28 = vpop.f32.mrf.mxu3  ;;  %1512 = vmatpush.msrb.mxu3 %v3518_v59 }
  0xc7   : > { %v4499_v29 = vadd.f32 %v762_v27, %v530_v3  ;;  %v4501_v31 = vadd.f32 %v851_v28, %v619_v4  ;;  %v533_v36 = vpop.f32.mrf.mxu0  ;;  %v622_v38 = vpop.f32.mrf.mxu1 }
  0xca   : > { %3366 = vmatmul.msk.f32.gmra.mxu0 %vm448_vm2, %v417_v39  ;;  %3391 = vmatmul.msk.f32.gmra.mxu1 %vm448_vm2, %v417_v39  ;;  %v422_v39 = vsel %vm368_vm1, %v419_v52, %v421_v19 }
  0xcb   : > { %3416 = vmatmul.msk.f32.gmra.mxu2 %vm448_vm2, %v4436_v46  ;;  %3441 = vmatmul.msk.f32.gmra.mxu3 %vm448_vm2, %v4436_v46 }
  0xce   : > { %v765_v62 = vpop.f32.mrf.mxu2  ;;  %v854_v3 = vpop.f32.mrf.mxu3 }
  0xcf   : > { %v4539_v4 = vadd.f32 %v765_v62, %v533_v36  ;;  %v4541_v5 = vadd.f32 %v854_v3, %v622_v38  ;;  %v536_v8 = vpop.f32.mrf.mxu0  ;;  %v625_v12 = vpop.f32.mrf.mxu1  ;;  %v424_v62 = vsel %vm368_vm1, %v421_v19, %v423_v48  ;;  %v915_v3 = vrot.slane %v4091_v34, 2 }
  0xd0   : > { %vm3082_vm1 = vcmask 1047559  }
  0xd2   : > { %3367 = vmatmul.msk.f32.gmra.mxu0 %vm448_vm2, %v420_v15  ;;  %3392 = vmatmul.msk.f32.gmra.mxu1 %vm448_vm2, %v420_v15  ;;  %v1275_v15 = vrot.slane %v4091_v34, 3  ;;  %v918_v34 = vrot.slane %v4130_v49, 2 }
  0xd3   : > { %3417 = vmatmul.msk.f32.gmra.mxu2 %vm448_vm2, %v4508_v43  ;;  %3442 = vmatmul.msk.f32.gmra.mxu3 %vm448_vm2, %v4508_v43 }
  0xd4   : > { %v1277_v48 = vsel %vm1274_vm4, %v1275_v15, %v1276_v17 }
  0xd6   : > { %v768_v23 = vpop.f32.mrf.mxu2  ;;  %v857_v26 = vpop.f32.mrf.mxu3 }
  0xd7   : > { %v4558_v27 = vadd.f32 %v768_v23, %v536_v8  ;;  %v4560_v28 = vadd.f32 %v857_v26, %v625_v12  ;;  %v539_v36 = vpop.f32.mrf.mxu0  ;;  %v628_v38 = vpop.f32.mrf.mxu1  ;;  %v916_v8 = vrot.slane %v4100_v37, 2  ;;  %v3607_v12 = vld [vmem:[%s6155_s1 + $0x350] sm:$0xff]  ;;  %v3608_v37 = vld [vmem:[%s6155_s1 + $0x358] sm:$0xff] }
  0xd8   : > { %1773 = vmatpush.msra.mxu0 %v3607_v12  ;;  %1862 = vmatpush.msra.mxu1 %v3608_v37 }
  0xd9   : > { %v917_v42 = vsel %vm914_vm3, %v915_v3, %v916_v8  ;;  %v919_v15 = vsel %vm914_vm3, %v916_v8, %v918_v34 }
  0xda   : > { %3368 = vmatmul.msk.f32.gmra.mxu0 %vm448_vm2, %v422_v39  ;;  %3393 = vmatmul.msk.f32.gmra.mxu1 %vm448_vm2, %v422_v39 }
  0xdb   : > { %3418 = vmatmul.msk.f32.gmra.mxu2 %vm448_vm2, %v4511_v44  ;;  %3443 = vmatmul.msk.f32.gmra.mxu3 %vm448_vm2, %v4511_v44 }
  0xde   : > { %v771_v51 = vpop.f32.mrf.mxu2  ;;  %v860_v52 = vpop.f32.mrf.mxu3 }
  0xdf   : > { %v4577_v53 = vadd.f32 %v771_v51, %v539_v36  ;;  %v4579_v57 = vadd.f32 %v860_v52, %v628_v38  ;;  %v542_v58 = vpop.f32.mrf.mxu0  ;;  %v631_v59 = vpop.f32.mrf.mxu1  ;;  %v1278_v51 = vrot.slane %v4130_v49, 3  ;;  %v920_v49 = vrot.slane %v4155_v56, 2 }
  0xe2   : > { %3369 = vmatmul.msk.f32.gmra.mxu0 %vm448_vm2, %v424_v62  ;;  %3394 = vmatmul.msk.f32.gmra.mxu1 %vm448_vm2, %v424_v62 }
  0xe3   : > { %3419 = vmatmul.msk.f32.gmra.mxu2 %vm448_vm2, %v4548_v18  ;;  %3444 = vmatmul.msk.f32.gmra.mxu3 %vm448_vm2, %v4548_v18 }
  0xe6   : > { %v774_v19 = vpop.f32.mrf.mxu2  ;;  %v863_v23 = vpop.f32.mrf.mxu3 }
  0xe7   : > { %v4595_v26 = vadd.f32 %v774_v19, %v542_v58  ;;  %v4597_v36 = vadd.f32 %v863_v23, %v631_v59  ;;  %v545_v38 = vpop.f32.mrf.mxu0  ;;  %v634_v39 = vpop.f32.mrf.mxu1  ;;  %v1279_v19 = vsel %vm1274_vm4, %v1276_v17, %v1278_v51  ;;  %v3605_v23 = vld [vmem:[%s6155_s1 + $0x340] sm:$0xff] }
  0xe8   : > { %1774 = vmatpush.msra.mxu0 %v3605_v23 }
  0xea   : > { %3468 = vmatmul.msk.f32.vlgmr.msrb.gmra.mxu0 %vm448_vm2, %v917_v42  ;;  %3493 = vmatmul.msk.f32.vlgmr.msrb.gmra.mxu1 %vm448_vm2, %v917_v42 }
  0xeb   : > { %3540 = vmatmul.msk.f32.vlgmr.msrb.gmra.mxu2 %vm448_vm2, %v1277_v48  ;;  %3565 = vmatmul.msk.f32.vlgmr.msrb.gmra.mxu3 %vm448_vm2, %v1277_v48 }
  0xee   : > { %v777_v52 = vpop.f32.mrf.mxu2  ;;  %v866_v58 = vpop.f32.mrf.mxu3 }
  0xef   : > { %v4610_v59 = vadd.f32 %v777_v52, %v545_v38  ;;  %v4612_v62 = vadd.f32 %v866_v58, %v634_v39  ;;  %v548_v3 = vpop.f32.mrf.mxu0  ;;  %v637_v12 = vpop.f32.mrf.mxu1  ;;  %v1280_v38 = vrot.slane %v4155_v56, 3  ;;  %v921_v52 = vsel %vm914_vm3, %v918_v34, %v920_v49 }
  0xf0   : > { %v922_v56 = vrot.slane %v4169_v60, 2  ;;  %v1282_v34 = vrot.slane %v4169_v60, 3  ;;  %v925_v60 = vrot.slane %v4187_v2, 2 }
  0xf1   : > { %v1281_v58 = vsel %vm1274_vm4, %v1278_v51, %v1280_v38  ;;  %v1283_v51 = vrot.slane %v4172_v61, 3 }
  0xf2   : > { %3469 = vmatmul.msk.f32.gmra.mxu0 %vm448_vm2, %v919_v15  ;;  %3494 = vmatmul.msk.f32.gmra.mxu1 %vm448_vm2, %v919_v15 }
  0xf3   : > { %3541 = vmatmul.msk.f32.gmra.mxu2 %vm448_vm2, %v1279_v19  ;;  %3566 = vmatmul.msk.f32.gmra.mxu3 %vm448_vm2, %v1279_v19 }
  0xf6   : > { %v780_v8 = vpop.f32.mrf.mxu2  ;;  %v869_v39 = vpop.f32.mrf.mxu3 }
  0xf7   : > { %v4625_v17 = vadd.f32 %v780_v8, %v548_v3  ;;  %v4627_v42 = vadd.f32 %v869_v39, %v637_v12  ;;  %v551_v48 = vpop.f32.mrf.mxu0  ;;  %v640_v37 = vpop.f32.mrf.mxu1  ;;  %v923_v3 = vrot.slane %v4172_v61, 2  ;;  %v3606_v12 = vld [vmem:[%s6155_s1 + $0x348] sm:$0xff]  ;;  %v1285_v61 = vrot.slane %v4187_v2, 3 }
  0xf8   : > { %1863 = vmatpush.msra.mxu1 %v3606_v12  ;;  %v927_v2 = vrot.slane %v4201_v6, 2 }
  0xf9   : > { %v924_v39 = vsel %vm914_vm3, %v922_v56, %v923_v3 }
  0xfa   : > { %3470 = vmatmul.msk.f32.gmra.mxu0 %vm448_vm2, %v921_v52  ;;  %3495 = vmatmul.msk.f32.gmra.mxu1 %vm448_vm2, %v921_v52  ;;  %v1284_v52 = vsel %vm1274_vm4, %v1282_v34, %v1283_v51 }
  0xfb   : > { %3542 = vmatmul.msk.f32.gmra.mxu2 %vm448_vm2, %v1281_v58  ;;  %3567 = vmatmul.msk.f32.gmra.mxu3 %vm448_vm2, %v1281_v58 }
  0xfe   : > { %v783_v15 = vpop.f32.mrf.mxu2  ;;  %v872_v19 = vpop.f32.mrf.mxu3 }
  0xff   : > { %v4642_v49 = vadd.f32 %v783_v15, %v551_v48  ;;  %v4644_v23 = vadd.f32 %v872_v19, %v640_v37  ;;  %v554_v38 = vpop.f32.mrf.mxu0  ;;  %v643_v8 = vpop.f32.mrf.mxu1  ;;  %v926_v15 = vsel %vm914_vm3, %v923_v3, %v925_v60  ;;  %v3603_v19 = vld [vmem:[%s6155_s1 + $0x330] sm:$0xff] }
 0x100   : > { %1775 = vmatpush.msra.mxu0 %v3603_v19  ;;  %v928_v19 = vsel %vm914_vm3, %v925_v60, %v927_v2  ;;  %v1289_v60 = vrot.slane %v4215_v10, 3 }
 0x101   : > { %6164 = vst [vmem:[#allocation6_spill] sm:$0xff] %v4642_v49 }
 0x102   : > { %6165 = vst [vmem:[#allocation7_spill] sm:$0xff] %v4644_v23  ;;  %3471 = vmatmul.msk.f32.gmra.mxu0 %vm448_vm2, %v924_v39  ;;  %3496 = vmatmul.msk.f32.gmra.mxu1 %vm448_vm2, %v924_v39  ;;  %v1286_v39 = vsel %vm1274_vm4, %v1283_v51, %v1285_v61 }
 0x103   : > { %3543 = vmatmul.msk.f32.gmra.mxu2 %vm448_vm2, %v1284_v52  ;;  %3568 = vmatmul.msk.f32.gmra.mxu3 %vm448_vm2, %v1284_v52 }
 0x106   : > { %v786_v48 = vpop.f32.mrf.mxu2  ;;  %v875_v37 = vpop.f32.mrf.mxu3 }
 0x107   : > { %v4654_v58 = vadd.f32 %v786_v48, %v554_v38  ;;  %v4656_v12 = vadd.f32 %v875_v37, %v643_v8  ;;  %v557_v56 = vpop.f32.mrf.mxu0  ;;  %v646_v34 = vpop.f32.mrf.mxu1  ;;  %v1287_v38 = vrot.slane %v4201_v6, 3  ;;  %v929_v6 = vrot.slane %v4215_v10, 2 }
 0x108   : > { %v932_v10 = vrot.slane %v4233_v16, 2 }
 0x109   : > { %6166 = vst [vmem:[#allocation8_spill] sm:$0xff] %v4654_v58 }
 0x10a   : > { %6167 = vst [vmem:[#allocation9_spill] sm:$0xff] %v4656_v12  ;;  %3472 = vmatmul.msk.f32.gmra.mxu0 %vm448_vm2, %v926_v15  ;;  %3497 = vmatmul.msk.f32.gmra.mxu1 %vm448_vm2, %v926_v15  ;;  %v3604_v15 = vld [vmem:[%s6155_s1 + $0x338] sm:$0xff]  ;;  %v3809_v12 = vld [vmem:[%s4070_s19 + $0xa0] sm:$0xff] }
 0x10b   : > { %3544 = vmatmul.msk.f32.gmra.mxu2 %vm448_vm2, %v1286_v39  ;;  %3569 = vmatmul.msk.f32.gmra.mxu3 %vm448_vm2, %v1286_v39  ;;  %v1288_v39 = vsel %vm1274_vm4, %v1285_v61, %v1287_v38 }
 0x10c   : > { %1864 = vmatpush.msra.mxu1 %v3604_v15 }
 0x10e   : > { %v789_v3 = vpop.f32.mrf.mxu2  ;;  %v878_v8 = vpop.f32.mrf.mxu3 }
 0x10f   : > { %v4669_v52 = vadd.f32 %v789_v3, %v557_v56  ;;  %v4671_v48 = vadd.f32 %v878_v8, %v646_v34  ;;  %v560_v51 = vpop.f32.mrf.mxu0  ;;  %v649_v37 = vpop.f32.mrf.mxu1  ;;  %v930_v56 = vrot.slane %v4218_v11, 2  ;;  %v1290_v34 = vrot.slane %v4218_v11, 3 }
 0x110   : > { %v1292_v11 = vrot.slane %v4233_v16, 3  ;;  %v934_v16 = vrot.slane %v4247_v20, 2 }
 0x111   : > { %6168 = vst [vmem:[#allocation10_spill] sm:$0xff] %v4669_v52  ;;  %v931_v15 = vsel %vm914_vm3, %v929_v6, %v930_v56 }
 0x112   : > { %6169 = vst [vmem:[#allocation11_spill] sm:$0xff] %v4671_v48  ;;  %3473 = vmatmul.msk.f32.gmra.mxu0 %vm448_vm2, %v928_v19  ;;  %3498 = vmatmul.msk.f32.gmra.mxu1 %vm448_vm2, %v928_v19  ;;  %v1291_v48 = vsel %vm1274_vm4, %v1289_v60, %v1290_v34 }
 0x113   : > { %3545 = vmatmul.msk.f32.gmra.mxu2 %vm448_vm2, %v1288_v39  ;;  %3570 = vmatmul.msk.f32.gmra.mxu3 %vm448_vm2, %v1288_v39  ;;  %v3601_v39 = vld [vmem:[%s6155_s1 + $0x320] sm:$0xff] }
 0x114   : > { %1776 = vmatpush.msra.mxu0 %v3601_v39  ;;  %v933_v39 = vsel %vm914_vm3, %v930_v56, %v932_v10 }
 0x116   : > { %v792_v2 = vpop.f32.mrf.mxu2  ;;  %v881_v3 = vpop.f32.mrf.mxu3 }
 0x117   : > { %v4686_v61 = vadd.f32 %v792_v2, %v560_v51  ;;  %v4688_v38 = vadd.f32 %v881_v3, %v649_v37  ;;  %v563_v8 = vpop.f32.mrf.mxu0  ;;  %v652_v19 = vpop.f32.mrf.mxu1 }
 0x119   : > { %6170 = vst [vmem:[#allocation12_spill] sm:$0xff] %v4686_v61 }
 0x11a   : > { %6171 = vst [vmem:[#allocation13_spill] sm:$0xff] %v4688_v38  ;;  %3474 = vmatmul.msk.f32.gmra.mxu0 %vm448_vm2, %v931_v15  ;;  %3499 = vmatmul.msk.f32.gmra.mxu1 %vm448_vm2, %v931_v15  ;;  %v3602_v15 = vld [vmem:[%s6155_s1 + $0x328] sm:$0xff] }
 0x11b   : > { %3546 = vmatmul.msk.f32.gmra.mxu2 %vm448_vm2, %v1291_v48  ;;  %3571 = vmatmul.msk.f32.gmra.mxu3 %vm448_vm2, %v1291_v48  ;;  %v1293_v48 = vsel %vm1274_vm4, %v1290_v34, %v1292_v11 }
 0x11c   : > { %1865 = vmatpush.msra.mxu1 %v3602_v15 }
 0x11e   : > { %v795_v51 = vpop.f32.mrf.mxu2  ;;  %v884_v37 = vpop.f32.mrf.mxu3 }
 0x11f   : > { %v4701_v6 = vadd.f32 %v795_v51, %v563_v8  ;;  %v4703_v2 = vadd.f32 %v884_v37, %v652_v19  ;;  %v566_v60 = vpop.f32.mrf.mxu0  ;;  %v655_v3 = vpop.f32.mrf.mxu1  ;;  %v1294_v8 = vrot.slane %v4247_v20, 3  ;;  %v936_v20 = vrot.slane %v4261_v24, 2 }
 0x121   : > { %6172 = vst [vmem:[#allocation14_spill] sm:$0xff] %v4701_v6 }
 0x122   : > { %6173 = vst [vmem:[#allocation15_spill] sm:$0xff] %v4703_v2  ;;  %3475 = vmatmul.msk.f32.gmra.mxu0 %vm448_vm2, %v933_v39  ;;  %3500 = vmatmul.msk.f32.gmra.mxu1 %vm448_vm2, %v933_v39  ;;  %v935_v2 = vsel %vm914_vm3, %v932_v10, %v934_v16  ;;  %v3599_v39 = vld [vmem:[%s6155_s1 + $0x310] sm:$0xff]  ;;  %v1296_v10 = vrot.slane %v4261_v24, 3  ;;  %v939_v24 = vrot.slane %v4279_v30, 2 }
 0x123   : > { %3547 = vmatmul.msk.f32.gmra.mxu2 %vm448_vm2, %v1293_v48  ;;  %3572 = vmatmul.msk.f32.gmra.mxu3 %vm448_vm2, %v1293_v48  ;;  %v1295_v48 = vsel %vm1274_vm4, %v1292_v11, %v1294_v8 }
 0x124   : > { %1777 = vmatpush.msra.mxu0 %v3599_v39 }
 0x126   : > { %v798_v56 = vpop.f32.mrf.mxu2  ;;  %v887_v19 = vpop.f32.mrf.mxu3 }
 0x127   : > { %v4716_v51 = vadd.f32 %v798_v56, %v566_v60  ;;  %v4718_v37 = vadd.f32 %v887_v19, %v655_v3  ;;  %v569_v34 = vpop.f32.mrf.mxu0  ;;  %v658_v15 = vpop.f32.mrf.mxu1  ;;  %v937_v60 = vrot.slane %v4264_v25, 2  ;;  %v1297_v3 = vrot.slane %v4264_v25, 3 }
 0x128   : > { %v1299_v25 = vrot.slane %v4279_v30, 3  ;;  %v941_v30 = vrot.slane %v4293_v35, 2 }
 0x129   : > { %6174 = vst [vmem:[#allocation16_spill] sm:$0xff] %v4716_v51  ;;  %v938_v39 = vsel %vm914_vm3, %v936_v20, %v937_v60  ;;  %v3798_v51 = vld [vmem:[%s4070_s19 + $0x48] sm:$0xff] }
 0x12a   : > { %6175 = vst [vmem:[#allocation17_spill] sm:$0xff] %v4718_v37  ;;  %3476 = vmatmul.msk.f32.gmra.mxu0 %vm448_vm2, %v935_v2  ;;  %3501 = vmatmul.msk.f32.gmra.mxu1 %vm448_vm2, %v935_v2  ;;  %v1298_v37 = vsel %vm1274_vm4, %v1296_v10, %v1297_v3  ;;  %v1649_v6 = vrot.slane %v3798_v51, 4 }
 0x12b   : > { %3548 = vmatmul.msk.f32.gmra.mxu2 %vm448_vm2, %v1295_v48  ;;  %3573 = vmatmul.msk.f32.gmra.mxu3 %vm448_vm2, %v1295_v48  ;;  %v3600_v48 = vld [vmem:[%s6155_s1 + $0x318] sm:$0xff] }
 0x12c   : > { %1866 = vmatpush.msra.mxu1 %v3600_v48  ;;  %v940_v48 = vsel %vm914_vm3, %v937_v60, %v939_v24 }
 0x12e   : > { %v801_v16 = vpop.f32.mrf.mxu2  ;;  %v890_v56 = vpop.f32.mrf.mxu3 }
 0x12f   : > { %v4733_v11 = vadd.f32 %v801_v16, %v569_v34  ;;  %v4735_v8 = vadd.f32 %v890_v56, %v658_v15  ;;  %v572_v19 = vpop.f32.mrf.mxu0  ;;  %v661_v2 = vpop.f32.mrf.mxu1 }
 0x131   : > { %6176 = vst [vmem:[#allocation18_spill] sm:$0xff] %v4733_v11 }
 0x132   : > { %6177 = vst [vmem:[#allocation19_spill] sm:$0xff] %v4735_v8  ;;  %3477 = vmatmul.msk.f32.gmra.mxu0 %vm448_vm2, %v938_v39  ;;  %3502 = vmatmul.msk.f32.gmra.mxu1 %vm448_vm2, %v938_v39  ;;  %v3597_v39 = vld [vmem:[%s6155_s1 + $0x300] sm:$0xff] }
 0x133   : > { %3549 = vmatmul.msk.f32.gmra.mxu2 %vm448_vm2, %v1298_v37  ;;  %3574 = vmatmul.msk.f32.gmra.mxu3 %vm448_vm2, %v1298_v37  ;;  %v1300_v37 = vsel %vm1274_vm4, %v1297_v3, %v1299_v25 }
 0x134   : > { %1778 = vmatpush.msra.mxu0 %v3597_v39 }
 0x136   : > { %v804_v34 = vpop.f32.mrf.mxu2  ;;  %v893_v15 = vpop.f32.mrf.mxu3 }
 0x137   : > { %v4748_v20 = vadd.f32 %v804_v34, %v572_v19  ;;  %v4750_v16 = vadd.f32 %v893_v15, %v661_v2  ;;  %v575_v10 = vpop.f32.mrf.mxu0  ;;  %v664_v56 = vpop.f32.mrf.mxu1  ;;  %v1301_v19 = vrot.slane %v4293_v35, 3  ;;  %v943_v35 = vrot.slane %v4307_v40, 2 }
 0x139   : > { %6178 = vst [vmem:[#allocation20_spill] sm:$0xff] %v4748_v20 }
 0x13a   : > { %6179 = vst [vmem:[#allocation21_spill] sm:$0xff] %v4750_v16  ;;  %3478 = vmatmul.msk.f32.gmra.mxu0 %vm448_vm2, %v940_v48  ;;  %3503 = vmatmul.msk.f32.gmra.mxu1 %vm448_vm2, %v940_v48  ;;  %v942_v16 = vsel %vm914_vm3, %v939_v24, %v941_v30  ;;  %v3598_v48 = vld [vmem:[%s6155_s1 + $0x308] sm:$0xff]  ;;  %v1303_v24 = vrot.slane %v4307_v40, 3  ;;  %v946_v40 = vrot.slane %v4322_v45, 2 }
 0x13b   : > { %3550 = vmatmul.msk.f32.gmra.mxu2 %vm448_vm2, %v1300_v37  ;;  %3575 = vmatmul.msk.f32.gmra.mxu3 %vm448_vm2, %v1300_v37  ;;  %v1302_v37 = vsel %vm1274_vm4, %v1299_v25, %v1301_v19 }
 0x13c   : > { %1867 = vmatpush.msra.mxu1 %v3598_v48 }
 0x13e   : > { %v807_v60 = vpop.f32.mrf.mxu2  ;;  %v896_v2 = vpop.f32.mrf.mxu3 }
 0x13f   : > { %v4763_v34 = vadd.f32 %v807_v60, %v575_v10  ;;  %v4765_v15 = vadd.f32 %v896_v2, %v664_v56  ;;  %v578_v3 = vpop.f32.mrf.mxu0  ;;  %v667_v39 = vpop.f32.mrf.mxu1  ;;  %v944_v10 = vrot.slane %v4310_v41, 2  ;;  %v1304_v56 = vrot.slane %v4310_v41, 3  ;;  %v3595_v41 = vld [vmem:[%s6155_s1 + $0x2f0] sm:$0xff] }
 0x140   : > { %1779 = vmatpush.msra.mxu0 %v3595_v41 }
 0x141   : > { %6180 = vst [vmem:[#allocation22_spill] sm:$0xff] %v4763_v34  ;;  %v945_v48 = vsel %vm914_vm3, %v943_v35, %v944_v10 }
 0x142   : > { %6181 = vst [vmem:[#allocation23_spill] sm:$0xff] %v4765_v15  ;;  %3479 = vmatmul.msk.f32.gmra.mxu0 %vm448_vm2, %v942_v16  ;;  %3504 = vmatmul.msk.f32.gmra.mxu1 %vm448_vm2, %v942_v16 }
 0x143   : > { %3551 = vmatmul.msk.f32.gmra.mxu2 %vm448_vm2, %v1302_v37  ;;  %3576 = vmatmul.msk.f32.gmra.mxu3 %vm448_vm2, %v1302_v37  ;;  %v1305_v37 = vsel %vm1274_vm4, %v1303_v24, %v1304_v56 }
 0x146   : > { %v810_v30 = vpop.f32.mrf.mxu2  ;;  %v899_v60 = vpop.f32.mrf.mxu3 }
 0x147   : > { %v4780_v25 = vadd.f32 %v810_v30, %v578_v3  ;;  %v4782_v19 = vadd.f32 %v899_v60, %v667_v39  ;;  %v581_v2 = vpop.f32.mrf.mxu0  ;;  %v670_v16 = vpop.f32.mrf.mxu1  ;;  %v1306_v3 = vrot.slane %v4322_v45, 3  ;;  %v948_v45 = vrot.slane %v4336_v50, 2 }
 0x149   : > { %6182 = vst [vmem:[#allocation24_spill] sm:$0xff] %v4780_v25  ;;  %v3794_v25 = vld [vmem:[%s4070_s19 + $0x28] sm:$0xff] }
 0x14a   : > { %6183 = vst [vmem:[#allocation25_spill] sm:$0xff] %v4782_v19  ;;  %3480 = vmatmul.msk.f32.gmra.mxu0 %vm448_vm2, %v945_v48  ;;  %3505 = vmatmul.msk.f32.gmra.mxu1 %vm448_vm2, %v945_v48  ;;  %v947_v19 = vsel %vm914_vm3, %v944_v10, %v946_v40  ;;  %v1642_v15 = vrot.slane %v3794_v25, 4 }
 0x14b   : > { %3552 = vmatmul.msk.f32.gmra.mxu2 %vm448_vm2, %v1305_v37  ;;  %3577 = vmatmul.msk.f32.gmra.mxu3 %vm448_vm2, %v1305_v37  ;;  %v1307_v37 = vsel %vm1274_vm4, %v1304_v56, %v1306_v3 }
 0x14e   : > { %v813_v39 = vpop.f32.mrf.mxu2  ;;  %v902_v35 = vpop.f32.mrf.mxu3 }
 0x14f   : > { %v4795_v24 = vadd.f32 %v813_v39, %v581_v2  ;;  %v4797_v30 = vadd.f32 %v902_v35, %v670_v16  ;;  %v584_v60 = vpop.f32.mrf.mxu0  ;;  %v673_v48 = vpop.f32.mrf.mxu1  ;;  %v3596_v2 = vld [vmem:[%s6155_s1 + $0x2f8] sm:$0xff]  ;;  %v1308_v16 = vrot.slane %v4336_v50, 3  ;;  %v950_v50 = vrot.slane %v4350_v54, 2 }
 0x150   : > { %1868 = vmatpush.msra.mxu1 %v3596_v2 }
 0x151   : > { %6184 = vst [vmem:[#allocation26_spill] sm:$0xff] %v4795_v24 }
 0x152   : > { %6185 = vst [vmem:[#allocation27_spill] sm:$0xff] %v4797_v30  ;;  %3481 = vmatmul.msk.f32.gmra.mxu0 %vm448_vm2, %v947_v19  ;;  %3506 = vmatmul.msk.f32.gmra.mxu1 %vm448_vm2, %v947_v19  ;;  %v949_v30 = vsel %vm914_vm3, %v946_v40, %v948_v45  ;;  %v1310_v40 = vrot.slane %v4350_v54, 3  ;;  %v953_v54 = vrot.slane %v4368_v63, 2 }
 0x153   : > { %3553 = vmatmul.msk.f32.gmra.mxu2 %vm448_vm2, %v1307_v37  ;;  %3578 = vmatmul.msk.f32.gmra.mxu3 %vm448_vm2, %v1307_v37  ;;  %v1309_v37 = vsel %vm1274_vm4, %v1306_v3, %v1308_v16  ;;  %v1311_v3 = vrot.slane %v4353_v55, 3 }
 0x156   : > { %v816_v10 = vpop.f32.mrf.mxu2  ;;  %v905_v41 = vpop.f32.mrf.mxu3 }
 0x157   : > { %v4810_v56 = vadd.f32 %v816_v10, %v584_v60  ;;  %v4812_v39 = vadd.f32 %v905_v41, %v673_v48  ;;  %v587_v19 = vpop.f32.mrf.mxu0  ;;  %v676_v35 = vpop.f32.mrf.mxu1  ;;  %v951_v60 = vrot.slane %v4353_v55, 2  ;;  %v3593_v48 = vld [vmem:[%s6155_s1 + $0x2e0] sm:$0xff]  ;;  %v3594_v55 = vld [vmem:[%s6155_s1 + $0x2e8] sm:$0xff] }
 0x158   : > { %1780 = vmatpush.msra.mxu0 %v3593_v48  ;;  %1869 = vmatpush.msra.mxu1 %v3594_v55 }
 0x159   : > { %6186 = vst [vmem:[#allocation28_spill] sm:$0xff] %v4810_v56 }
 0x15a   : > { %6187 = vst [vmem:[#allocation29_spill] sm:$0xff] %v4812_v39  ;;  %3482 = vmatmul.msk.f32.gmra.mxu0 %vm448_vm2, %v949_v30  ;;  %3507 = vmatmul.msk.f32.gmra.mxu1 %vm448_vm2, %v949_v30  ;;  %v1312_v39 = vsel %vm1274_vm4, %v1310_v40, %v1311_v3 }
 0x15b   : > { %3554 = vmatmul.msk.f32.gmra.mxu2 %vm448_vm2, %v1309_v37  ;;  %3579 = vmatmul.msk.f32.gmra.mxu3 %vm448_vm2, %v1309_v37  ;;  %v952_v37 = vsel %vm914_vm3, %v950_v50, %v951_v60 }
 0x15e   : > { %v819_v45 = vpop.f32.mrf.mxu2  ;;  %v908_v2 = vpop.f32.mrf.mxu3 }
 0x15f   : > { %v4827_v30 = vadd.f32 %v819_v45, %v587_v19  ;;  %v4829_v16 = vadd.f32 %v908_v2, %v676_v35  ;;  %v590_v10 = vpop.f32.mrf.mxu0  ;;  %v679_v41 = vpop.f32.mrf.mxu1  ;;  %v1313_v19 = vrot.slane %v4368_v63, 3  ;;  %v955_v63 = vrot.slane %v4382_v7, 2 }
 0x161   : > { %6188 = vst [vmem:[#allocation30_spill] sm:$0xff] %v4827_v30 }
 0x162   : > { %6189 = vst [vmem:[#allocation31_spill] sm:$0xff] %v4829_v16  ;;  %3483 = vmatmul.msk.f32.gmra.mxu0 %vm448_vm2, %v952_v37  ;;  %3508 = vmatmul.msk.f32.gmra.mxu1 %vm448_vm2, %v952_v37  ;;  %v1314_v37 = vsel %vm1274_vm4, %v1311_v3, %v1313_v19  ;;  %v3591_v3 = vld [vmem:[%s6155_s1 + $0x2d0] sm:$0xff] }
 0x163   : > { %3555 = vmatmul.msk.f32.gmra.mxu2 %vm448_vm2, %v1312_v39  ;;  %3580 = vmatmul.msk.f32.gmra.mxu3 %vm448_vm2, %v1312_v39  ;;  %v954_v39 = vsel %vm914_vm3, %v951_v60, %v953_v54  ;;  %v956_v60 = vsel %vm914_vm3, %v953_v54, %v955_v63  ;;  %v1317_v54 = vrot.slane %v4400_v21, 3 }
 0x164   : > { %1781 = vmatpush.msra.mxu0 %v3591_v3 }
 0x166   : > { %v822_v35 = vpop.f32.mrf.mxu2  ;;  %v911_v50 = vpop.f32.mrf.mxu3 }
 0x167   : > { %v4842_v48 = vadd.f32 %v822_v35, %v590_v10  ;;  %v4844_v40 = vadd.f32 %v911_v50, %v679_v41  ;;  %v4846_v45 = vpop.f32.mrf.mxu0  ;;  %v4848_v2 = vpop.f32.mrf.mxu1  ;;  %v1315_v10 = vrot.slane %v4382_v7, 3  ;;  %v957_v7 = vrot.slane %v4400_v21, 2 }
 0x168   : > { %v958_v50 = vrot.slane %v4403_v22, 2  ;;  %v960_v21 = vrot.slane %v4436_v46, 2 }
 0x169   : > { %6190 = vst [vmem:[#allocation32_spill] sm:$0xff] %v4842_v48  ;;  %v1316_v35 = vsel %vm1274_vm4, %v1313_v19, %v1315_v10  ;;  %v3592_v10 = vld [vmem:[%s6155_s1 + $0x2d8] sm:$0xff] }
 0x16a   : > { %6191 = vst [vmem:[#allocation33_spill] sm:$0xff] %v4844_v40  ;;  %3484 = vmatmul.msk.f32.gmra.mxu0 %vm448_vm2, %v954_v39  ;;  %3509 = vmatmul.msk.f32.gmra.mxu1 %vm448_vm2, %v954_v39  ;;  %v1318_v39 = vrot.slane %v4403_v22, 3  ;;  %v959_v63 = vsel %vm914_vm3, %v957_v7, %v958_v50  ;;  %v1320_v22 = vrot.slane %v4436_v46, 3  ;;  %v961_v7 = vsel %vm914_vm3, %v958_v50, %v960_v21 }
 0x16b   : > { %3556 = vmatmul.msk.f32.gmra.mxu2 %vm448_vm2, %v1314_v37  ;;  %3581 = vmatmul.msk.f32.gmra.mxu3 %vm448_vm2, %v1314_v37  ;;  %v962_v46 = vrot.slane %v4472_v9, 2 }
 0x16c   : > { %1870 = vmatpush.msra.mxu1 %v3592_v10  ;;  %v1322_v10 = vrot.slane %v4472_v9, 3  ;;  %v964_v9 = vrot.slane %v4508_v43, 2 }
 0x16f   : > { %v4858_v41 = vpop.f32.mrf.mxu0  ;;  %v4860_v55 = vpop.f32.mrf.mxu1 }
 0x172   : > { %3485 = vmatmul.msk.f32.gmra.mxu0 %vm448_vm2, %v956_v60  ;;  %3510 = vmatmul.msk.f32.gmra.mxu1 %vm448_vm2, %v956_v60  ;;  %v1319_v60 = vsel %vm1274_vm4, %v1317_v54, %v1318_v39  ;;  %v1321_v54 = vsel %vm1274_vm4, %v1318_v39, %v1320_v22 }
 0x173   : > { %3557 = vmatmul.msk.f32.gmra.mxu2 %vm448_vm2, %v1316_v35  ;;  %3582 = vmatmul.msk.f32.gmra.mxu3 %vm448_vm2, %v1316_v35 }
 0x177   : > { %v4875_v37 = vpop.f32.mrf.mxu0  ;;  %v4877_v19 = vpop.f32.mrf.mxu1 }
 0x17a   : > { %3486 = vmatmul.msk.f32.gmra.mxu0 %vm448_vm2, %v959_v63  ;;  %3511 = vmatmul.msk.f32.gmra.mxu1 %vm448_vm2, %v959_v63  ;;  %v3589_v63 = vld [vmem:[%s6155_s1 + $0x2c0] sm:$0xff] }
 0x17b   : > { %3558 = vmatmul.msk.f32.gmra.mxu2 %vm448_vm2, %v1319_v60  ;;  %3583 = vmatmul.msk.f32.gmra.mxu3 %vm448_vm2, %v1319_v60  ;;  %v963_v60 = vsel %vm914_vm3, %v960_v21, %v962_v46  ;;  %v1324_v21 = vrot.slane %v4508_v43, 3  ;;  %v967_v43 = vrot.slane %v4548_v18, 2 }
 0x17c   : > { %1782 = vmatpush.msra.mxu0 %v3589_v63  ;;  %v1323_v63 = vsel %vm1274_vm4, %v1320_v22, %v1322_v10  ;;  %v1325_v22 = vrot.slane %v4511_v44, 3 }
 0x17f   : > { %v4890_v3 = vpop.f32.mrf.mxu0  ;;  %v4892_v35 = vpop.f32.mrf.mxu1 }
 0x182   : > { %3487 = vmatmul.msk.f32.gmra.mxu0 %vm448_vm2, %v961_v7  ;;  %3512 = vmatmul.msk.f32.gmra.mxu1 %vm448_vm2, %v961_v7  ;;  %v3590_v7 = vld [vmem:[%s6155_s1 + $0x2c8] sm:$0xff] }
 0x183   : > { %3559 = vmatmul.msk.f32.gmra.mxu2 %vm448_vm2, %v1321_v54  ;;  %3584 = vmatmul.msk.f32.gmra.mxu3 %vm448_vm2, %v1321_v54  ;;  %v965_v54 = vrot.slane %v4511_v44, 2  ;;  %v1327_v44 = vrot.slane %v4548_v18, 3  ;;  %v969_v18 = vrot.slane %v4567_v47, 2 }
 0x184   : > { %1871 = vmatpush.msra.mxu1 %v3590_v7 }
 0x185   : > { %v966_v7 = vsel %vm914_vm3, %v964_v9, %v965_v54  ;;  %v968_v9 = vsel %vm914_vm3, %v965_v54, %v967_v43  ;;  %v970_v54 = vsel %vm914_vm3, %v967_v43, %v969_v18 }
 0x187   : > { %v4905_v50 = vpop.f32.mrf.mxu0  ;;  %v4907_v39 = vpop.f32.mrf.mxu1 }
 0x18a   : > { %3488 = vmatmul.msk.f32.gmra.mxu0 %vm448_vm2, %v963_v60  ;;  %3513 = vmatmul.msk.f32.gmra.mxu1 %vm448_vm2, %v963_v60  ;;  %v1326_v60 = vsel %vm1274_vm4, %v1324_v21, %v1325_v22  ;;  %v1328_v21 = vsel %vm1274_vm4, %v1325_v22, %v1327_v44 }
 0x18b   : > { %3560 = vmatmul.msk.f32.gmra.mxu2 %vm448_vm2, %v1323_v63  ;;  %3585 = vmatmul.msk.f32.gmra.mxu3 %vm448_vm2, %v1323_v63 }
 0x18f   : > { %v4922_v46 = vpop.f32.mrf.mxu0  ;;  %v4924_v10 = vpop.f32.mrf.mxu1 }
 0x192   : > { %3489 = vmatmul.msk.f32.gmra.mxu0 %vm448_vm2, %v966_v7  ;;  %3514 = vmatmul.msk.f32.gmra.mxu1 %vm448_vm2, %v966_v7  ;;  %v1329_v7 = vrot.slane %v4567_v47, 3 }
 0x193   : > { %3561 = vmatmul.msk.f32.gmra.mxu2 %vm448_vm2, %v1326_v60  ;;  %3586 = vmatmul.msk.f32.gmra.mxu3 %vm448_vm2, %v1326_v60 }
 0x194   : > { %v1330_v22 = vsel %vm1274_vm4, %v1327_v44, %v1329_v7  ;;  %v3791_v44 = vld [vmem:[%s4070_s19 + $0x10] sm:$0xff] }
 0x195   : > { %v1637_v18 = vrot.slane %v3791_v44, 4  ;;  %v3793_v44 = vld [vmem:[%s4070_s19 + $0x20] sm:$0xff] }
 0x197   : > { %v4934_v63 = vpop.f32.mrf.mxu0  ;;  %v4936_v40 = vpop.f32.mrf.mxu1 }
 0x19a   : > { %3490 = vmatmul.msk.f32.gmra.mxu0 %vm448_vm2, %v968_v9  ;;  %3515 = vmatmul.msk.f32.gmra.mxu1 %vm448_vm2, %v968_v9  ;;  %v3789_v9 = vld [vmem:[%s4070_s19] sm:$0xff] }
 0x19b   : > { %3562 = vmatmul.msk.f32.gmra.mxu2 %vm448_vm2, %v1328_v21  ;;  %3587 = vmatmul.msk.f32.gmra.mxu3 %vm448_vm2, %v1328_v21  ;;  %v1634_v47 = vrot.slane %v3789_v9, 4  ;;  %v3790_v21 = vld [vmem:[%s4070_s19 + $0x8] sm:$0xff]  ;;  %v3792_v9 = vld [vmem:[%s4070_s19 + $0x18] sm:$0xf] }
 0x19c   : > { %v1635_v16 = vrot.slane %v3790_v21, 4 }
 0x19e   : > { %v1636_v43 = vsel %vm497_vm0, %v1634_v47, %v1635_v16  ;;  %v1639_v47 = vrot.slane %v3792_v9, 4 }
 0x19f   : > { %v4946_v60 = vpop.f32.mrf.mxu0  ;;  %v4948_v48 = vpop.f32.mrf.mxu1 }
 0x1a2   : > { %3491 = vmatmul.msk.f32.gmra.mxu0 %vm448_vm2, %v970_v54  ;;  %3516 = vmatmul.msk.f32.gmra.mxu1 %vm448_vm2, %v970_v54 }
 0x1a3   : > { %3563 = vmatmul.msk.f32.gmra.mxu2 %vm448_vm2, %v1330_v22  ;;  %3588 = vmatmul.msk.f32.gmra.mxu3 %vm448_vm2, %v1330_v22  ;;  %v1638_v22 = vsel %vm497_vm0, %v1635_v16, %v1637_v18  ;;  %v1641_v16 = vrot.slane %v3793_v44, 4  ;;  %v3796_v44 = vld [vmem:[%s4070_s19 + $0x38] sm:$0xf] }
 0x1a5   : > { %v1643_v9 = vsel %vm497_vm0, %v1641_v16, %v1642_v15  ;;  %v1646_v16 = vrot.slane %v3796_v44, 4 }
 0x1a7   : > { %v4958_v30 = vpop.f32.mrf.mxu0  ;;  %v4960_v56 = vpop.f32.mrf.mxu1 }
 0x1aa   : > { %3612 = vmatmul.msk.f32.vlgmr.msra.gmra.mxu0 %vm448_vm2, %v1636_v43  ;;  %3637 = vmatmul.msk.f32.vlgmr.msra.gmra.mxu1 %vm448_vm2, %v1636_v43  ;;  %v1640_v43 = vsel %vm497_vm0, %v1637_v18, %v1639_v47  ;;  %v3795_v18 = vld [vmem:[%s4070_s19 + $0x30] sm:$0xff] }
 0x1ab   : > { %v1644_v47 = vrot.slane %v3795_v18, 4  ;;  %v3797_v18 = vld [vmem:[%s4070_s19 + $0x40] sm:$0xff] }
 0x1ad   : > { %v1645_v25 = vsel %vm497_vm0, %v1642_v15, %v1644_v47  ;;  %v1648_v15 = vrot.slane %v3797_v18, 4  ;;  %v3800_v18 = vld [vmem:[%s4070_s19 + $0x58] sm:$0xf] }
 0x1af   : > { %v4966_v7 = vpop.f32.mrf.mxu0  ;;  %v4968_v54 = vpop.f32.mrf.mxu1  ;;  %v1650_v44 = vsel %vm497_vm0, %v1648_v15, %v1649_v6  ;;  %v1653_v15 = vrot.slane %v3800_v18, 4 }
 0x1b0   : > { %6192 = vst [vmem:[#allocation34_spill] sm:$0xff] %v4968_v54 }
 0x1b2   : > { %3613 = vmatmul.msk.f32.gmra.mxu0 %vm448_vm2, %v1638_v22  ;;  %3638 = vmatmul.msk.f32.gmra.mxu1 %vm448_vm2, %v1638_v22 }
 0x1b7   : > { %v4974_v21 = vpop.f32.mrf.mxu0  ;;  %v4976_v24 = vpop.f32.mrf.mxu1 }
 0x1b8   : > { %6193 = vst [vmem:[#allocation35_spill] sm:$0xff] %v4974_v21  ;;  %v1227_v21 = vadd.f32 %v4848_v2, %v4393_v14 }
 0x1b9   : > { %6194 = vst [vmem:[#allocation36_spill] sm:$0xff] %v4976_v24 }
 0x1ba   : > { %3614 = vmatmul.msk.f32.gmra.mxu0 %vm448_vm2, %v1640_v43  ;;  %3639 = vmatmul.msk.f32.gmra.mxu1 %vm448_vm2, %v1640_v43 }
 0x1bf   : > { %v4983_v34 = vpop.f32.mrf.mxu0  ;;  %v4985_v22 = vpop.f32.mrf.mxu1 }
 0x1c0   : > { %6195 = vst [vmem:[#allocation37_spill] sm:$0xff] %v4983_v34  ;;  %v1669_v34 = vrot.slane %v3809_v12, 4  ;;  %v1226_v12 = vadd.f32 %v4846_v45, %v4391_v13  ;;  %v3812_v45 = vld [vmem:[%s4070_s19 + $0xb8] sm:$0xf] }
 0x1c1   : > { %6196 = vst [vmem:[#allocation38_spill] sm:$0xff] %v4985_v22 }
 0x1c2   : > { %3615 = vmatmul.msk.f32.gmra.mxu0 %vm448_vm2, %v1643_v9  ;;  %3640 = vmatmul.msk.f32.gmra.mxu1 %vm448_vm2, %v1643_v9  ;;  %v1647_v9 = vsel %vm497_vm0, %v1644_v47, %v1646_v16  ;;  %v3799_v47 = vld [vmem:[%s4070_s19 + $0x50] sm:$0xff] }
 0x1c3   : > { %v1651_v16 = vrot.slane %v3799_v47, 4  ;;  %v3801_v47 = vld [vmem:[%s4070_s19 + $0x60] sm:$0xff] }
 0x1c5   : > { %v1652_v51 = vsel %vm497_vm0, %v1649_v6, %v1651_v16  ;;  %v3802_v6 = vld [vmem:[%s4070_s19 + $0x68] sm:$0xff] }
 0x1c7   : > { %v4991_v43 = vpop.f32.mrf.mxu0  ;;  %v4993_v20 = vpop.f32.mrf.mxu1 }
 0x1c8   : > { %6197 = vst [vmem:[#allocation39_spill] sm:$0xff] %v4991_v43 }
 0x1c9   : > { %6198 = vst [vmem:[#allocation40_spill] sm:$0xff] %v4993_v20 }
 0x1ca   : > { %3616 = vmatmul.msk.f32.gmra.mxu0 %vm448_vm2, %v1645_v25  ;;  %3641 = vmatmul.msk.f32.gmra.mxu1 %vm448_vm2, %v1645_v25 }
 0x1cf   : > { %v4999_v8 = vpop.f32.mrf.mxu0  ;;  %v5001_v11 = vpop.f32.mrf.mxu1 }
 0x1d0   : > { %6199 = vst [vmem:[#allocation41_spill] sm:$0xff] %v4999_v8 }
 0x1d1   : > { %6200 = vst [vmem:[#allocation42_spill] sm:$0xff] %v5001_v11 }
 0x1d2   : > { %3617 = vmatmul.msk.f32.gmra.mxu0 %vm448_vm2, %v1647_v9  ;;  %3642 = vmatmul.msk.f32.gmra.mxu1 %vm448_vm2, %v1647_v9 }
 0x1d7   : > { %v5008_v38 = vpop.f32.mrf.mxu0  ;;  %v5010_v25 = vpop.f32.mrf.mxu1 }
 0x1d8   : > { %6201 = vst [vmem:[#allocation43_spill] sm:$0xff] %v5008_v38 }
 0x1d9   : > { %6202 = vst [vmem:[#allocation44_spill] sm:$0xff] %v5010_v25 }
 0x1da   : > { %3618 = vmatmul.msk.f32.gmra.mxu0 %vm448_vm2, %v1650_v44  ;;  %3643 = vmatmul.msk.f32.gmra.mxu1 %vm448_vm2, %v1650_v44  ;;  %v1654_v44 = vsel %vm497_vm0, %v1651_v16, %v1653_v15  ;;  %v3803_v16 = vld [vmem:[%s4070_s19 + $0x70] sm:$0xff] }
 0x1db   : > { %v1658_v15 = vrot.slane %v3803_v16, 4 }
 0x1df   : > { %v5016_v9 = vpop.f32.mrf.mxu0  ;;  %v5018_v11 = vpop.f32.mrf.mxu1 }
 0x1e0   : > { %6203 = vst [vmem:[#allocation45_spill] sm:$0xff] %v5016_v9  ;;  %v1656_v9 = vrot.slane %v3802_v6, 4 }
 0x1e1   : > { %6204 = vst [vmem:[#allocation46_spill] sm:$0xff] %v5018_v11  ;;  %v1655_v11 = vrot.slane %v3801_v47, 4 }
 0x1e2   : > { %3619 = vmatmul.msk.f32.gmra.mxu0 %vm448_vm2, %v1652_v51  ;;  %3644 = vmatmul.msk.f32.gmra.mxu1 %vm448_vm2, %v1652_v51  ;;  %v1659_v6 = vsel %vm497_vm0, %v1656_v9, %v1658_v15 }
 0x1e3   : > { %v1657_v18 = vsel %vm497_vm0, %v1655_v11, %v1656_v9  ;;  %v3804_v11 = vld [vmem:[%s4070_s19 + $0x78] sm:$0xf]  ;;  %v3805_v9 = vld [vmem:[%s4070_s19 + $0x80] sm:$0xff] }
 0x1e7   : > { %v5024_v25 = vpop.f32.mrf.mxu0  ;;  %v5026_v38 = vpop.f32.mrf.mxu1 }
 0x1e8   : > { %6205 = vst [vmem:[#allocation47_spill] sm:$0xff] %v5024_v25  ;;  %v5038_v25 = vpop.f32.mrf.mxu2 }
 0x1e9   : > { %6206 = vst [vmem:[#allocation48_spill] sm:$0xff] %v5026_v38  ;;  %v5040_v38 = vpop.f32.mrf.mxu3 }
 0x1ea   : > { %3620 = vmatmul.msk.f32.gmra.mxu0 %vm448_vm2, %v1654_v44  ;;  %3645 = vmatmul.msk.f32.gmra.mxu1 %vm448_vm2, %v1654_v44 }
 0x1ef   : > { %v5033_v8 = vpop.f32.mrf.mxu0  ;;  %v5035_v51 = vpop.f32.mrf.mxu1 }
 0x1f0   : > { %6207 = vst [vmem:[#allocation49_spill] sm:$0xff] %v5033_v8  ;;  %v5053_v8 = vpop.f32.mrf.mxu2 }
 0x1f1   : > { %6208 = vst [vmem:[#allocation50_spill] sm:$0xff] %v5035_v51  ;;  %v1660_v51 = vrot.slane %v3804_v11, 4  ;;  %v5055_v61 = vpop.f32.mrf.mxu3 }
 0x1f2   : > { %3621 = vmatmul.msk.f32.gmra.mxu0 %vm448_vm2, %v1657_v18  ;;  %3646 = vmatmul.msk.f32.gmra.mxu1 %vm448_vm2, %v1657_v18 }
 0x1f7   : > { %v5045_v44 = vpop.f32.mrf.mxu0  ;;  %v5047_v47 = vpop.f32.mrf.mxu1 }
 0x1f8   : > { %6209 = vst [vmem:[#allocation51_spill] sm:$0xff] %v5045_v44  ;;  %v1661_v44 = vsel %vm497_vm0, %v1658_v15, %v1660_v51  ;;  %v5066_v11 = vpop.f32.mrf.mxu2  ;;  %v3807_v51 = vld [vmem:[%s4070_s19 + $0x90] sm:$0xff] }
 0x1f9   : > { %6210 = vst [vmem:[#allocation52_spill] sm:$0xff] %v5047_v47  ;;  %v1662_v47 = vrot.slane %v3805_v9, 4  ;;  %v5068_v43 = vpop.f32.mrf.mxu3  ;;  %v1665_v15 = vrot.slane %v3807_v51, 4 }
 0x1fa   : > { %3622 = vmatmul.msk.f32.gmra.mxu0 %vm448_vm2, %v1659_v6  ;;  %3647 = vmatmul.msk.f32.gmra.mxu1 %vm448_vm2, %v1659_v6  ;;  %v3806_v6 = vld [vmem:[%s4070_s19 + $0x88] sm:$0xff] }
 0x1fb   : > { %v1663_v20 = vrot.slane %v3806_v6, 4 }
 0x1fd   : > { %v1666_v6 = vsel %vm497_vm0, %v1663_v20, %v1665_v15 }
 0x1ff   : > { %v5057_v18 = vpop.f32.mrf.mxu0  ;;  %v5059_v16 = vpop.f32.mrf.mxu1 }
 0x200   : > { %6211 = vst [vmem:[#allocation53_spill] sm:$0xff] %v5057_v18  ;;  %v5083_v22 = vpop.f32.mrf.mxu2 }
 0x201   : > { %6212 = vst [vmem:[#allocation54_spill] sm:$0xff] %v5059_v16  ;;  %v1664_v16 = vsel %vm497_vm0, %v1662_v47, %v1663_v20  ;;  %v3808_v47 = vld [vmem:[%s4070_s19 + $0x98] sm:$0xf] }
 0x202   : > { %3623 = vmatmul.msk.f32.gmra.mxu0 %vm448_vm2, %v1661_v44  ;;  %3648 = vmatmul.msk.f32.gmra.mxu1 %vm448_vm2, %v1661_v44 }
 0x207   : > { %v5070_v52 = vpop.f32.mrf.mxu0  ;;  %v5072_v18 = vpop.f32.mrf.mxu1 }
 0x208   : > { %6213 = vst [vmem:[#allocation55_spill] sm:$0xff] %v5070_v52  ;;  %v5085_v52 = vpop.f32.mrf.mxu3 }
 0x209   : > { %6214 = vst [vmem:[#allocation56_spill] sm:$0xff] %v5072_v18 }
 0x20a   : > { %3624 = vmatmul.msk.f32.gmra.mxu0 %vm448_vm2, %v1664_v16  ;;  %3649 = vmatmul.msk.f32.gmra.mxu1 %vm448_vm2, %v1664_v16  ;;  %v1667_v16 = vrot.slane %v3808_v47, 4 }
 0x20f   : > { %v5078_v44 = vpop.f32.mrf.mxu0  ;;  %v5080_v9 = vpop.f32.mrf.mxu1 }
 0x210   : > { %6215 = vst [vmem:[#allocation57_spill] sm:$0xff] %v5078_v44  ;;  %v5095_v44 = vpop.f32.mrf.mxu2  ;;  %v5097_v20 = vpop.f32.mrf.mxu3 }
 0x211   : > { %6216 = vst [vmem:[#allocation58_spill] sm:$0xff] %v5080_v9  ;;  %v1668_v9 = vsel %vm497_vm0, %v1665_v15, %v1667_v16  ;;  %v1993_v15 = vld [vmem:[%s6156_s2] sm:$0x3]  ;;  %v3811_v16 = vld [vmem:[%s4070_s19 + $0xb0] sm:$0xff] }
 0x212   : > { %3625 = vmatmul.msk.f32.gmra.mxu0 %vm448_vm2, %v1666_v6  ;;  %3650 = vmatmul.msk.f32.gmra.mxu1 %vm448_vm2, %v1666_v6  ;;  %v3810_v6 = vld [vmem:[%s4070_s19 + $0xa8] sm:$0xff] }
 0x213   : > { %v1670_v58 = vrot.slane %v3810_v6, 4 }
 0x217   : > { %v5090_v18 = vpop.f32.mrf.mxu0  ;;  %v5092_v51 = vpop.f32.mrf.mxu1 }
 0x218   : > { %6217 = vst [vmem:[#allocation59_spill] sm:$0xff] %v5090_v18  ;;  %v5116_v6 = vpop.f32.mrf.mxu2 }
 0x219   : > { %6218 = vst [vmem:[#allocation60_spill] sm:$0xff] %v5092_v51  ;;  %v1671_v51 = vsel %vm497_vm0, %v1669_v34, %v1670_v58  ;;  %v1586_v34 = vadd.f32 %v5038_v25, %v1226_v12  ;;  %v1674_v25 = vrot.slane %v3812_v45, 4  ;;  %v1228_v12 = vadd.f32 %v4858_v41, %v4421_v32  ;;  %v3814_v45 = vld [vmem:[%s4070_s19 + $0xc8] sm:$0xff] }
 0x21a   : > { %3626 = vmatmul.msk.f32.gmra.mxu0 %vm448_vm2, %v1668_v9  ;;  %3651 = vmatmul.msk.f32.gmra.mxu1 %vm448_vm2, %v1668_v9  ;;  %v1672_v9 = vrot.slane %v3811_v16, 4  ;;  %v1587_v16 = vadd.f32 %v5040_v38, %v1227_v21  ;;  %v1229_v41 = vadd.f32 %v4860_v55, %v4423_v33 }
 0x21b   : > { %v1588_v38 = vadd.f32 %v5053_v8, %v1228_v12  ;;  %v1677_v12 = vrot.slane %v3814_v45, 4 }
 0x21c   : > { %v1673_v23 = vsel %vm497_vm0, %v1670_v58, %v1672_v9  ;;  %v5135_v58 = vperm.slane %v1993_v15, 1  ;;  %v1675_v2 = vsel %vm497_vm0, %v1672_v9, %v1674_v25  ;;  %v1230_v9 = vadd.f32 %v4875_v37, %v4463_v0 }
 0x21d   : > { %v1231_v0 = vadd.f32 %v4877_v19, %v4465_v1  ;;  %v3815_v1 = vld [vmem:[%s4070_s19 + $0xd0] sm:$0xff] }
 0x21e   : > { %v1679_v19 = vrot.slane %v3815_v1, 4 }
 0x21f   : > { %v5103_v47 = vpop.f32.mrf.mxu0  ;;  %v5105_v18 = vpop.f32.mrf.mxu1 }
 0x220   : > { %6219 = vst [vmem:[#allocation61_spill] sm:$0xff] %v5103_v47  ;;  %v5118_v47 = vpop.f32.mrf.mxu3 }
 0x221   : > { %6220 = vst [vmem:[#allocation62_spill] sm:$0xff] %v5105_v18  ;;  %v5121_v18 = vperm.slane %v1993_v15, 0  ;;  %v1589_v15 = vadd.f32 %v5055_v61, %v1229_v41  ;;  %v1590_v61 = vadd.f32 %v5066_v11, %v1230_v9  ;;  %v1591_v41 = vadd.f32 %v5068_v43, %v1231_v0 }
 0x222   : > { %3627 = vmatmul.msk.f32.gmra.mxu0 %vm448_vm2, %v1671_v51  ;;  %3652 = vmatmul.msk.f32.gmra.mxu1 %vm448_vm2, %v1671_v51  ;;  %v1235_v0 = vadd.f32 %v4907_v39, %v4541_v5 }
 0x224   : > { %v1595_v1 = vadd.f32 %v5097_v20, %v1235_v0  ;;  %v3817_v20 = vld [vmem:[%s4070_s19 + $0xe0] sm:$0xff]  ;;  %v1238_v0 = vadd.f32 %v4934_v63, %v4577_v53 }
 0x227   : > { %v1784_v24 = vpop.f32.mrf.mxu0  ;;  %v1873_v51 = vpop.f32.mrf.mxu1 }
 0x228   : > { %v1945_v49 = vadd.f32 %v1784_v24, %v1586_v34  ;;  %v1946_v54 = vadd.f32 %v1873_v51, %v1587_v16  ;;  %v5139_v24 = vpop.f32.mrf.mxu2  ;;  %v3813_v51 = vld [vmem:[%s4070_s19 + $0xc0] sm:$0xff] }
 0x229   : > { %v1676_v16 = vrot.slane %v3813_v51, 4 }
 0x22a   : > { %3628 = vmatmul.msk.f32.gmra.mxu0 %vm448_vm2, %v1673_v23  ;;  %3653 = vmatmul.msk.f32.gmra.mxu1 %vm448_vm2, %v1673_v23  ;;  %v5130_v13 = vadd.f32 %v5121_v18, %v1945_v49  ;;  %v5141_v23 = vpop.f32.mrf.mxu3  ;;  %v2000_v21 = vadd.f32 %v5135_v58, %v1946_v54 }
 0x22c   : > { %v2047_v14 = vmax.f32 %v5130_v13, 0.0  ;;  %v2048_v33 = vmax.f32 %v2000_v21, 0.0 }
 0x22e   : > { %2143 = vrot.lane.b32.xlu0 %v2047_v14, %s3885_s16 }
 0x22f   : > { %v1787_v49 = vpop.f32.mrf.mxu0  ;;  %v1876_v32 = vpop.f32.mrf.mxu1 }
 0x230   : > { %v1947_v8 = vadd.f32 %v1787_v49, %v1588_v38  ;;  %v1948_v55 = vadd.f32 %v1876_v32, %v1589_v15  ;;  %v1678_v49 = vsel %vm497_vm0, %v1676_v16, %v1677_v12  ;;  %v5169_v37 = vpop.f32.mrf.mxu2  ;;  %v1233_v15 = vadd.f32 %v4892_v35, %v4501_v31 }
 0x232   : > { %3629 = vmatmul.msk.f32.gmra.mxu0 %vm448_vm2, %v1675_v2  ;;  %3654 = vmatmul.msk.f32.gmra.mxu1 %vm448_vm2, %v1675_v2  ;;  %v5154_v34 = vadd.f32 %v5121_v18, %v1947_v8  ;;  %v5171_v32 = vpop.f32.mrf.mxu3  ;;  %v2002_v11 = vadd.f32 %v5135_v58, %v1948_v55  ;;  %v1232_v8 = vadd.f32 %v4890_v3, %v4499_v29 }
 0x233   : > { %v1593_v9 = vadd.f32 %v5085_v52, %v1233_v15 }
 0x234   : > { %v2049_v54 = vmax.f32 %v5154_v34, 0.0  ;;  %v2050_v51 = vmax.f32 %v2002_v11, 0.0  ;;  %v1592_v43 = vadd.f32 %v5083_v22, %v1232_v8 }
 0x236   : > { %2145 = vrot.lane.b32.xlu0 %v2048_v33, %s3885_s16  ;;  %2147 = vrot.lane.b32.xlu1 %v2049_v54, %s3885_s16  ;;  %v1680_v33 = vsel %vm497_vm0, %v1677_v12, %v1679_v19  ;;  %v1234_v12 = vadd.f32 %v4905_v50, %v4539_v4 }
 0x237   : > { %v1790_v25 = vpop.f32.mrf.mxu0  ;;  %v1879_v38 = vpop.f32.mrf.mxu1 }
 0x238   : > { %v1949_v2 = vadd.f32 %v1790_v25, %v1590_v61  ;;  %v1950_v16 = vadd.f32 %v1879_v38, %v1591_v41  ;;  %v5194_v61 = vpop.f32.mrf.mxu2  ;;  %v3816_v38 = vld [vmem:[%s4070_s19 + $0xd8] sm:$0xf]  ;;  %v1594_v8 = vadd.f32 %v5095_v44, %v1234_v12 }
 0x23a   : > { %3630 = vmatmul.msk.f32.gmra.mxu0 %vm448_vm2, %v1678_v49  ;;  %3655 = vmatmul.msk.f32.gmra.mxu1 %vm448_vm2, %v1678_v49  ;;  %v5178_v21 = vadd.f32 %v5121_v18, %v1949_v2  ;;  %v2004_v31 = vadd.f32 %v5135_v58, %v1950_v16  ;;  %v5196_v22 = vpop.f32.mrf.mxu3  ;;  %v1681_v49 = vrot.slane %v3816_v38, 4  ;;  %v1683_v16 = vrot.slane %v3817_v20, 4 }
 0x23c   : > { %v2051_v45 = vmax.f32 %v5178_v21, 0.0  ;;  %v2052_v11 = vmax.f32 %v2004_v31, 0.0  ;;  %v1682_v50 = vsel %vm497_vm0, %v1679_v19, %v1681_v49  ;;  %v1237_v19 = vadd.f32 %v4924_v10, %v4560_v28 }
 0x23e   : > { %2149 = vrot.lane.b32.xlu1 %v2050_v51, %s3885_s16  ;;  %2151 = vrot.lane.b32.xlu2 %v2051_v45, %s3885_s16 }
 0x23f   : > { %v1793_v29 = vpop.f32.mrf.mxu0  ;;  %v1882_v3 = vpop.f32.mrf.mxu1 }
 0x240   : > { %v1951_v35 = vadd.f32 %v1793_v29, %v1592_v43  ;;  %v1952_v55 = vadd.f32 %v1882_v3, %v1593_v9  ;;  %v3818_v43 = vld [vmem:[%s4070_s19 + $0xe8] sm:$0xff]  ;;  %v1236_v29 = vadd.f32 %v4922_v46, %v4558_v27  ;;  %v5230_v3 = vpop.f32.mrf.mxu2 }
 0x241   : > { %v1684_v9 = vrot.slane %v3818_v43, 4  ;;  %v1241_v43 = vadd.f32 %v4948_v48, %v4597_v36 }
 0x242   : > { %v5199_v52 = vadd.f32 %v5121_v18, %v1951_v35  ;;  %v2006_v25 = vadd.f32 %v5135_v58, %v1952_v55  ;;  %3631 = vmatmul.msk.f32.gmra.mxu0 %vm448_vm2, %v1680_v33  ;;  %3656 = vmatmul.msk.f32.gmra.mxu1 %vm448_vm2, %v1680_v33  ;;  %v5232_v33 = vpop.f32.mrf.mxu3  ;;  %v1596_v55 = vadd.f32 %v5116_v6, %v1236_v29 }
 0x243   : > { %v1685_v46 = vsel %vm497_vm0, %v1683_v16, %v1684_v9  ;;  %v1240_v16 = vadd.f32 %v4946_v60, %v4595_v26 }
 0x244   : > { %v2053_v2 = vmax.f32 %v5199_v52, 0.0  ;;  %v2054_v41 = vmax.f32 %v2006_v25, 0.0  ;;  %v1597_v25 = vadd.f32 %v5118_v47, %v1237_v19  ;;  %v3819_v47 = vld [vmem:[%s4070_s19 + $0xf0] sm:$0xff] }
 0x245   : > { %v1686_v6 = vrot.slane %v3819_v47, 4  ;;  %v1600_v19 = vadd.f32 %v5169_v37, %v1240_v16  ;;  %v6224_v16 = vld [vmem:[#allocation7_spill] sm:$0xff] }
 0x246   : > { %2157 = vrot.lane.b32.xlu1 %v2054_v41, %s3885_s16  ;;  %2153 = vrot.lane.b32.xlu2 %v2052_v11, %s3885_s16  ;;  %v1239_v11 = vadd.f32 %v4936_v40, %v4579_v57 }
 0x247   : > { %2155 = vrot.lane.b32.xlu0 %v2053_v2, %s3885_s16  ;;  %v1796_v4 = vpop.f32.mrf.mxu0  ;;  %v1885_v5 = vpop.f32.mrf.mxu1  ;;  %v1687_v40 = vsel %vm497_vm0, %v1684_v9, %v1686_v6 }
 0x248   : > { %v1953_v39 = vadd.f32 %v1796_v4, %v1594_v8  ;;  %v1954_v15 = vadd.f32 %v1885_v5, %v1595_v1  ;;  %v3669_v1 = vld [vmem:[%s6157_s3 + $0x88] sm:$0xff]  ;;  %v1598_v4 = vadd.f32 %v5139_v24, %v1238_v0  ;;  %v1599_v5 = vadd.f32 %v5141_v23, %v1239_v11 }
 0x249   : > { %2575 = vmatpush.msra.mxu2 %v3669_v1 }
 0x24a   : > { %v5219_v51 = vadd.f32 %v5121_v18, %v1953_v39  ;;  %v2008_v44 = vadd.f32 %v5135_v58, %v1954_v15  ;;  %3632 = vmatmul.msk.f32.gmra.mxu0 %vm448_vm2, %v1682_v50  ;;  %3657 = vmatmul.msk.f32.gmra.mxu1 %vm448_vm2, %v1682_v50  ;;  %v5259_v50 = vpop.f32.mrf.mxu2  ;;  %v5261_v39 = vpop.f32.mrf.mxu3 }
 0x24c   : > { %v2055_v31 = vmax.f32 %v5219_v51, 0.0  ;;  %v2056_v35 = vmax.f32 %v2008_v44, 0.0  ;;  %v3820_v44 = vld [vmem:[%s4070_s19 + $0xf8] sm:$0xf]  ;;  %s3835_s19 = sshra.s32 %s3256_s17, 4  ;;  %s3836_s19 = int_to_ptr.hbm [resolvable:$true] %s3835_s19 }
 0x24d   : > { %v1688_v20 = vrot.slane %v3820_v44, 4  ;;  %v6222_v44 = vld [vmem:[#allocation6_spill] sm:$0xff]  ;;  %s3837_s20 = scalar_lea.hbm %s3836_s19, 8  ;;  %p3842_p0 = scmp.lt.s32.totalorder %s3836_s19, %s6161_s7 }
 0x24e   : > { %2159 = vrot.lane.b32.xlu2 %v2055_v31, %s3885_s16  ;;  %p3838_p11 = scmp.ne.s32.totalorder %s3836_s19, %s3837_s20  ;;  %p3843_p1 = scmp.lt.s32.totalorder %s3841_s29, %s3837_s20 }
 0x24f   : > { %2161 = vrot.lane.b32.xlu0 %v2056_v35, %s3885_s16  ;;  %v1799_v27 = vpop.f32.mrf.mxu0  ;;  %v1888_v28 = vpop.f32.mrf.mxu1  ;;  %v1601_v35 = vadd.f32 %v5171_v32, %v1241_v43  ;;  %v1689_v26 = vsel %vm497_vm0, %v1686_v6, %v1688_v20  ;;  %v1242_v32 = vadd.f32 %v4958_v30, %v4610_v59  ;;  %v6223_v20 = vld [vmem:[#allocation35_spill] sm:$0xff]  ;;  %vm3079_vm0 = vcmask 1046534  }
 0x250   : > { %v1955_v10 = vadd.f32 %v1799_v27, %v1596_v55  ;;  %v1956_v12 = vadd.f32 %v1888_v28, %v1597_v25  ;;  %p3839_p12 = pnand %p3838_p11, %p3962_p5  ;;  %p3844_p2 = por %p3843_p1, %p3842_p0 }
 0x252   : > { %v5243_v38 = vadd.f32 %v5121_v18, %v1955_v10  ;;  %v2010_v49 = vadd.f32 %v5135_v58, %v1956_v12  ;;  %3633 = vmatmul.msk.f32.gmra.mxu0 %vm448_vm2, %v1685_v46  ;;  %3658 = vmatmul.msk.f32.gmra.mxu1 %vm448_vm2, %v1685_v46  ;;  %v1458_v60 = vpop.f32.mrf.mxu2  ;;  %v1547_v27 = vpop.f32.mrf.mxu3  ;;  %v1243_v46 = vadd.f32 %v4960_v56, %v4612_v62  ;;  %p3840_p13 = pneg %p3839_p12 }
 0x254   : > { %v2057_v41 = vmax.f32 %v5243_v38, 0.0  ;;  %v2058_v8 = vmax.f32 %v2010_v49, 0.0  ;;  %v1602_v49 = vadd.f32 %v5194_v61, %v1242_v32  ;;  %v1603_v47 = vadd.f32 %v5196_v22, %v1243_v46  ;;  %v6221_v22 = vld [vmem:[#allocation34_spill] sm:$0xff]  ;;  %p3845_p3 = pnand %p3844_p2, %p3840_p13 }
 0x255   : > { %v1244_v61 = vadd.f32 %v4966_v7, %v4625_v17  ;;  %v1245_v1 = vadd.f32 %v6221_v22, %v4627_v42 }
 0x256   : > { %2165 = vrot.lane.b32.xlu2 %v2058_v8, %s3885_s16  ;;  %2163 = vrot.lane.b32.xlu1 %v2057_v41, %s3885_s16 }
 0x257   : > { %v1802_v53 = vpop.f32.mrf.mxu0  ;;  %v1891_v57 = vpop.f32.mrf.mxu1 }
 0x258   : > { %v1957_v63 = vadd.f32 %v1802_v53, %v1598_v4  ;;  %v1958_v15 = vadd.f32 %v1891_v57, %v1599_v5  ;;  %v3668_v53 = vld [vmem:[%s6157_s3 + $0x80] sm:$0xff]  ;;  %v1604_v57 = vadd.f32 %v5230_v3, %v1244_v61  ;;  %v1246_v3 = vadd.f32 %v6223_v20, %v6222_v44 }
 0x259   : > { %2576 = vmatpush.msra.mxu2 %v3668_v53 }
 0x25a   : > { %v5269_v24 = vadd.f32 %v5121_v18, %v1957_v63  ;;  %v2012_v23 = vadd.f32 %v5135_v58, %v1958_v15  ;;  %3634 = vmatmul.msk.f32.gmra.mxu0 %vm448_vm2, %v1687_v40  ;;  %3659 = vmatmul.msk.f32.gmra.mxu1 %vm448_vm2, %v1687_v40  ;;  %v1461_v30 = vpop.f32.mrf.mxu2  ;;  %v1550_v8 = vpop.f32.mrf.mxu3  ;;  %v1605_v40 = vadd.f32 %v5232_v33, %v1245_v1  ;;  %v6225_v33 = vld [vmem:[#allocation36_spill] sm:$0xff] }
 0x25b   : > { %v1247_v43 = vadd.f32 %v6225_v33, %v6224_v16 }
 0x25c   : > { %v2059_v9 = vmax.f32 %v5269_v24, 0.0  ;;  %v2060_v29 = vmax.f32 %v2012_v23, 0.0 }
 0x25e   : > { %2169 = vrot.lane.b32.xlu1 %v2060_v29, %s3885_s16  ;;  %2167 = vrot.lane.b32.xlu0 %v2059_v9, %s3885_s16 }
 0x25f   : > { %v1805_v55 = vpop.f32.mrf.mxu0  ;;  %v1894_v25 = vpop.f32.mrf.mxu1 }
 0x260   : > { %v1959_v36 = vadd.f32 %v1805_v55, %v1600_v19  ;;  %v1960_v48 = vadd.f32 %v1894_v25, %v1601_v35  ;;  %v1606_v25 = vadd.f32 %v5259_v50, %v1246_v3 }
 0x262   : > { %v5288_v28 = vadd.f32 %v5121_v18, %v1959_v36  ;;  %v2014_v37 = vadd.f32 %v5135_v58, %v1960_v48  ;;  %3635 = vmatmul.msk.f32.gmra.mxu0 %vm448_vm2, %v1689_v26  ;;  %3660 = vmatmul.msk.f32.gmra.mxu1 %vm448_vm2, %v1689_v26  ;;  %v1464_v29 = vpop.f32.mrf.mxu2  ;;  %v1553_v19 = vpop.f32.mrf.mxu3  ;;  %v1607_v26 = vadd.f32 %v5261_v39, %v1247_v43  ;;  %v6229_v39 = vld [vmem:[#allocation38_spill] sm:$0xff]  ;;  %vm3084_vm2 = vcmask 523264  }
 0x264   : > { %v2061_v10 = vmax.f32 %v5288_v28, 0.0  ;;  %v2062_v12 = vmax.f32 %v2014_v37, 0.0 }
 0x266   : > { %2173 = vrot.lane.b32.xlu0 %v2062_v12, %s3885_s16  ;;  %2171 = vrot.lane.b32.xlu2 %v2061_v10, %s3885_s16 }
 0x267   : > { %v1808_v6 = vpop.f32.mrf.mxu0  ;;  %v1897_v0 = vpop.f32.mrf.mxu1 }
 0x268   : > { %v1961_v11 = vadd.f32 %v1808_v6, %v1602_v49  ;;  %v1962_v59 = vadd.f32 %v1897_v0, %v1603_v47  ;;  %v6226_v49 = vld [vmem:[#allocation8_spill] sm:$0xff]  ;;  %v6227_v47 = vld [vmem:[#allocation37_spill] sm:$0xff] }
 0x269   : > { %v1248_v50 = vadd.f32 %v6227_v47, %v6226_v49  ;;  %v6228_v6 = vld [vmem:[#allocation9_spill] sm:$0xff] }
 0x26a   : > { %v5305_v62 = vadd.f32 %v5121_v18, %v1961_v11  ;;  %v2016_v56 = vadd.f32 %v5135_v58, %v1962_v59  ;;  %v1249_v0 = vadd.f32 %v6229_v39, %v6228_v6  ;;  %v1467_v22 = vpop.f32.mrf.mxu2  ;;  %v1556_v1 = vpop.f32.mrf.mxu3  ;;  %v6236_v47 = vld [vmem:[#allocation13_spill] sm:$0xff] }
 0x26c   : > { %v2063_v4 = vmax.f32 %v5305_v62, 0.0  ;;  %v2064_v5 = vmax.f32 %v2016_v56, 0.0  ;;  %v1608_v56 = vadd.f32 %v1458_v60, %v1248_v50  ;;  %v1609_v61 = vadd.f32 %v1547_v27, %v1249_v0  ;;  %v6231_v60 = vld [vmem:[#allocation39_spill] sm:$0xff]  ;;  %v6237_v50 = vld [vmem:[#allocation42_spill] sm:$0xff] }
 0x26d   : > { %v1253_v6 = vadd.f32 %v6237_v50, %v6236_v47  ;;  %v3665_v47 = vld [vmem:[%s6157_s3 + $0x68] sm:$0xff]  ;;  %v2520_v50 = vld [vmem:[%s6157_s3 + $0x20] sm:$0xff] }
 0x26e   : > { %2177 = vrot.lane.b32.xlu2 %v2064_v5, %s3885_s16  ;;  %2175 = vrot.lane.b32.xlu1 %v2063_v4, %s3885_s16 }
 0x26f   : > { %v1811_v17 = vpop.f32.mrf.mxu0  ;;  %v1900_v42 = vpop.f32.mrf.mxu1 }
 0x270   : > { %v1963_v7 = vadd.f32 %v1811_v17, %v1604_v57  ;;  %v1964_v63 = vadd.f32 %v1900_v42, %v1605_v40 }
 0x272   : > { %v5323_v15 = vadd.f32 %v5121_v18, %v1963_v7  ;;  %v2018_v23 = vadd.f32 %v5135_v58, %v1964_v63  ;;  %v6230_v7 = vld [vmem:[#allocation10_spill] sm:$0xff]  ;;  %v6232_v63 = vld [vmem:[#allocation11_spill] sm:$0xff] }
 0x273   : > { %v1250_v27 = vadd.f32 %v6231_v60, %v6230_v7  ;;  %v2523_v60 = vld [vmem:[%s6157_s3 + $0x38] sm:$0xff] }
 0x274   : > { %v2065_v35 = vmax.f32 %v5323_v15, 0.0  ;;  %v2066_v55 = vmax.f32 %v2018_v23, 0.0  ;;  %v6233_v23 = vld [vmem:[#allocation40_spill] sm:$0xff] }
 0x275   : > { %v1251_v44 = vadd.f32 %v6233_v23, %v6232_v63  ;;  %v1610_v16 = vadd.f32 %v1461_v30, %v1250_v27  ;;  %v6238_v27 = vld [vmem:[#allocation14_spill] sm:$0xff]  ;;  %v6239_v63 = vld [vmem:[#allocation43_spill] sm:$0xff] }
 0x276   : > { %2181 = vrot.lane.b32.xlu1 %v2066_v55, %s3885_s16  ;;  %2179 = vrot.lane.b32.xlu0 %v2065_v35, %s3885_s16  ;;  %v1254_v23 = vadd.f32 %v6239_v63, %v6238_v27  ;;  %v3664_v63 = vld [vmem:[%s6157_s3 + $0x60] sm:$0xff] }
 0x277   : > { %v1814_v36 = vpop.f32.mrf.mxu0  ;;  %v1903_v48 = vpop.f32.mrf.mxu1  ;;  %v1611_v33 = vadd.f32 %v1550_v8, %v1251_v44  ;;  %v3667_v8 = vld [vmem:[%s6157_s3 + $0x78] sm:$0xff] }
 0x278   : > { %v1965_v37 = vadd.f32 %v1814_v36, %v1606_v25  ;;  %v1966_v32 = vadd.f32 %v1903_v48, %v1607_v26  ;;  %v5363_v25 = vpop.f32.mrf.mxu2  ;;  %v5365_v26 = vpop.f32.mrf.mxu3  ;;  %2577 = vmatpush.msra.mxu2 %v3667_v8  ;;  %v6240_v44 = vld [vmem:[#allocation15_spill] sm:$0xff] }
 0x27a   : > { %v5338_v46 = vadd.f32 %v5121_v18, %v1965_v37  ;;  %v2020_v12 = vadd.f32 %v5135_v58, %v1966_v32  ;;  %v6234_v32 = vld [vmem:[#allocation12_spill] sm:$0xff] }
 0x27c   : > { %v2067_v11 = vmax.f32 %v5338_v46, 0.0  ;;  %v2068_v59 = vmax.f32 %v2020_v12, 0.0  ;;  %v6235_v12 = vld [vmem:[#allocation41_spill] sm:$0xff] }
 0x27d   : > { %v1252_v49 = vadd.f32 %v6235_v12, %v6234_v32  ;;  %v3666_v32 = vld [vmem:[%s6157_s3 + $0x70] sm:$0xff]  ;;  %v2521_v12 = vld [vmem:[%s6157_s3 + $0x28] sm:$0xff] }
 0x27e   : > { %2185 = vrot.lane.b32.xlu0 %v2068_v59, %s3885_s16  ;;  %2183 = vrot.lane.b32.xlu2 %v2067_v11, %s3885_s16 }
 0x27f   : > { %v1817_v5 = vpop.f32.mrf.mxu0  ;;  %v1906_v53 = vpop.f32.mrf.mxu1  ;;  %v1612_v59 = vadd.f32 %v1464_v29, %v1252_v49  ;;  %2578 = vmatpush.msra.mxu2 %v3666_v32  ;;  %v2517_v32 = vld [vmem:[%s6157_s3 + $0x8] sm:$0xff] }
 0x280   : > { %v1967_v57 = vadd.f32 %v1817_v5, %v1608_v56  ;;  %v1968_v40 = vadd.f32 %v1906_v53, %v1609_v61  ;;  %v1613_v56 = vadd.f32 %v1553_v19, %v1253_v6  ;;  %v5388_v7 = vpop.f32.mrf.mxu3 }
 0x281   : > { %2579 = vmatpush.msra.mxu2 %v3665_v47 }
 0x282   : > { %v5351_v17 = vadd.f32 %v5121_v18, %v1967_v57  ;;  %v2022_v42 = vadd.f32 %v5135_v58, %v1968_v40  ;;  %v2524_v40 = vld [vmem:[%s6157_s3 + $0x40] sm:$0xff] }
 0x283   : > { %2640 = vmatpush.msra.mxu3 %v2524_v40  ;;  %2580 = vmatpush.msra.mxu2 %v3664_v63 }
 0x284   : > { %v2069_v20 = vmax.f32 %v5351_v17, 0.0  ;;  %v2070_v3 = vmax.f32 %v2022_v42, 0.0  ;;  %v5386_v42 = vpop.f32.mrf.mxu2 }
 0x285   : > { %2641 = vmatpush.msra.mxu3 %v2523_v60 }
 0x286   : > { %2189 = vrot.lane.b32.xlu2 %v2070_v3, %s3885_s16  ;;  %2187 = vrot.lane.b32.xlu1 %v2069_v20, %s3885_s16  ;;  %v6241_v3 = vld [vmem:[#allocation44_spill] sm:$0xff] }
 0x287   : > { %v1820_v43 = vpop.f32.mrf.mxu0  ;;  %v1909_v55 = vpop.f32.mrf.mxu1 }
 0x288   : > { %v1969_v36 = vadd.f32 %v1820_v43, %v1610_v16  ;;  %v1970_v48 = vadd.f32 %v1909_v55, %v1611_v33  ;;  %v1255_v16 = vadd.f32 %v6241_v3, %v6240_v44  ;;  %v2522_v55 = vld [vmem:[%s6157_s3 + $0x30] sm:$0xff] }
 0x289   : > { %2642 = vmatpush.msra.mxu3 %v2522_v55 }
 0x28a   : > { %v5368_v37 = vadd.f32 %v5121_v18, %v1969_v36  ;;  %v2024_v30 = vadd.f32 %v5135_v58, %v1970_v48  ;;  %v1614_v36 = vadd.f32 %v1467_v22, %v1254_v23  ;;  %v1615_v48 = vadd.f32 %v1556_v1, %v1255_v16  ;;  %v2519_v23 = vld [vmem:[%s6157_s3 + $0x18] sm:$0xff] }
 0x28b   : > { %2643 = vmatpush.msra.mxu3 %v2521_v12  ;;  %v3663_v16 = vld [vmem:[%s6157_s3 + $0x58] sm:$0xff] }
 0x28c   : > { %v2071_v39 = vmax.f32 %v5368_v37, 0.0  ;;  %v2072_v0 = vmax.f32 %v2024_v30, 0.0  ;;  %v5429_v40 = vpop.f32.mrf.mxu2  ;;  %2581 = vmatpush.msra.mxu2 %v3663_v16 }
 0x28d   : > { %2644 = vmatpush.msra.mxu3 %v2520_v50  ;;  %v3661_v50 = vld [vmem:[%s6157_s3 + $0x48] sm:$0xff] }
 0x28e   : > { %2193 = vrot.lane.b32.xlu1 %v2072_v0, %s3885_s16  ;;  %2191 = vrot.lane.b32.xlu0 %v2071_v39, %s3885_s16 }
 0x28f   : > { %v1823_v61 = vpop.f32.mrf.mxu0  ;;  %v1912_v5 = vpop.f32.mrf.mxu1  ;;  %2645 = vmatpush.msra.mxu3 %v2519_v23 }
 0x290   : > { %v1971_v53 = vadd.f32 %v1823_v61, %v1612_v59  ;;  %v1972_v57 = vadd.f32 %v1912_v5, %v1613_v56  ;;  %v6242_v59 = vld [vmem:[#allocation16_spill] sm:$0xff]  ;;  %v6243_v56 = vld [vmem:[#allocation45_spill] sm:$0xff] }
 0x291   : > { %v1256_v61 = vadd.f32 %v6243_v56, %v6242_v59  ;;  %v6244_v5 = vld [vmem:[#allocation17_spill] sm:$0xff]  ;;  %v6246_v59 = vld [vmem:[#allocation18_spill] sm:$0xff] }
 0x292   : > { %v5391_v29 = vadd.f32 %v5121_v18, %v1971_v53  ;;  %v2026_v19 = vadd.f32 %v5135_v58, %v1972_v57  ;;  %v6245_v53 = vld [vmem:[#allocation46_spill] sm:$0xff] }
 0x293   : > { %v1257_v57 = vadd.f32 %v6245_v53, %v6244_v5  ;;  %v1616_v44 = vadd.f32 %v5363_v25, %v1256_v61  ;;  %v6248_v61 = vld [vmem:[#allocation19_spill] sm:$0xff]  ;;  %v6249_v5 = vld [vmem:[#allocation48_spill] sm:$0xff] }
 0x294   : > { %v2073_v33 = vmax.f32 %v5391_v29, 0.0  ;;  %v2074_v43 = vmax.f32 %v2026_v19, 0.0  ;;  %v5431_v19 = vpop.f32.mrf.mxu3  ;;  %v1259_v53 = vadd.f32 %v6249_v5, %v6248_v61  ;;  %v1479_v23 = vpop.f32.mrf.mxu2 }
 0x295   : > { %v1617_v3 = vadd.f32 %v5365_v26, %v1257_v57 }
 0x296   : > { %2197 = vrot.lane.b32.xlu0 %v2074_v43, %s3885_s16  ;;  %2195 = vrot.lane.b32.xlu2 %v2073_v33, %s3885_s16  ;;  %v2518_v43 = vld [vmem:[%s6157_s3 + $0x10] sm:$0xff]  ;;  %v1619_v63 = vadd.f32 %v5388_v7, %v1259_v53 }
 0x297   : > { %v1826_v30 = vpop.f32.mrf.mxu0  ;;  %v1915_v8 = vpop.f32.mrf.mxu1  ;;  %2646 = vmatpush.msra.mxu3 %v2518_v43 }
 0x298   : > { %v1973_v49 = vadd.f32 %v1826_v30, %v1614_v36  ;;  %v1974_v22 = vadd.f32 %v1915_v8, %v1615_v48  ;;  %v2152_v1 = vpop.permute.xlu2 %2151  ;;  %v3662_v8 = vld [vmem:[%s6157_s3 + $0x50] sm:$0xff] }
 0x299   : > { %2582 = vmatpush.msra.mxu2 %v3662_v8  ;;  %2647 = vmatpush.msra.mxu3 %v2517_v32  ;;  %v6250_v32 = vld [vmem:[#allocation20_spill] sm:$0xff] }
 0x29a   : > { %v5422_v6 = vadd.f32 %v5121_v18, %v1973_v49  ;;  %v2028_v0 = vadd.f32 %v5135_v58, %v1974_v22 }
 0x29b   : > { %2583 = vmatpush.msra.mxu2 %v3661_v50  ;;  %v6253_v50 = vld [vmem:[#allocation50_spill] sm:$0xff] }
 0x29c   : > { %v2075_v60 = vmax.f32 %v5422_v6, 0.0  ;;  %v2076_v27 = vmax.f32 %v2028_v0, 0.0  ;;  %v2516_v0 = vld [vmem:[%s6157_s3] sm:$0xff]  ;;  %v3694_v6 = vld [vmem:[%s6157_s3 + $0xd0] sm:$0xff] }
 0x29d   : > { %2648 = vmatpush.msra.mxu3 %v2516_v0  ;;  %2723 = vmatpush.msrb.mxu2 %v3694_v6 }
 0x29e   : > { %2201 = vrot.lane.b32.xlu2 %v2076_v27, %s3885_s16  ;;  %2199 = vrot.lane.b32.xlu1 %v2075_v60, %s3885_s16 }
 0x29f   : > { %v1829_v55 = vpop.f32.mrf.mxu0  ;;  %v1918_v36 = vpop.f32.mrf.mxu1 }
 0x2a0   : > { %v1975_v25 = vadd.f32 %v1829_v55, %v1616_v44  ;;  %v1976_v26 = vadd.f32 %v1918_v36, %v1617_v3  ;;  %v2144_v48 = vpop.permute.xlu0 %2143  ;;  %v2154_v30 = vpop.permute.xlu2 %2153 }
 0x2a1   : > { %v2242_v12 = vsel %vm2239_vm5, %v2152_v1, %v2154_v30  ;;  %v6247_v1 = vld [vmem:[#allocation47_spill] sm:$0xff]  ;;  %v1568_v44 = vpop.f32.mrf.mxu3 }
 0x2a2   : > { %v5460_v49 = vadd.f32 %v5121_v18, %v1975_v25  ;;  %v2030_v22 = vadd.f32 %v5135_v58, %v1976_v26  ;;  %v2290_v47 = vmax.f32 %v2051_v45, %v2242_v12  ;;  %v1258_v56 = vadd.f32 %v6247_v1, %v6246_v59  ;;  %v6251_v12 = vld [vmem:[#allocation49_spill] sm:$0xff] }
 0x2a4   : > { %v2077_v57 = vmax.f32 %v5460_v49, 0.0  ;;  %v2078_v21 = vmax.f32 %v2030_v22, 0.0  ;;  %v2452_v45 = vrot.slane %v2290_v47, 1  ;;  %v1618_v27 = vadd.f32 %v5386_v42, %v1258_v56 }
 0x2a5   : > { %v1260_v22 = vadd.f32 %v6251_v12, %v6250_v32 }
 0x2a6   : > { %v2468_v3 = vmax.f32 %v2290_v47, %v2452_v45  ;;  %2205 = vrot.lane.b32.xlu1 %v2078_v21, %s3885_s16  ;;  %2203 = vrot.lane.b32.xlu0 %v2077_v57, %s3885_s16  ;;  %v6252_v47 = vld [vmem:[#allocation21_spill] sm:$0xff] }
 0x2a7   : > { %v1832_v16 = vpop.f32.mrf.mxu0  ;;  %v1921_v43 = vpop.f32.mrf.mxu1  ;;  %v1261_v0 = vadd.f32 %v6253_v50, %v6252_v47  ;;  %v1620_v56 = vadd.f32 %v5429_v40, %v1260_v22 }
 0x2a8   : > { %2476 = vst.msk [vmem:[#allocation2 + $0x8] sm:$0x1] %vm2344_vm6, %v2468_v3  ;;  %v1977_v55 = vadd.f32 %v1832_v16, %v1618_v27  ;;  %v1978_v42 = vadd.f32 %v1921_v43, %v1619_v63  ;;  %v2146_v36 = vpop.permute.xlu0 %2145  ;;  %v2148_v7 = vpop.permute.xlu1 %2147  ;;  %v6254_v43 = vld [vmem:[#allocation22_spill] sm:$0xff] }
 0x2a9   : > { %2484 = vst.msk [vmem:[#allocation2 + $0x7] sm:$0x4] %vm2353_vm7, %v2468_v3  ;;  %v2240_v25 = vsel %vm2239_vm5, %v2144_v48, %v2146_v36  ;;  %v1621_v61 = vadd.f32 %v5431_v19, %v1261_v0  ;;  %v1482_v27 = vpop.f32.mrf.mxu2  ;;  %v1571_v19 = vpop.f32.mrf.mxu3  ;;  %v6256_v36 = vld [vmem:[#allocation23_spill] sm:$0xff] }
 0x2aa   : > { %2492 = vst.msk [vmem:[#allocation2 + $0x6] sm:$0x10] %vm2362_vm8, %v2468_v3  ;;  %v5487_v26 = vadd.f32 %v5121_v18, %v1977_v55  ;;  %v2032_v30 = vadd.f32 %v5135_v58, %v1978_v42  ;;  %v2288_v8 = vmax.f32 %v2047_v14, %v2240_v25  ;;  %v6255_v55 = vld [vmem:[#allocation51_spill] sm:$0xff]  ;;  %v6257_v25 = vld [vmem:[#allocation52_spill] sm:$0xff] }
 0x2ab   : > { %2500 = vst.msk [vmem:[#allocation2 + $0x5] sm:$0x40] %vm2371_vm9, %v2468_v3  ;;  %v1262_v42 = vadd.f32 %v6255_v55, %v6254_v43 }
 0x2ac   : > { %v2079_v48 = vmax.f32 %v5487_v26, 0.0  ;;  %v2080_v59 = vmax.f32 %v2032_v30, 0.0  ;;  %v2320_v1 = vrot.slane %v2288_v8, 1 }
 0x2ad   : > { %v1622_v12 = vadd.f32 %v1479_v23, %v1262_v42 }
 0x2ae   : > { %v2336_v5 = vmax.f32 %v2288_v8, %v2320_v1  ;;  %2209 = vrot.lane.b32.xlu0 %v2080_v59, %s3885_s16  ;;  %2207 = vrot.lane.b32.xlu2 %v2079_v48, %s3885_s16 }
 0x2af   : > { %v1835_v13 = vpop.f32.mrf.mxu0  ;;  %v1924_v14 = vpop.f32.mrf.mxu1 }
 0x2b0   : > { %2345 = vst.msk [vmem:[#allocation2] sm:$0x1] %vm2344_vm6, %v2336_v5  ;;  %v1979_v53 = vadd.f32 %v1835_v13, %v1620_v56  ;;  %v1980_v21 = vadd.f32 %v1924_v14, %v1621_v61  ;;  %v2150_v45 = vpop.permute.xlu1 %2149  ;;  %v6259_v13 = vld [vmem:[#allocation53_spill] sm:$0xff] }
 0x2b1   : > { %2354 = vst.msk [vmem:[#allocation2 - $0x1] sm:$0x4] %vm2353_vm7, %v2336_v5  ;;  %v2241_v40 = vsel %vm2239_vm5, %v2148_v7, %v2150_v45  ;;  %v1263_v7 = vadd.f32 %v6257_v25, %v6256_v36  ;;  %v2160_v25 = vpop.permute.xlu2 %2159 }
 0x2b2   : > { %2363 = vst.msk [vmem:[#allocation2 - $0x2] sm:$0x10] %vm2362_vm8, %v2336_v5  ;;  %v5509_v63 = vadd.f32 %v5121_v18, %v1979_v53  ;;  %v2034_v3 = vadd.f32 %v5135_v58, %v1980_v21  ;;  %v2289_v16 = vmax.f32 %v2049_v54, %v2241_v40  ;;  %v6260_v53 = vld [vmem:[#allocation25_spill] sm:$0xff]  ;;  %v6261_v21 = vld [vmem:[#allocation54_spill] sm:$0xff]  ;;  %v1485_v40 = vpop.f32.mrf.mxu2 }
 0x2b3   : > { %2372 = vst.msk [vmem:[#allocation2 - $0x3] sm:$0x40] %vm2371_vm9, %v2336_v5  ;;  %v1623_v22 = vadd.f32 %v1568_v44, %v1263_v7  ;;  %v6258_v5 = vld [vmem:[#allocation24_spill] sm:$0xff]  ;;  %v1265_v45 = vadd.f32 %v6261_v21, %v6260_v53 }
 0x2b4   : > { %v2081_v30 = vmax.f32 %v5509_v63, 0.0  ;;  %v2082_v8 = vmax.f32 %v2034_v3, 0.0  ;;  %v2388_v32 = vrot.slane %v2289_v16, 1  ;;  %v1264_v14 = vadd.f32 %v6259_v13, %v6258_v5  ;;  %v1574_v3 = vpop.f32.mrf.mxu3 }
 0x2b5   : > { %v1625_v36 = vadd.f32 %v1571_v19, %v1265_v45 }
 0x2b6   : > { %v2404_v47 = vmax.f32 %v2289_v16, %v2388_v32  ;;  %2213 = vrot.lane.b32.xlu2 %v2082_v8, %s3885_s16  ;;  %2211 = vrot.lane.b32.xlu1 %v2081_v30, %s3885_s16  ;;  %v1624_v42 = vadd.f32 %v1482_v27, %v1264_v14 }
 0x2b7   : > { %v1838_v34 = vpop.f32.mrf.mxu0  ;;  %v1927_v54 = vpop.f32.mrf.mxu1 }
 0x2b8   : > { %2412 = vst.msk [vmem:[#allocation2 + $0x4] sm:$0x1] %vm2344_vm6, %v2404_v47  ;;  %v1981_v50 = vadd.f32 %v1838_v34, %v1622_v12  ;;  %v1982_v0 = vadd.f32 %v1927_v54, %v1623_v22  ;;  %v2158_v59 = vpop.permute.xlu1 %2157 }
 0x2b9   : > { %2420 = vst.msk [vmem:[#allocation2 + $0x3] sm:$0x4] %vm2353_vm7, %v2404_v47  ;;  %v2156_v1 = vpop.permute.xlu0 %2155 }
 0x2ba   : > { %2428 = vst.msk [vmem:[#allocation2 + $0x2] sm:$0x10] %vm2362_vm8, %v2404_v47  ;;  %v5528_v23 = vadd.f32 %v5121_v18, %v1981_v50  ;;  %v2036_v44 = vadd.f32 %v5135_v58, %v1982_v0  ;;  %v2243_v56 = vsel %vm2239_vm5, %v2156_v1, %v2158_v59  ;;  %v6262_v50 = vld [vmem:[#allocation26_spill] sm:$0xff]  ;;  %v6263_v0 = vld [vmem:[#allocation55_spill] sm:$0xff]  ;;  %v1488_v21 = vpop.f32.mrf.mxu2 }
 0x2bb   : > { %2436 = vst.msk [vmem:[#allocation2 + $0x1] sm:$0x40] %vm2371_vm9, %v2404_v47  ;;  %v2291_v61 = vmax.f32 %v2053_v2, %v2243_v56  ;;  %v1266_v59 = vadd.f32 %v6263_v0, %v6262_v50  ;;  %v6264_v1 = vld [vmem:[#allocation27_spill] sm:$0xff] }
 0x2bc   : > { %v2083_v16 = vmax.f32 %v5528_v23, 0.0  ;;  %v2084_v43 = vmax.f32 %v2036_v44, 0.0  ;;  %v6265_v44 = vld [vmem:[#allocation56_spill] sm:$0xff]  ;;  %v1577_v45 = vpop.f32.mrf.mxu3 }
 0x2bd   : > { %v2321_v55 = vrot.slane %v2291_v61, 1  ;;  %v1267_v56 = vadd.f32 %v6265_v44, %v6264_v1  ;;  %v1626_v14 = vadd.f32 %v1485_v40, %v1266_v59 }
 0x2be   : > { %2217 = vrot.lane.b32.xlu1 %v2084_v43, %s3885_s16  ;;  %2215 = vrot.lane.b32.xlu0 %v2083_v16, %s3885_s16 }
 0x2bf   : > { %v2337_v52 = vmax.f32 %v2291_v61, %v2321_v55  ;;  %v1841_v2 = vpop.f32.mrf.mxu0  ;;  %v1930_v7 = vpop.f32.mrf.mxu1  ;;  %v1627_v53 = vadd.f32 %v1574_v3, %v1267_v56 }
 0x2c0   : > { %v1983_v8 = vadd.f32 %v1841_v2, %v1624_v42  ;;  %v1984_v32 = vadd.f32 %v1930_v7, %v1625_v36  ;;  %v2166_v55 = vpop.permute.xlu2 %2165  ;;  %v6266_v7 = vld [vmem:[#allocation28_spill] sm:$0xff] }
 0x2c1   : > { %2346 = vst.msk [vmem:[#allocation2 + $0x10] sm:$0x1] %vm2344_vm6, %v2337_v52  ;;  %v2162_v12 = vpop.permute.xlu0 %2161 }
 0x2c2   : > { %2355 = vst.msk [vmem:[#allocation2 + $0xf] sm:$0x4] %vm2353_vm7, %v2337_v52  ;;  %v5547_v27 = vadd.f32 %v5121_v18, %v1983_v8  ;;  %v2038_v19 = vadd.f32 %v5135_v58, %v1984_v32  ;;  %v2525_v22 = vld [vmem:[#allocation2 + $0x1] sm:$0xff]  ;;  %v2244_v34 = vsel %vm2239_vm5, %v2160_v25, %v2162_v12 }
 0x2c3   : > { %v2508_v47 = vld [vmem:[#allocation2] sm:$0xff]  ;;  %2364 = vst.msk [vmem:[#allocation2 + $0xe] sm:$0x10] %vm2362_vm8, %v2337_v52  ;;  %3670 = vmatmul.msk.f32.vlgmr.msra.gmra.mxu2 %vm2543_vm10, %v2525_v22  ;;  %v2292_v54 = vmax.f32 %v2055_v31, %v2244_v34  ;;  %v6267_v8 = vld [vmem:[#allocation57_spill] sm:$0xff] }
 0x2c4   : > { %3678 = vmatmul.msk.f32.vlgmr.msra.gmra.mxu3 %vm2543_vm10, %v2508_v47  ;;  %2373 = vst.msk [vmem:[#allocation2 + $0xd] sm:$0x40] %vm2371_vm9, %v2337_v52  ;;  %v2085_v61 = vmax.f32 %v5547_v27, 0.0  ;;  %v2086_v5 = vmax.f32 %v2038_v19, 0.0  ;;  %v1268_v32 = vadd.f32 %v6267_v8, %v6266_v7  ;;  %v6268_v12 = vld [vmem:[#allocation29_spill] sm:$0xff]  ;;  %v6269_v19 = vld [vmem:[#allocation58_spill] sm:$0xff] }
 0x2c5   : > { %v2389_v13 = vrot.slane %v2292_v54, 1  ;;  %v1269_v22 = vadd.f32 %v6269_v19, %v6268_v12 }
 0x2c6   : > { %2221 = vrot.lane.b32.xlu0 %v2086_v5, %s3885_s16  ;;  %2219 = vrot.lane.b32.xlu2 %v2085_v61, %s3885_s16  ;;  %v1628_v50 = vadd.f32 %v1488_v21, %v1268_v32 }
 0x2c7   : > { %v2405_v51 = vmax.f32 %v2292_v54, %v2389_v13  ;;  %v1844_v31 = vpop.f32.mrf.mxu0  ;;  %v1933_v43 = vpop.f32.mrf.mxu1  ;;  %v1629_v0 = vadd.f32 %v1577_v45, %v1269_v22 }
 0x2c8   : > { %v1985_v42 = vadd.f32 %v1844_v31, %v1626_v14  ;;  %v1986_v36 = vadd.f32 %v1933_v43, %v1627_v53  ;;  %v2164_v25 = vpop.permute.xlu1 %2163  ;;  %v1491_v13 = vpop.f32.mrf.mxu2  ;;  %v6270_v31 = vld [vmem:[#allocation30_spill] sm:$0xff]  ;;  %v6271_v43 = vld [vmem:[#allocation59_spill] sm:$0xff] }
 0x2c9   : > { %2413 = vst.msk [vmem:[#allocation2 + $0x14] sm:$0x1] %vm2344_vm6, %v2405_v51  ;;  %v2245_v40 = vsel %vm2239_vm5, %v2164_v25, %v2166_v55  ;;  %v1580_v14 = vpop.f32.mrf.mxu3  ;;  %v1270_v55 = vadd.f32 %v6271_v43, %v6270_v31  ;;  %v6273_v25 = vld [vmem:[#allocation60_spill] sm:$0xff]  ;;  %v2172_v12 = vpop.permute.xlu2 %2171 }
 0x2ca   : > { %2421 = vst.msk [vmem:[#allocation2 + $0x13] sm:$0x4] %vm2353_vm7, %v2405_v51  ;;  %v5570_v3 = vadd.f32 %v5121_v18, %v1985_v42  ;;  %v2040_v52 = vadd.f32 %v5135_v58, %v1986_v36  ;;  %v2293_v2 = vmax.f32 %v2057_v41, %v2245_v40  ;;  %v6272_v36 = vld [vmem:[#allocation31_spill] sm:$0xff] }
 0x2cb   : > { %2429 = vst.msk [vmem:[#allocation2 + $0x12] sm:$0x10] %vm2362_vm8, %v2405_v51  ;;  %v1271_v40 = vadd.f32 %v6273_v25, %v6272_v36  ;;  %v1630_v8 = vadd.f32 %v1491_v13, %v1270_v55 }
 0x2cc   : > { %2437 = vst.msk [vmem:[#allocation2 + $0x11] sm:$0x40] %vm2371_vm9, %v2405_v51  ;;  %v2087_v47 = vmax.f32 %v5570_v3, 0.0  ;;  %v2088_v34 = vmax.f32 %v2040_v52, 0.0  ;;  %v2453_v54 = vrot.slane %v2293_v2, 1  ;;  %v3706_v3 = vld [vmem:[%s6157_s3 + $0xf0] sm:$0xff] }
 0x2cd   : > { %v1631_v32 = vadd.f32 %v1580_v14, %v1271_v40  ;;  %v6276_v14 = vld [vmem:[#allocation33_spill] sm:$0xff] }
 0x2ce   : > { %v2469_v59 = vmax.f32 %v2293_v2, %v2453_v54  ;;  %2225 = vrot.lane.b32.xlu2 %v2088_v34, %s3885_s16  ;;  %2223 = vrot.lane.b32.xlu1 %v2087_v47, %s3885_s16 }
 0x2cf   : > { %v1847_v38 = vpop.f32.mrf.mxu0  ;;  %v1936_v41 = vpop.f32.mrf.mxu1 }
 0x2d0   : > { %2477 = vst.msk [vmem:[#allocation2 + $0x18] sm:$0x1] %vm2344_vm6, %v2469_v59  ;;  %v1987_v1 = vadd.f32 %v1847_v38, %v1628_v50  ;;  %v1988_v44 = vadd.f32 %v1936_v41, %v1629_v0  ;;  %v2170_v56 = vpop.permute.xlu1 %2169  ;;  %v2168_v5 = vpop.permute.xlu0 %2167 }
 0x2d1   : > { %2485 = vst.msk [vmem:[#allocation2 + $0x17] sm:$0x4] %vm2353_vm7, %v2469_v59  ;;  %v2246_v53 = vsel %vm2239_vm5, %v2168_v5, %v2170_v56  ;;  %v1494_v5 = vpop.f32.mrf.mxu2  ;;  %v1583_v13 = vpop.f32.mrf.mxu3 }
 0x2d2   : > { %2493 = vst.msk [vmem:[#allocation2 + $0x16] sm:$0x10] %vm2362_vm8, %v2469_v59  ;;  %v5591_v21 = vadd.f32 %v5121_v18, %v1987_v1  ;;  %v2042_v45 = vadd.f32 %v5135_v58, %v1988_v44  ;;  %v2294_v51 = vmax.f32 %v2059_v9, %v2246_v53  ;;  %v6274_v1 = vld [vmem:[#allocation32_spill] sm:$0xff]  ;;  %v6275_v44 = vld [vmem:[#allocation61_spill] sm:$0xff]  ;;  %v6277_v53 = vld [vmem:[#allocation62_spill] sm:$0xff]  ;;  %v2178_v25 = vpop.permute.xlu2 %2177 }
 0x2d3   : > { %2501 = vst.msk [vmem:[#allocation2 + $0x15] sm:$0x40] %vm2371_vm9, %v2469_v59  ;;  %v2509_v42 = vld [vmem:[#allocation2 + $0x10] sm:$0xff]  ;;  %v1272_v56 = vadd.f32 %v6275_v44, %v6274_v1 }
 0x2d4   : > { %v2089_v52 = vmax.f32 %v5591_v21, 0.0  ;;  %v2090_v2 = vmax.f32 %v2042_v45, 0.0  ;;  %3679 = vmatmul.msk.f32.gmra.mxu3 %vm2543_vm10, %v2509_v42  ;;  %v2322_v7 = vrot.slane %v2294_v51, 1  ;;  %v1273_v45 = vadd.f32 %v6277_v53, %v6276_v14 }
 0x2d5   : > { %v1632_v55 = vadd.f32 %v1494_v5, %v1272_v56 }
 0x2d6   : > { %v2338_v24 = vmax.f32 %v2294_v51, %v2322_v7  ;;  %2229 = vrot.lane.b32.xlu1 %v2090_v2, %s3885_s16  ;;  %2227 = vrot.lane.b32.xlu0 %v2089_v52, %s3885_s16  ;;  %v1633_v42 = vadd.f32 %v1583_v13, %v1273_v45 }
 0x2d7   : > { %v1850_v9 = vpop.f32.mrf.mxu0  ;;  %v1939_v19 = vpop.f32.mrf.mxu1  ;;  %v2526_v22 = vld [vmem:[#allocation2 + $0x11] sm:$0xff] }
 0x2d8   : > { %2347 = vst.msk [vmem:[#allocation2 + $0x20] sm:$0x1] %vm2344_vm6, %v2338_v24  ;;  %v1989_v34 = vadd.f32 %v1850_v9, %v1630_v8  ;;  %v1990_v54 = vadd.f32 %v1939_v19, %v1631_v32  ;;  %3671 = vmatmul.msk.f32.gmra.mxu2 %vm2543_vm10, %v2526_v22  ;;  %v2174_v50 = vpop.permute.xlu0 %2173 }
 0x2d9   : > { %2356 = vst.msk [vmem:[#allocation2 + $0x1f] sm:$0x4] %vm2353_vm7, %v2338_v24  ;;  %v2247_v0 = vsel %vm2239_vm5, %v2172_v12, %v2174_v50 }
 0x2da   : > { %2365 = vst.msk [vmem:[#allocation2 + $0x1e] sm:$0x10] %vm2362_vm8, %v2338_v24  ;;  %v5613_v59 = vadd.f32 %v5121_v18, %v1989_v34  ;;  %v2044_v38 = vadd.f32 %v5135_v58, %v1990_v54  ;;  %v2295_v41 = vmax.f32 %v2061_v10, %v2247_v0  ;;  %v2184_v0 = vpop.permute.xlu2 %2183 }
 0x2db   : > { %2374 = vst.msk [vmem:[#allocation2 + $0x1d] sm:$0x40] %vm2371_vm9, %v2338_v24 }
 0x2dc   : > { %v2091_v51 = vmax.f32 %v5613_v59, 0.0  ;;  %v2092_v31 = vmax.f32 %v2044_v38, 0.0  ;;  %v2390_v43 = vrot.slane %v2295_v41, 1 }
 0x2de   : > { %v2406_v36 = vmax.f32 %v2295_v41, %v2390_v43  ;;  %2233 = vrot.lane.b32.xlu0 %v2092_v31, %s3885_s16  ;;  %2231 = vrot.lane.b32.xlu2 %v2091_v51, %s3885_s16 }
 0x2df   : > { %v1853_v28 = vpop.f32.mrf.mxu0  ;;  %v1942_v10 = vpop.f32.mrf.mxu1 }
 0x2e0   : > { %2414 = vst.msk [vmem:[#allocation2 + $0x24] sm:$0x1] %vm2344_vm6, %v2406_v36  ;;  %v1991_v40 = vadd.f32 %v1853_v28, %v1632_v55  ;;  %v1992_v2 = vadd.f32 %v1942_v10, %v1633_v42  ;;  %v2176_v7 = vpop.permute.xlu1 %2175 }
 0x2e1   : > { %2422 = vst.msk [vmem:[#allocation2 + $0x23] sm:$0x4] %vm2353_vm7, %v2406_v36  ;;  %v2248_v8 = vsel %vm2239_vm5, %v2176_v7, %v2178_v25 }
 0x2e2   : > { %2430 = vst.msk [vmem:[#allocation2 + $0x22] sm:$0x10] %vm2362_vm8, %v2406_v36  ;;  %v5633_v32 = vadd.f32 %v5121_v18, %v1991_v40  ;;  %v2046_v12 = vadd.f32 %v5135_v58, %v1992_v2  ;;  %v2296_v24 = vmax.f32 %v2063_v4, %v2248_v8  ;;  %v2190_v5 = vpop.permute.xlu2 %2189 }
 0x2e3   : > { %2438 = vst.msk [vmem:[#allocation2 + $0x21] sm:$0x40] %vm2371_vm9, %v2406_v36 }
 0x2e4   : > { %v2093_v9 = vmax.f32 %v5633_v32, 0.0  ;;  %v2094_v19 = vmax.f32 %v2046_v12, 0.0  ;;  %v2454_v22 = vrot.slane %v2296_v24, 1  ;;  %v3726_v32 = vld [vmem:[%s6157_s3 + $0x150] sm:$0xff] }
 0x2e6   : > { %v2470_v34 = vmax.f32 %v2296_v24, %v2454_v22  ;;  %2237 = vrot.lane.b32.xlu2 %v2094_v19, %s3885_s16  ;;  %2235 = vrot.lane.b32.xlu1 %v2093_v9, %s3885_s16  ;;  %s3886_s16 = smov 64  }
 0x2e8   : > { %2478 = vst.msk [vmem:[#allocation2 + $0x28] sm:$0x1] %vm2344_vm6, %v2470_v34  ;;  %v2182_v18 = vpop.permute.xlu1 %2181  ;;  %v2180_v58 = vpop.permute.xlu0 %2179 }
 0x2e9   : > { %2486 = vst.msk [vmem:[#allocation2 + $0x27] sm:$0x4] %vm2353_vm7, %v2470_v34  ;;  %v2249_v62 = vsel %vm2239_vm5, %v2180_v58, %v2182_v18 }
 0x2ea   : > { %2494 = vst.msk [vmem:[#allocation2 + $0x26] sm:$0x10] %vm2362_vm8, %v2470_v34  ;;  %v2510_v4 = vld [vmem:[#allocation2 + $0x20] sm:$0xff]  ;;  %v2297_v54 = vmax.f32 %v2065_v35, %v2249_v62 }
 0x2eb   : > { %2502 = vst.msk [vmem:[#allocation2 + $0x25] sm:$0x40] %vm2371_vm9, %v2470_v34  ;;  %3680 = vmatmul.msk.f32.gmra.mxu3 %vm2543_vm10, %v2510_v4 }
 0x2ec   : > { %v2323_v50 = vrot.slane %v2297_v54, 1 }
 0x2ee   : > { %v2339_v38 = vmax.f32 %v2297_v54, %v2323_v50  ;;  %v3693_v50 = vld [vmem:[%s6157_s3 + $0xc8] sm:$0xff] }
 0x2ef   : > { %v2527_v41 = vld [vmem:[#allocation2 + $0x21] sm:$0xff]  ;;  %2724 = vmatpush.msrb.mxu2 %v3693_v50 }
 0x2f0   : > { %2348 = vst.msk [vmem:[#allocation2 + $0x30] sm:$0x1] %vm2344_vm6, %v2339_v38  ;;  %3672 = vmatmul.msk.f32.gmra.mxu2 %vm2543_vm10, %v2527_v41  ;;  %v2186_v1 = vpop.permute.xlu0 %2185 }
 0x2f1   : > { %2357 = vst.msk [vmem:[#allocation2 + $0x2f] sm:$0x4] %vm2353_vm7, %v2339_v38  ;;  %v2250_v44 = vsel %vm2239_vm5, %v2184_v0, %v2186_v1 }
 0x2f2   : > { %2366 = vst.msk [vmem:[#allocation2 + $0x2e] sm:$0x10] %vm2362_vm8, %v2339_v38  ;;  %v2298_v15 = vmax.f32 %v2067_v11, %v2250_v44 }
 0x2f3   : > { %2375 = vst.msk [vmem:[#allocation2 + $0x2d] sm:$0x40] %vm2371_vm9, %v2339_v38 }
 0x2f4   : > { %v2391_v35 = vrot.slane %v2298_v15, 1 }
 0x2f6   : > { %v2407_v56 = vmax.f32 %v2298_v15, %v2391_v35 }
 0x2f8   : > { %2415 = vst.msk [vmem:[#allocation2 + $0x34] sm:$0x1] %vm2344_vm6, %v2407_v56  ;;  %v2188_v13 = vpop.permute.xlu1 %2187 }
 0x2f9   : > { %2423 = vst.msk [vmem:[#allocation2 + $0x33] sm:$0x4] %vm2353_vm7, %v2407_v56  ;;  %v2251_v14 = vsel %vm2239_vm5, %v2188_v13, %v2190_v5 }
 0x2fa   : > { %2431 = vst.msk [vmem:[#allocation2 + $0x32] sm:$0x10] %vm2362_vm8, %v2407_v56  ;;  %v2299_v53 = vmax.f32 %v2069_v20, %v2251_v14  ;;  %v2196_v20 = vpop.permute.xlu2 %2195  ;;  %v3691_v14 = vld [vmem:[%s6157_s3 + $0xb8] sm:$0xff] }
 0x2fb   : > { %2439 = vst.msk [vmem:[#allocation2 + $0x31] sm:$0x40] %vm2371_vm9, %v2407_v56 }
 0x2fc   : > { %v2455_v46 = vrot.slane %v2299_v53, 1 }
 0x2fe   : > { %v2471_v11 = vmax.f32 %v2299_v53, %v2455_v46 }
 0x300   : > { %2479 = vst.msk [vmem:[#allocation2 + $0x38] sm:$0x1] %vm2344_vm6, %v2471_v11  ;;  %v2194_v45 = vpop.permute.xlu1 %2193  ;;  %v2192_v31 = vpop.permute.xlu0 %2191 }
 0x301   : > { %2487 = vst.msk [vmem:[#allocation2 + $0x37] sm:$0x4] %vm2353_vm7, %v2471_v11  ;;  %v2252_v43 = vsel %vm2239_vm5, %v2192_v31, %v2194_v45 }
 0x302   : > { %2495 = vst.msk [vmem:[#allocation2 + $0x36] sm:$0x10] %vm2362_vm8, %v2471_v11  ;;  %v2511_v55 = vld [vmem:[#allocation2 + $0x30] sm:$0xff]  ;;  %v2300_v42 = vmax.f32 %v2071_v39, %v2252_v43  ;;  %v2202_v2 = vpop.permute.xlu2 %2201  ;;  %v3711_v43 = vld [vmem:[%s6157_s3 + $0x118] sm:$0xff] }
 0x303   : > { %2503 = vst.msk [vmem:[#allocation2 + $0x35] sm:$0x40] %vm2371_vm9, %v2471_v11  ;;  %3681 = vmatmul.msk.f32.gmra.mxu3 %vm2543_vm10, %v2511_v55  ;;  %v3690_v55 = vld [vmem:[%s6157_s3 + $0xb0] sm:$0xff] }
 0x304   : > { %v2324_v17 = vrot.slane %v2300_v42, 1  ;;  %2814 = vmatpush.msrb.mxu3 %v3711_v43 }
 0x306   : > { %v2340_v36 = vmax.f32 %v2300_v42, %v2324_v17  ;;  %v3710_v17 = vld [vmem:[%s6157_s3 + $0x110] sm:$0xff] }
 0x307   : > { %v2528_v28 = vld [vmem:[#allocation2 + $0x31] sm:$0xff]  ;;  %2815 = vmatpush.msrb.mxu3 %v3710_v17 }
 0x308   : > { %2349 = vst.msk [vmem:[#allocation2 + $0x40] sm:$0x1] %vm2344_vm6, %v2340_v36  ;;  %3673 = vmatmul.msk.f32.gmra.mxu2 %vm2543_vm10, %v2528_v28  ;;  %v2198_v10 = vpop.permute.xlu0 %2197  ;;  %v3708_v28 = vld [vmem:[%s6157_s3 + $0x100] sm:$0xff] }
 0x309   : > { %2358 = vst.msk [vmem:[#allocation2 + $0x3f] sm:$0x4] %vm2353_vm7, %v2340_v36  ;;  %v2253_v25 = vsel %vm2239_vm5, %v2196_v20, %v2198_v10 }
 0x30a   : > { %2367 = vst.msk [vmem:[#allocation2 + $0x3e] sm:$0x10] %vm2362_vm8, %v2340_v36  ;;  %v2301_v37 = vmax.f32 %v2073_v33, %v2253_v25  ;;  %v2208_v58 = vpop.permute.xlu2 %2207 }
 0x30b   : > { %2376 = vst.msk [vmem:[#allocation2 + $0x3d] sm:$0x40] %vm2371_vm9, %v2340_v36 }
 0x30c   : > { %v2392_v39 = vrot.slane %v2301_v37, 1 }
 0x30e   : > { %v2408_v40 = vmax.f32 %v2301_v37, %v2392_v39  ;;  %v3707_v37 = vld [vmem:[%s6157_s3 + $0xf8] sm:$0xff]  ;;  %v3689_v39 = vld [vmem:[%s6157_s3 + $0xa8] sm:$0xff] }
 0x310   : > { %2416 = vst.msk [vmem:[#allocation2 + $0x44] sm:$0x1] %vm2344_vm6, %v2408_v40  ;;  %v2200_v7 = vpop.permute.xlu1 %2199 }
 0x311   : > { %2424 = vst.msk [vmem:[#allocation2 + $0x43] sm:$0x4] %vm2353_vm7, %v2408_v40  ;;  %v2254_v8 = vsel %vm2239_vm5, %v2200_v7, %v2202_v2  ;;  %v3705_v2 = vld [vmem:[%s6157_s3 + $0xe8] sm:$0xff] }
 0x312   : > { %2432 = vst.msk [vmem:[#allocation2 + $0x42] sm:$0x10] %vm2362_vm8, %v2408_v40  ;;  %v2302_v12 = vmax.f32 %v2075_v60, %v2254_v8  ;;  %v2214_v41 = vpop.permute.xlu2 %2213  ;;  %v3704_v8 = vld [vmem:[%s6157_s3 + $0xe0] sm:$0xff] }
 0x313   : > { %2440 = vst.msk [vmem:[#allocation2 + $0x41] sm:$0x40] %vm2371_vm9, %v2408_v40  ;;  %v3688_v40 = vld [vmem:[%s6157_s3 + $0xa0] sm:$0xff] }
 0x314   : > { %v2456_v29 = vrot.slane %v2302_v12, 1 }
 0x316   : > { %v2472_v33 = vmax.f32 %v2302_v12, %v2456_v29 }
 0x318   : > { %2480 = vst.msk [vmem:[#allocation2 + $0x48] sm:$0x1] %vm2344_vm6, %v2472_v33  ;;  %v2206_v24 = vpop.permute.xlu1 %2205  ;;  %v2204_v19 = vpop.permute.xlu0 %2203 }
 0x319   : > { %2488 = vst.msk [vmem:[#allocation2 + $0x47] sm:$0x4] %vm2353_vm7, %v2472_v33  ;;  %v2255_v22 = vsel %vm2239_vm5, %v2204_v19, %v2206_v24  ;;  %v3703_v19 = vld [vmem:[%s6157_s3 + $0xd8] sm:$0xff] }
 0x31a   : > { %2496 = vst.msk [vmem:[#allocation2 + $0x46] sm:$0x10] %vm2362_vm8, %v2472_v33  ;;  %v2512_v34 = vld [vmem:[#allocation2 + $0x40] sm:$0xff]  ;;  %v2303_v18 = vmax.f32 %v2077_v57, %v2255_v22 }
 0x31b   : > { %2504 = vst.msk [vmem:[#allocation2 + $0x45] sm:$0x40] %vm2371_vm9, %v2472_v33  ;;  %3682 = vmatmul.msk.f32.gmra.mxu3 %vm2543_vm10, %v2512_v34  ;;  %v3687_v33 = vld [vmem:[%s6157_s3 + $0x98] sm:$0xff] }
 0x31c   : > { %v2325_v60 = vrot.slane %v2303_v18, 1 }
 0x31e   : > { %v2341_v62 = vmax.f32 %v2303_v18, %v2325_v60 }
 0x31f   : > { %v2529_v4 = vld [vmem:[#allocation2 + $0x41] sm:$0xff] }
 0x320   : > { %2350 = vst.msk [vmem:[#allocation2 + $0x50] sm:$0x1] %vm2344_vm6, %v2341_v62  ;;  %3674 = vmatmul.msk.f32.gmra.mxu2 %vm2543_vm10, %v2529_v4  ;;  %v2210_v54 = vpop.permute.xlu0 %2209  ;;  %v2220_v46 = vpop.permute.xlu2 %2219 }
 0x321   : > { %2359 = vst.msk [vmem:[#allocation2 + $0x4f] sm:$0x4] %vm2353_vm7, %v2341_v62  ;;  %v2256_v49 = vsel %vm2239_vm5, %v2208_v58, %v2210_v54  ;;  %v3686_v58 = vld [vmem:[%s6157_s3 + $0x90] sm:$0xff] }
 0x322   : > { %2368 = vst.msk [vmem:[#allocation2 + $0x4e] sm:$0x10] %vm2362_vm8, %v2341_v62  ;;  %v2304_v57 = vmax.f32 %v2079_v48, %v2256_v49  ;;  %v3692_v48 = vld [vmem:[%s6157_s3 + $0xc0] sm:$0xff] }
 0x323   : > { %2377 = vst.msk [vmem:[#allocation2 + $0x4d] sm:$0x40] %vm2371_vm9, %v2341_v62  ;;  %2725 = vmatpush.msrb.mxu2 %v3692_v48  ;;  %v3728_v49 = vld [vmem:[%s6157_s3 + $0x160] sm:$0xff]  ;;  %v3725_v48 = vld [vmem:[%s6157_s3 + $0x148] sm:$0xff] }
 0x324   : > { %v2393_v0 = vrot.slane %v2304_v57, 1 }
 0x325   : > { %2726 = vmatpush.msrb.mxu2 %v3691_v14  ;;  %v2768_v14 = vld [vmem:[#allocation2 + $0x33] sm:$0xff] }
 0x326   : > { %v2409_v38 = vmax.f32 %v2304_v57, %v2393_v0 }
 0x327   : > { %2727 = vmatpush.msrb.mxu2 %v3690_v55 }
 0x328   : > { %2417 = vst.msk [vmem:[#allocation2 + $0x54] sm:$0x1] %vm2344_vm6, %v2409_v38  ;;  %v2212_v1 = vpop.permute.xlu1 %2211  ;;  %v2226_v20 = vpop.permute.xlu2 %2225 }
 0x329   : > { %2425 = vst.msk [vmem:[#allocation2 + $0x53] sm:$0x4] %vm2353_vm7, %v2409_v38  ;;  %v2257_v44 = vsel %vm2239_vm5, %v2212_v1, %v2214_v41  ;;  %2728 = vmatpush.msrb.mxu2 %v3689_v39 }
 0x32a   : > { %2433 = vst.msk [vmem:[#allocation2 + $0x52] sm:$0x10] %vm2362_vm8, %v2409_v38  ;;  %v2305_v26 = vmax.f32 %v2081_v30, %v2257_v44 }
 0x32b   : > { %2441 = vst.msk [vmem:[#allocation2 + $0x51] sm:$0x40] %vm2371_vm9, %v2409_v38  ;;  %2729 = vmatpush.msrb.mxu2 %v3688_v40  ;;  %v2860_v40 = vld [vmem:[#allocation2 + $0x44] sm:$0xff] }
 0x32c   : > { %v2457_v15 = vrot.slane %v2305_v26, 1 }
 0x32d   : > { %2730 = vmatpush.msrb.mxu2 %v3687_v33 }
 0x32e   : > { %v2473_v35 = vmax.f32 %v2305_v26, %v2457_v15  ;;  %v2765_v26 = vld [vmem:[#allocation2 + $0x3] sm:$0xff] }
 0x32f   : > { %2731 = vmatpush.msrb.mxu2 %v3686_v58  ;;  %v2674_v15 = vld [vmem:[#allocation2 + $0x2] sm:$0xff] }
 0x330   : > { %2481 = vst.msk [vmem:[#allocation2 + $0x58] sm:$0x1] %vm2344_vm6, %v2473_v35  ;;  %v2218_v56 = vpop.permute.xlu1 %2217  ;;  %v2216_v5 = vpop.permute.xlu0 %2215 }
 0x331   : > { %2489 = vst.msk [vmem:[#allocation2 + $0x57] sm:$0x4] %vm2353_vm7, %v2473_v35  ;;  %v2258_v13 = vsel %vm2239_vm5, %v2216_v5, %v2218_v56  ;;  %2905 = vmatpush.msra.mxu2 %v3728_v49  ;;  %v3724_v56 = vld [vmem:[%s6157_s3 + $0x140] sm:$0xff]  ;;  %v2675_v5 = vld [vmem:[#allocation2 + $0x12] sm:$0xff] }
 0x332   : > { %2497 = vst.msk [vmem:[#allocation2 + $0x56] sm:$0x10] %vm2362_vm8, %v2473_v35  ;;  %v2513_v63 = vld [vmem:[#allocation2 + $0x50] sm:$0xff]  ;;  %v2306_v30 = vmax.f32 %v2083_v16, %v2258_v13  ;;  %v2767_v13 = vld [vmem:[#allocation2 + $0x23] sm:$0xff] }
 0x333   : > { %2505 = vst.msk [vmem:[#allocation2 + $0x55] sm:$0x40] %vm2371_vm9, %v2473_v35  ;;  %3683 = vmatmul.msk.f32.gmra.mxu3 %vm2543_vm10, %v2513_v63  ;;  %v2766_v35 = vld [vmem:[#allocation2 + $0x13] sm:$0xff] }
 0x334   : > { %v2326_v53 = vrot.slane %v2306_v30, 1  ;;  %v3723_v63 = vld [vmem:[%s6157_s3 + $0x138] sm:$0xff] }
 0x336   : > { %v2342_v11 = vmax.f32 %v2306_v30, %v2326_v53  ;;  %v2676_v30 = vld [vmem:[#allocation2 + $0x22] sm:$0xff]  ;;  %v3722_v53 = vld [vmem:[%s6157_s3 + $0x130] sm:$0xff] }
 0x337   : > { %v2530_v45 = vld [vmem:[#allocation2 + $0x51] sm:$0xff] }
 0x338   : > { %2351 = vst.msk [vmem:[#allocation2 + $0x60] sm:$0x1] %vm2344_vm6, %v2342_v11  ;;  %3675 = vmatmul.msk.f32.gmra.mxu2 %vm2543_vm10, %v2530_v45  ;;  %v2222_v31 = vpop.permute.xlu0 %2221  ;;  %v2232_v6 = vpop.permute.xlu2 %2231  ;;  %v3720_v45 = vld [vmem:[%s6157_s3 + $0x120] sm:$0xff]  ;;  %v2679_v43 = vld [vmem:[#allocation2 + $0x52] sm:$0xff] }
 0x339   : > { %2360 = vst.msk [vmem:[#allocation2 + $0x5f] sm:$0x4] %vm2353_vm7, %v2342_v11  ;;  %v2259_v23 = vsel %vm2239_vm5, %v2220_v46, %v2222_v31  ;;  %v2677_v46 = vld [vmem:[#allocation2 + $0x32] sm:$0xff]  ;;  %v2769_v31 = vld [vmem:[#allocation2 + $0x43] sm:$0xff] }
 0x33a   : > { %2369 = vst.msk [vmem:[#allocation2 + $0x5e] sm:$0x10] %vm2362_vm8, %v2342_v11  ;;  %v2307_v16 = vmax.f32 %v2085_v61, %v2259_v23  ;;  %v3709_v61 = vld [vmem:[%s6157_s3 + $0x108] sm:$0xff] }
 0x33b   : > { %2378 = vst.msk [vmem:[#allocation2 + $0x5d] sm:$0x40] %vm2371_vm9, %v2342_v11  ;;  %2816 = vmatpush.msrb.mxu3 %v3709_v61  ;;  %v3721_v11 = vld [vmem:[%s6157_s3 + $0x128] sm:$0xff] }
 0x33c   : > { %v2394_v42 = vrot.slane %v2307_v16, 1  ;;  %v2678_v23 = vld [vmem:[#allocation2 + $0x42] sm:$0xff] }
 0x33d   : > { %2817 = vmatpush.msrb.mxu3 %v3708_v28  ;;  %v2856_v61 = vld [vmem:[#allocation2 + $0x4] sm:$0xff] }
 0x33e   : > { %v2410_v27 = vmax.f32 %v2307_v16, %v2394_v42  ;;  %v2770_v16 = vld [vmem:[#allocation2 + $0x53] sm:$0xff] }
 0x33f   : > { %2818 = vmatpush.msrb.mxu3 %v3707_v37  ;;  %v2859_v37 = vld [vmem:[#allocation2 + $0x34] sm:$0xff] }
 0x340   : > { %2418 = vst.msk [vmem:[#allocation2 + $0x64] sm:$0x1] %vm2344_vm6, %v2410_v27  ;;  %v2224_v36 = vpop.permute.xlu1 %2223  ;;  %v2238_v50 = vpop.permute.xlu2 %2237 }
 0x341   : > { %2426 = vst.msk [vmem:[#allocation2 + $0x63] sm:$0x4] %vm2353_vm7, %v2410_v27  ;;  %v2260_v10 = vsel %vm2239_vm5, %v2224_v36, %v2226_v20  ;;  %2819 = vmatpush.msrb.mxu3 %v3706_v3  ;;  %v2857_v36 = vld [vmem:[#allocation2 + $0x14] sm:$0xff] }
 0x342   : > { %2434 = vst.msk [vmem:[#allocation2 + $0x62] sm:$0x10] %vm2362_vm8, %v2410_v27  ;;  %v2308_v25 = vmax.f32 %v2087_v47, %v2260_v10  ;;  %v2858_v10 = vld [vmem:[#allocation2 + $0x24] sm:$0xff] }
 0x343   : > { %2442 = vst.msk [vmem:[#allocation2 + $0x61] sm:$0x40] %vm2371_vm9, %v2410_v27  ;;  %2820 = vmatpush.msrb.mxu3 %v3705_v2 }
 0x344   : > { %v2458_v47 = vrot.slane %v2308_v25, 1 }
 0x345   : > { %2821 = vmatpush.msrb.mxu3 %v3704_v8 }
 0x346   : > { %v2474_v7 = vmax.f32 %v2308_v25, %v2458_v47  ;;  %v2585_v20 = vpop.f32.mrf.mxu2  ;;  %v2861_v47 = vld [vmem:[#allocation2 + $0x54] sm:$0xff] }
 0x347   : > { %2822 = vmatpush.msrb.mxu3 %v3703_v19  ;;  %v2650_v8 = vpop.f32.mrf.mxu3 }
 0x348   : > { %2482 = vst.msk [vmem:[#allocation2 + $0x68] sm:$0x1] %vm2344_vm6, %v2474_v7  ;;  %v2230_v12 = vpop.permute.xlu1 %2229  ;;  %v2228_v29 = vpop.permute.xlu0 %2227 }
 0x349   : > { %2490 = vst.msk [vmem:[#allocation2 + $0x67] sm:$0x4] %vm2353_vm7, %v2474_v7  ;;  %v2261_v24 = vsel %vm2239_vm5, %v2228_v29, %v2230_v12 }
 0x34a   : > { %2498 = vst.msk [vmem:[#allocation2 + $0x66] sm:$0x10] %vm2362_vm8, %v2474_v7  ;;  %v2514_v22 = vld [vmem:[#allocation2 + $0x60] sm:$0xff]  ;;  %v2309_v34 = vmax.f32 %v2089_v52, %v2261_v24 }
 0x34b   : > { %2506 = vst.msk [vmem:[#allocation2 + $0x65] sm:$0x40] %vm2371_vm9, %v2474_v7  ;;  %3684 = vmatmul.msk.f32.gmra.mxu3 %vm2543_vm10, %v2514_v22 }
 0x34c   : > { %v2327_v18 = vrot.slane %v2309_v34, 1 }
 0x34e   : > { %v2343_v60 = vmax.f32 %v2309_v34, %v2327_v18 }
 0x34f   : > { %v2531_v62 = vld [vmem:[#allocation2 + $0x61] sm:$0xff] }
 0x350   : > { %2352 = vst.msk [vmem:[#allocation2 + $0x70] sm:$0x1] %vm2344_vm6, %v2343_v60  ;;  %3676 = vmatmul.msk.f32.gmra.mxu2 %vm2543_vm10, %v2531_v62  ;;  %v2234_v21 = vpop.permute.xlu0 %2233  ;;  %v2680_v42 = vld [vmem:[#allocation2 + $0x62] sm:$0xff] }
 0x351   : > { %2361 = vst.msk [vmem:[#allocation2 + $0x6f] sm:$0x4] %vm2353_vm7, %v2343_v60  ;;  %v2262_v52 = vsel %vm2239_vm5, %v2232_v6, %v2234_v21  ;;  %v2771_v55 = vld [vmem:[#allocation2 + $0x63] sm:$0xff] }
 0x352   : > { %2370 = vst.msk [vmem:[#allocation2 + $0x6e] sm:$0x10] %vm2362_vm8, %v2343_v60  ;;  %v2310_v4 = vmax.f32 %v2091_v51, %v2262_v52  ;;  %v3727_v51 = vld [vmem:[%s6157_s3 + $0x158] sm:$0xff]  ;;  %v2862_v7 = vld [vmem:[#allocation2 + $0x64] sm:$0xff] }
 0x353   : > { %2379 = vst.msk [vmem:[#allocation2 + $0x6d] sm:$0x40] %vm2371_vm9, %v2343_v60  ;;  %2906 = vmatpush.msra.mxu2 %v3727_v51 }
 0x354   : > { %v2395_v54 = vrot.slane %v2310_v4, 1 }
 0x355   : > { %2907 = vmatpush.msra.mxu2 %v3726_v32 }
 0x356   : > { %v2411_v57 = vmax.f32 %v2310_v4, %v2395_v54 }
 0x357   : > { %2908 = vmatpush.msra.mxu2 %v3725_v48  ;;  %v2653_v33 = vpop.f32.mrf.mxu3 }
 0x358   : > { %2419 = vst.msk [vmem:[#allocation2 + $0x74] sm:$0x1] %vm2344_vm6, %v2411_v57  ;;  %v2236_v0 = vpop.permute.xlu1 %2235 }
 0x359   : > { %2427 = vst.msk [vmem:[#allocation2 + $0x73] sm:$0x4] %vm2353_vm7, %v2411_v57  ;;  %v2263_v38 = vsel %vm2239_vm5, %v2236_v0, %v2238_v50  ;;  %2909 = vmatpush.msra.mxu2 %v3724_v56  ;;  %v2651_v0 = vadd.f32 %v2650_v8, %v2585_v20 }
 0x35a   : > { %2435 = vst.msk [vmem:[#allocation2 + $0x72] sm:$0x10] %vm2362_vm8, %v2411_v57  ;;  %v2311_v59 = vmax.f32 %v2093_v9, %v2263_v38 }
 0x35b   : > { %2443 = vst.msk [vmem:[#allocation2 + $0x71] sm:$0x40] %vm2371_vm9, %v2411_v57  ;;  %2910 = vmatpush.msra.mxu2 %v3723_v63  ;;  %v2588_v28 = vpop.f32.mrf.mxu2 }
 0x35c   : > { %v2459_v41 = vrot.slane %v2311_v59, 1 }
 0x35d   : > { %2911 = vmatpush.msra.mxu2 %v3722_v53 }
 0x35e   : > { %v2475_v1 = vmax.f32 %v2311_v59, %v2459_v41  ;;  %v5889_v41 = vld [vmem:[%s6158_s4] ss:$0 sm:$0xff] }
 0x35f   : > { %2912 = vmatpush.msra.mxu2 %v3721_v11 }
 0x360   : > { %2483 = vst.msk [vmem:[#allocation2 + $0x78] sm:$0x1] %vm2344_vm6, %v2475_v1 }
 0x361   : > { %2491 = vst.msk [vmem:[#allocation2 + $0x77] sm:$0x4] %vm2353_vm7, %v2475_v1  ;;  %2913 = vmatpush.msra.mxu2 %v3720_v45 }
 0x362   : > { %2499 = vst.msk [vmem:[#allocation2 + $0x76] sm:$0x10] %vm2362_vm8, %v2475_v1  ;;  %v2515_v44 = vld [vmem:[#allocation2 + $0x70] sm:$0xff] }
 0x363   : > { %2507 = vst.msk [vmem:[#allocation2 + $0x75] sm:$0x40] %vm2371_vm9, %v2475_v1  ;;  %3685 = vmatmul.msk.f32.gmra.mxu3 %vm2543_vm10, %v2515_v44  ;;  %v2654_v44 = vadd.f32 %v2653_v33, %v2588_v28 }
 0x367   : > { %v2532_v9 = vld [vmem:[#allocation2 + $0x71] sm:$0xff] }
 0x368   : > { %3677 = vmatmul.msk.f32.gmra.mxu2 %vm2543_vm10, %v2532_v9  ;;  %v2681_v27 = vld [vmem:[#allocation2 + $0x72] sm:$0xff] }
 0x369   : > { %v2772_v17 = vld [vmem:[#allocation2 + $0x73] sm:$0xff] }
 0x36a   : > { %v2863_v29 = vld [vmem:[#allocation2 + $0x74] sm:$0xff] }
 0x36b   : > { %3712 = vmatmul.msk.f32.vlgmr.msrb.gmra.mxu3 %vm2543_vm10, %v2765_v26 }
 0x36e   : > { %v2656_v19 = vpop.f32.mrf.mxu3 }
 0x370   : > { %3695 = vmatmul.msk.f32.vlgmr.msrb.gmra.mxu2 %vm2543_vm10, %v2674_v15 }
 0x373   : > { %3713 = vmatmul.msk.f32.gmra.mxu3 %vm2543_vm10, %v2766_v35  ;;  %v2591_v25 = vpop.f32.mrf.mxu2 }
 0x378   : > { %3696 = vmatmul.msk.f32.gmra.mxu2 %vm2543_vm10, %v2675_v5 }
 0x37b   : > { %3714 = vmatmul.msk.f32.gmra.mxu3 %vm2543_vm10, %v2767_v13  ;;  %v2657_v13 = vadd.f32 %v2656_v19, %v2591_v25 }
 0x380   : > { %3697 = vmatmul.msk.f32.gmra.mxu2 %vm2543_vm10, %v2676_v30 }
 0x383   : > { %3715 = vmatmul.msk.f32.gmra.mxu3 %vm2543_vm10, %v2768_v14 }
 0x386   : > { %v2659_v34 = vpop.f32.mrf.mxu3 }
 0x388   : > { %3698 = vmatmul.msk.f32.gmra.mxu2 %vm2543_vm10, %v2677_v46 }
 0x38b   : > { %3716 = vmatmul.msk.f32.gmra.mxu3 %vm2543_vm10, %v2769_v31  ;;  %v2594_v39 = vpop.f32.mrf.mxu2 }
 0x390   : > { %3699 = vmatmul.msk.f32.gmra.mxu2 %vm2543_vm10, %v2678_v23 }
 0x393   : > { %3717 = vmatmul.msk.f32.gmra.mxu3 %vm2543_vm10, %v2770_v16  ;;  %v2660_v16 = vadd.f32 %v2659_v34, %v2594_v39 }
 0x398   : > { %3700 = vmatmul.msk.f32.gmra.mxu2 %vm2543_vm10, %v2679_v43 }
 0x39b   : > { %3718 = vmatmul.msk.f32.gmra.mxu3 %vm2543_vm10, %v2771_v55 }
 0x39e   : > { %v2662_v6 = vpop.f32.mrf.mxu3 }
 0x3a0   : > { %3701 = vmatmul.msk.f32.gmra.mxu2 %vm2543_vm10, %v2680_v42 }
 0x3a3   : > { %3719 = vmatmul.msk.f32.gmra.mxu3 %vm2543_vm10, %v2772_v17  ;;  %v5867_v3 = vpop.f32.mrf.mxu2 }
 0x3a8   : > { %3702 = vmatmul.msk.f32.gmra.mxu2 %vm2543_vm10, %v2681_v27 }
 0x3b0   : > { %3729 = vmatmul.msk.f32.vlgmr.msra.gmra.mxu2 %vm2543_vm10, %v2856_v61 }
 0x3b6   : > { %v2665_v58 = vpop.f32.mrf.mxu3 }
 0x3b8   : > { %3730 = vmatmul.msk.f32.gmra.mxu2 %vm2543_vm10, %v2857_v36 }
 0x3bb   : > { %v5870_v2 = vpop.f32.mrf.mxu2 }
 0x3bc   : > { %v2666_v33 = vadd.f32 %v2665_v58, %v5870_v2 }
 0x3c0   : > { %3731 = vmatmul.msk.f32.gmra.mxu2 %vm2543_vm10, %v2858_v10  ;;  %v2663_v10 = vadd.f32 %v2662_v6, %v5867_v3 }
 0x3c8   : > { %3732 = vmatmul.msk.f32.gmra.mxu2 %vm2543_vm10, %v2859_v37 }
 0x3ce   : > { %v5878_v21 = vpop.f32.mrf.mxu3 }
 0x3d0   : > { %3733 = vmatmul.msk.f32.gmra.mxu2 %vm2543_vm10, %v2860_v40 }
 0x3d3   : > { %v5873_v12 = vpop.f32.mrf.mxu2 }
 0x3d8   : > { %3734 = vmatmul.msk.f32.gmra.mxu2 %vm2543_vm10, %v2861_v47 }
 0x3e0   : > { %3735 = vmatmul.msk.f32.gmra.mxu2 %vm2543_vm10, %v2862_v7 }
 0x3e6   : > { %v5880_v4 = vpop.f32.mrf.mxu3 }
 0x3e8   : > { %3736 = vmatmul.msk.f32.gmra.mxu2 %vm2543_vm10, %v2863_v29 }
 0x3eb   : > { %v5876_v24 = vpop.f32.mrf.mxu2 }
 0x3ee   : > { %v2824_v49 = vpop.f32.mrf.mxu3 }
 0x3f3   : > { %v2733_v22 = vpop.f32.mrf.mxu2 }
 0x3f4   : > { %v2757_v59 = vadd.f32 %v2733_v22, %v2651_v0 }
 0x3f6   : > { %v2827_v38 = vpop.f32.mrf.mxu3  ;;  %v2848_v51 = vadd.f32 %v2824_v49, %v2757_v59  ;;  %v2669_v49 = vadd.f32 %v5878_v21, %v5873_v12 }
 0x3fb   : > { %v2736_v18 = vpop.f32.mrf.mxu2 }
 0x3fc   : > { %v2758_v9 = vadd.f32 %v2736_v18, %v2654_v44 }
 0x3fe   : > { %v2830_v48 = vpop.f32.mrf.mxu3  ;;  %v2849_v56 = vadd.f32 %v2827_v38, %v2758_v9 }
 0x403   : > { %v2739_v60 = vpop.f32.mrf.mxu2 }
 0x404   : > { %v2759_v14 = vadd.f32 %v2739_v60, %v2657_v13 }
 0x406   : > { %v2833_v11 = vpop.f32.mrf.mxu3  ;;  %v2850_v31 = vadd.f32 %v2830_v48, %v2759_v14 }
 0x40b   : > { %v2742_v62 = vpop.f32.mrf.mxu2 }
 0x40c   : > { %v2760_v42 = vadd.f32 %v2742_v62, %v2660_v16  ;;  %v3046_v16 = vld [vmem:[%s6159_s5 + $0x38] sm:$0xff] }
 0x40e   : > { %v2851_v20 = vadd.f32 %v2833_v11, %v2760_v42  ;;  %v2836_v36 = vpop.f32.mrf.mxu3  ;;  %v3050_v11 = vld [vmem:[%s6159_s5 + $0x58] sm:$0xff]  ;;  %v3044_v42 = vld [vmem:[%s6159_s5 + $0x28] sm:$0xff] }
 0x413   : > { %v2745_v52 = vpop.f32.mrf.mxu2 }
 0x414   : > { %v2761_v39 = vadd.f32 %v2745_v52, %v2663_v10 }
 0x416   : > { %v2852_v8 = vadd.f32 %v2836_v36, %v2761_v39  ;;  %v2839_v34 = vpop.f32.mrf.mxu3  ;;  %v3039_v36 = vld [vmem:[%s6159_s5] sm:$0xff] }
 0x41b   : > { %v2748_v54 = vpop.f32.mrf.mxu2 }
 0x41c   : > { %v2762_v3 = vadd.f32 %v2748_v54, %v2666_v33 }
 0x41e   : > { %v2853_v62 = vadd.f32 %v2839_v34, %v2762_v3  ;;  %v2842_v54 = vpop.f32.mrf.mxu3 }
 0x423   : > { %v5882_v57 = vpop.f32.mrf.mxu2 }
 0x424   : > { %v2763_v2 = vadd.f32 %v5882_v57, %v2669_v49 }
 0x426   : > { %v2845_v48 = vpop.f32.mrf.mxu3 }
 0x42b   : > { %v5884_v50 = vpop.f32.mrf.mxu2 }
 0x433   : > { %v2915_v1 = vpop.f32.mrf.mxu2 }
 0x434   : > { %v2939_v32 = vadd.f32 %v2915_v1, %v2848_v51  ;;  %v2854_v1 = vadd.f32 %v2842_v54, %v2763_v2 }
 0x436   : > { %v2951_v26 = vadd.f32 %v5889_v41, %v2939_v32  ;;  %v2672_v32 = vadd.f32 %v5880_v4, %v5876_v24 }
 0x438   : > { %v2959_v15 = vmax.f32 %v2951_v26, 0.0  ;;  %v2764_v21 = vadd.f32 %v5884_v50, %v2672_v32  ;;  %v3054_v50 = vld [vmem:[%s6159_s5 + $0x78] sm:$0xff] }
 0x439   : > { %3095 = vmatpush.msra.mxu3 %v3054_v50 }
 0x43a   : > { %v2975_v35 = vrot.slane %v2959_v15, 1 }
 0x43b   : > { %v2918_v5 = vpop.f32.mrf.mxu2 }
 0x43c   : > { %v2940_v63 = vadd.f32 %v2918_v5, %v2849_v56  ;;  %v5892_v30 = vmax.f32 %v2959_v15, %v2975_v35  ;;  %v2855_v35 = vadd.f32 %v2845_v48, %v2764_v21 }
 0x43e   : > { %v2952_v53 = vadd.f32 %v5889_v41, %v2940_v63  ;;  %3007 = vrot.lane.b32.xlu0 %v5892_v30, %s3886_s16 }
 0x440   : > { %v2960_v46 = vmax.f32 %v2952_v53, 0.0  ;;  %v3053_v53 = vld [vmem:[%s6159_s5 + $0x70] sm:$0xff] }
 0x441   : > { %3096 = vmatpush.msra.mxu3 %v3053_v53 }
 0x442   : > { %v2976_v45 = vrot.slane %v2960_v46, 1 }
 0x443   : > { %v2921_v23 = vpop.f32.mrf.mxu2 }
 0x444   : > { %v2941_v43 = vadd.f32 %v2921_v23, %v2850_v31  ;;  %v5897_v55 = vmax.f32 %v2960_v46, %v2976_v45  ;;  %v3051_v46 = vld [vmem:[%s6159_s5 + $0x60] sm:$0xff]  ;;  %v3049_v45 = vld [vmem:[%s6159_s5 + $0x50] sm:$0xff]  ;;  %v3048_v31 = vld [vmem:[%s6159_s5 + $0x48] sm:$0xff] }
 0x445   : > { %v3047_v23 = vld [vmem:[%s6159_s5 + $0x40] sm:$0xff] }
 0x446   : > { %v2953_v17 = vadd.f32 %v5889_v41, %v2941_v43  ;;  %3009 = vrot.lane.b32.xlu1 %v5897_v55, %s3886_s16  ;;  %v3045_v43 = vld [vmem:[%s6159_s5 + $0x30] sm:$0xff] }
 0x448   : > { %v2961_v27 = vmax.f32 %v2953_v17, 0.0  ;;  %v3043_v17 = vld [vmem:[%s6159_s5 + $0x20] sm:$0xff] }
 0x44a   : > { %v2977_v61 = vrot.slane %v2961_v27, 1 }
 0x44b   : > { %v2924_v28 = vpop.f32.mrf.mxu2 }
 0x44c   : > { %v2942_v25 = vadd.f32 %v2924_v28, %v2851_v20  ;;  %v5903_v37 = vmax.f32 %v2961_v27, %v2977_v61  ;;  %v3042_v27 = vld [vmem:[%s6159_s5 + $0x18] sm:$0xff]  ;;  %v3041_v61 = vld [vmem:[%s6159_s5 + $0x10] sm:$0xff]  ;;  %v3040_v20 = vld [vmem:[%s6159_s5 + $0x8] sm:$0xff] }
 0x44e   : > { %v2954_v40 = vadd.f32 %v5889_v41, %v2942_v25  ;;  %3011 = vrot.lane.b32.xlu0 %v5903_v37, %s3886_s16 }
 0x450   : > { %v2962_v47 = vmax.f32 %v2954_v40, 0.0 }
 0x452   : > { %v2978_v7 = vrot.slane %v2962_v47, 1 }
 0x453   : > { %v2927_v29 = vpop.f32.mrf.mxu2 }
 0x454   : > { %v2943_v19 = vadd.f32 %v2927_v29, %v2852_v8  ;;  %v5909_v22 = vmax.f32 %v2962_v47, %v2978_v7 }
 0x456   : > { %v2955_v18 = vadd.f32 %v5889_v41, %v2943_v19  ;;  %3013 = vrot.lane.b32.xlu2 %v5909_v22, %s3886_s16 }
 0x458   : > { %v2963_v6 = vmax.f32 %v2955_v18, 0.0 }
 0x45a   : > { %v2979_v60 = vrot.slane %v2963_v6, 1 }
 0x45b   : > { %v2930_v52 = vpop.f32.mrf.mxu2 }
 0x45c   : > { %v2944_v0 = vadd.f32 %v2930_v52, %v2853_v62  ;;  %v5916_v38 = vmax.f32 %v2963_v6, %v2979_v60 }
 0x45e   : > { %v2956_v58 = vadd.f32 %v5889_v41, %v2944_v0  ;;  %3015 = vrot.lane.b32.xlu1 %v5916_v38, %s3886_s16 }
 0x460   : > { %v2964_v59 = vmax.f32 %v2956_v58, 0.0 }
 0x462   : > { %v2980_v51 = vrot.slane %v2964_v59, 1 }
 0x463   : > { %v2933_v44 = vpop.f32.mrf.mxu2 }
 0x464   : > { %v2945_v9 = vadd.f32 %v2933_v44, %v2854_v1  ;;  %v5924_v12 = vmax.f32 %v2964_v59, %v2980_v51 }
 0x466   : > { %v2957_v57 = vadd.f32 %v5889_v41, %v2945_v9  ;;  %3017 = vrot.lane.b32.xlu2 %v5924_v12, %s3886_s16 }
 0x468   : > { %v2965_v26 = vmax.f32 %v2957_v57, 0.0 }
 0x46a   : > { %v2981_v15 = vrot.slane %v2965_v26, 1 }
 0x46b   : > { %v2936_v56 = vpop.f32.mrf.mxu2 }
 0x46c   : > { %v2946_v5 = vadd.f32 %v2936_v56, %v2855_v35  ;;  %v2997_v13 = vmax.f32 %v2965_v26, %v2981_v15  ;;  %v3149_v26 = vld [vmem:[%s6159_s5 + $0xb0] sm:$0xff] }
 0x46e   : > { %v2958_v63 = vadd.f32 %v5889_v41, %v2946_v5  ;;  %3019 = vrot.lane.b32.xlu0 %v2997_v13, %s3886_s16  ;;  %v3052_v41 = vld [vmem:[%s6159_s5 + $0x68] sm:$0xff] }
 0x46f   : > { %3097 = vmatpush.msra.mxu3 %v3052_v41  ;;  %v3148_v5 = vld [vmem:[%s6159_s5 + $0xa8] sm:$0xff] }
 0x470   : > { %v2966_v24 = vmax.f32 %v2958_v63, 0.0 }
 0x471   : > { %3098 = vmatpush.msra.mxu3 %v3051_v46  ;;  %v3146_v46 = vld [vmem:[%s6159_s5 + $0x98] sm:$0xff] }
 0x472   : > { %v2982_v4 = vrot.slane %v2966_v24, 1 }
 0x473   : > { %3099 = vmatpush.msra.mxu3 %v3050_v11 }
 0x474   : > { %v5932_v14 = vmax.f32 %v2966_v24, %v2982_v4 }
 0x475   : > { %3100 = vmatpush.msra.mxu3 %v3049_v45 }
 0x476   : > { %3021 = vrot.lane.b32.xlu1 %v5932_v14, %s3886_s16 }
 0x477   : > { %3101 = vmatpush.msra.mxu3 %v3048_v31 }
 0x479   : > { %3102 = vmatpush.msra.mxu3 %v3047_v23  ;;  %v3145_v23 = vld [vmem:[%s6159_s5 + $0x90] sm:$0xff] }
 0x47b   : > { %3131 = vmatpush.msrb.mxu3 %v3046_v16 }
 0x47d   : > { %3132 = vmatpush.msrb.mxu3 %v3045_v43  ;;  %v3144_v43 = vld [vmem:[%s6159_s5 + $0x88] sm:$0xff] }
 0x47f   : > { %3133 = vmatpush.msrb.mxu3 %v3044_v42 }
 0x481   : > { %3134 = vmatpush.msrb.mxu3 %v3043_v17 }
 0x483   : > { %3135 = vmatpush.msrb.mxu3 %v3042_v27 }
 0x485   : > { %3136 = vmatpush.msrb.mxu3 %v3041_v61 }
 0x487   : > { %3137 = vmatpush.msrb.mxu3 %v3040_v20  ;;  %v3143_v20 = vld [vmem:[%s6159_s5 + $0x80] sm:$0xff] }
 0x489   : > { %3138 = vmatpush.msrb.mxu3 %v3039_v36  ;;  %v3195_v36 = vld [vmem:[%s6159_s5 + $0xf8] sm:$0xff] }
 0x4b0   : > { %v3008_v28 = vpop.permute.xlu0 %3007  ;;  %v3014_v39 = vpop.permute.xlu2 %3013 }
 0x4b1   : > { %v5988_v47 = vmax.f32 %v5892_v30, %v3008_v28  ;;  %v5999_v34 = vmax.f32 %v5909_v22, %v3014_v39 }
 0x4b3   : > { %v3063_v19 = vrot.slane %v5988_v47, 2  ;;  %v3069_v60 = vrot.slane %v5999_v34, 7  ;;  %v3111_v21 = vrot.slane %v5999_v34, 5  ;;  %v3151_v4 = vrot.slane %v5988_v47, 4 }
 0x4b4   : > { %v3156_v31 = vrot.slane %v5999_v34, 1 }
 0x4b8   : > { %v3010_v10 = vpop.permute.xlu1 %3009 }
 0x4b9   : > { %v5985_v40 = vmax.f32 %v5897_v55, %v3010_v10 }
 0x4bb   : > { %v3064_v8 = vrot.slane %v5985_v40, 1  ;;  %v3107_v22 = vrot.slane %v5985_v40, 7  ;;  %v3152_v15 = vrot.slane %v5985_v40, 3  ;;  %v3197_v39 = vrot.slane %v5985_v40, 5 }
 0x4bd   : > { %v3066_v30 = vsel %vm3065_vm11, %v3064_v8, %v3063_v19  ;;  %v3108_v59 = vsel %vm3065_vm11, %v3107_v22, %v5988_v47  ;;  %v3153_v53 = vsel %vm3065_vm11, %v3152_v15, %v3151_v4  ;;  %v3193_v19 = vld [vmem:[%s6159_s5 + $0xe8] sm:$0xff] }
 0x4c0   : > { %v3012_v25 = vpop.permute.xlu0 %3011  ;;  %v3018_v3 = vpop.permute.xlu2 %3017 }
 0x4c1   : > { %v5992_v29 = vmax.f32 %v5903_v37, %v3012_v25  ;;  %v6009_v62 = vmax.f32 %v5924_v12, %v3018_v3  ;;  %v3150_v12 = vld [vmem:[%s6159_s5 + $0xb8] sm:$0xff]  ;;  %v3194_v25 = vld [vmem:[%s6159_s5 + $0xf0] sm:$0xff]  ;;  %v3192_v3 = vld [vmem:[%s6159_s5 + $0xe0] sm:$0xff] }
 0x4c3   : > { %v3068_v18 = vsel %vm3067_vm12, %v5992_v29, %v3066_v30  ;;  %v3109_v49 = vrot.slane %v5992_v29, 6  ;;  %v3075_v58 = vrot.slane %v6009_v62, 5  ;;  %v3115_v63 = vrot.slane %v6009_v62, 3 }
 0x4c4   : > { %v3071_v52 = vsel %vm3070_vm13, %v3069_v60, %v3068_v18  ;;  %v3159_v27 = vrot.slane %v6009_v62, 7  ;;  %v3199_v8 = vrot.slane %v5992_v29, 4  ;;  %v3191_v18 = vld [vmem:[%s6159_s5 + $0xd8] sm:$0xff] }
 0x4c5   : > { %v3110_v44 = vsel %vm3067_vm12, %v3109_v49, %v3108_v59 }
 0x4c6   : > { %v3112_v48 = vsel %vm3070_vm13, %v3111_v21, %v3110_v44 }
 0x4d0   : > { %v3016_v7 = vpop.permute.xlu1 %3015 }
 0x4d1   : > { %v5995_v33 = vmax.f32 %v5916_v38, %v3016_v7 }
 0x4d3   : > { %v3072_v37 = vrot.slane %v5995_v33, 6  ;;  %v3113_v32 = vrot.slane %v5995_v33, 4 }
 0x4d5   : > { %v3074_v0 = vsel %vm3073_vm14, %v3072_v37, %v3071_v52  ;;  %v3114_v35 = vsel %vm3073_vm14, %v3113_v32, %v3112_v48  ;;  %v3201_v37 = vrot.slane %v5999_v34, 3  ;;  %v3205_v52 = vrot.slane %v6009_v62, 1  ;;  %v3188_v34 = vld [vmem:[%s6159_s5 + $0xc0] sm:$0xff] }
 0x4d6   : > { %v3077_v1 = vsel %vm3076_vm15, %v3075_v58, %v3074_v0  ;;  %v3116_v50 = vsel %vm3076_vm15, %v3115_v63, %v3114_v35 }
 0x4e0   : > { %v3020_v55 = vpop.permute.xlu0 %3019 }
 0x4e1   : > { %v6005_v6 = vmax.f32 %v2997_v13, %v3020_v55  ;;  %v3154_v13 = vrot.slane %v5992_v29, 2  ;;  %v3196_v55 = vrot.slane %v5988_v47, 6  ;;  %v3203_v29 = vrot.slane %v5995_v33, 2  ;;  %v3190_v47 = vld [vmem:[%s6159_s5 + $0xd0] sm:$0xff] }
 0x4e3   : > { %v3078_v38 = vrot.slane %v6005_v6, 4  ;;  %v3117_v56 = vrot.slane %v6005_v6, 2  ;;  %v3155_v11 = vsel %vm3067_vm12, %v3154_v13, %v3153_v53  ;;  %v3161_v17 = vrot.slane %v6005_v6, 6 }
 0x4e4   : > { %v3157_v16 = vsel %vm3070_vm13, %v3156_v31, %v3155_v11  ;;  %v3198_v40 = vsel %vm3065_vm11, %v3197_v39, %v3196_v55 }
 0x4e5   : > { %v3080_v9 = vsel %vm3079_vm0, %v3078_v38, %v3077_v1  ;;  %v3118_v41 = vsel %vm3079_vm0, %v3117_v56, %v3116_v50  ;;  %v3158_v42 = vsel %vm3073_vm14, %v5995_v33, %v3157_v16  ;;  %v3200_v30 = vsel %vm3067_vm12, %v3199_v8, %v3198_v40  ;;  %v3189_v33 = vld [vmem:[%s6159_s5 + $0xc8] sm:$0xff]  ;;  %v3788_v1 = vld [vmem:[%s6160_s6] ss:$0 sm:$0xff] }
 0x4e6   : > { %v3160_v28 = vsel %vm3076_vm15, %v3159_v27, %v3158_v42  ;;  %v3202_v60 = vsel %vm3070_vm13, %v3201_v37, %v3200_v30 }
 0x4e7   : > { %v3162_v10 = vsel %vm3079_vm0, %v3161_v17, %v3160_v28  ;;  %v3204_v22 = vsel %vm3073_vm14, %v3203_v29, %v3202_v60 }
 0x4e8   : > { %v3022_v2 = vpop.permute.xlu1 %3021  ;;  %v3206_v0 = vsel %vm3076_vm15, %v3205_v52, %v3204_v22 }
 0x4e9   : > { %v6018_v54 = vmax.f32 %v5932_v14, %v3022_v2  ;;  %v3147_v14 = vld [vmem:[%s6159_s5 + $0xa0] sm:$0xff]  ;;  %v3207_v38 = vsel %vm3079_vm0, %v6005_v6, %v3206_v0 }
 0x4eb   : > { %v3081_v51 = vrot.slane %v6018_v54, 3  ;;  %v3119_v24 = vrot.slane %v6018_v54, 1  ;;  %v3163_v61 = vrot.slane %v6018_v54, 5  ;;  %v3208_v49 = vrot.slane %v6018_v54, 7 }
 0x4ed   : > { %v3083_v57 = vsel %vm3082_vm1, %v3081_v51, %v3080_v9  ;;  %v3120_v45 = vsel %vm3082_vm1, %v3119_v24, %v3118_v41  ;;  %v3164_v7 = vsel %vm3082_vm1, %v3163_v61, %v3162_v10  ;;  %v3209_v2 = vsel %vm3082_vm1, %v3208_v49, %v3207_v38 }
 0x4ee   : > { %3737 = vmatmul.msk.f32.vlgmr.msra.gmra.mxu3 %vm3084_vm2, %v3083_v57 }
 0x4ef   : > { %3175 = vmatpush.msra.mxu3 %v3150_v12 }
 0x4f1   : > { %3176 = vmatpush.msra.mxu3 %v3149_v26 }
 0x4f3   : > { %3177 = vmatpush.msra.mxu3 %v3148_v5 }
 0x4f5   : > { %3178 = vmatpush.msra.mxu3 %v3147_v14 }
 0x4f6   : > { %3738 = vmatmul.msk.f32.vlgmr.msrb.gmra.mxu3 %vm3084_vm2, %v3120_v45 }
 0x4f7   : > { %3179 = vmatpush.msra.mxu3 %v3146_v46 }
 0x4f9   : > { %3180 = vmatpush.msra.mxu3 %v3145_v23 }
 0x4fb   : > { %3181 = vmatpush.msra.mxu3 %v3144_v43 }
 0x4fd   : > { %3182 = vmatpush.msra.mxu3 %v3143_v20 }
 0x4fe   : > { %3739 = vmatmul.msk.f32.vlgmr.msra.gmra.mxu3 %vm3084_vm2, %v3164_v7 }
 0x4ff   : > { %3220 = vmatpush.msrb.mxu3 %v3195_v36 }
 0x501   : > { %3221 = vmatpush.msrb.mxu3 %v3194_v25 }
 0x503   : > { %3222 = vmatpush.msrb.mxu3 %v3193_v19 }
 0x505   : > { %3223 = vmatpush.msrb.mxu3 %v3192_v3 }
 0x507   : > { %3224 = vmatpush.msrb.mxu3 %v3191_v18 }
 0x509   : > { %3225 = vmatpush.msrb.mxu3 %v3190_v47 }
 0x50b   : > { %3226 = vmatpush.msrb.mxu3 %v3189_v33 }
 0x50d   : > { %3227 = vmatpush.msrb.mxu3 %v3188_v34 }
 0x50e   : > { %3740 = vmatmul.msk.f32.vlgmr.msrb.gmra.mxu3 %vm3084_vm2, %v3209_v2 }
 0x571   : > { %v3104_v62 = vpop.f32.mrf.mxu3 }
 0x579   : > { %v3140_v58 = vpop.f32.mrf.mxu3 }
 0x57a   : > { %v3141_v59 = vadd.f32 %v3140_v58, %v3104_v62 }
 0x581   : > { %v3184_v54 = vpop.f32.mrf.mxu3 }
 0x582   : > { %v3187_v51 = vadd.f32 %v3184_v54, %v3141_v59 }
 0x591   : > { %v3229_v6 = vpop.f32.mrf.mxu3 }
 0x592   : > { %v3232_v44 = vadd.f32 %v3229_v6, %v3187_v51 }
 0x594   : > { %v3237_v32 = vadd.f32 %v3788_v1, %v3232_v44 }
 0x596   : > { %v3238_v9 = vmax.f32 %v3237_v32, 0.0 }
 0x598   : > { %3239 = vst [vmem:[%s274_s13] sm:$0xff] %v3238_v9 }
 0x599   : > { %3848 = shalt.err (!%p3845_p3)
}
 0x59a   : > { %3746 = dma.vmem_to_hbm [thread:$0]  (%p3962_p5), %s3254_s15, 128, %s3256_s17, %s3241_s18  }
 0x59b PF: > { %p3752_p4 = scmp.ge.s32.totalorder %s3883_s27, 2  ;;  %s3267_s22 = sand.u32 1, %s3871_s24  }
 0x59c   : > { %s3268_s28 = scalar_lea.sflag [#allocation4], %s3267_s22 }
 0x59d   : > { %p3749_p7 = pnand %p3752_p4, %p3966_p6 }
 0x59f   : > { %p3750_p8 = pneg %p3749_p7 }
 0x5a1   : > { %3866 = dma.done.wait (%p3750_p8), %s3268_s28, 128  }
 0x5a2   : > { %3868 = vsyncadd (%p3750_p8), %s3268_s28, 4294967168  ;;  %p17_p9 = scmp.ge.s32.totalorder %s3950_s30, 4   ;;  %s6278_s24 = smov %s3875_s25 }
 0x5a3   : > { %s6279_s25 = smov %s3879_s26  ;;  %s6280_s26 = smov %s3960_s10 }
 0x5a4   : > { %s6281_s27 = smov %s3950_s30  ;;  %19 = sbr.rel (!%p17_p9) target bundleno = 3 (0x3), region = 91 }
 0x5a9   :  { %3274 = vsyncpa [#allocation4], 1 }
 0x5aa   :  { %3276 = vsyncpa [#allocation4 + $0x1], 1 }

</bundles_post_ra>
